<compile_context>
chip_gen: v7x
topology: tpu7x:2x2x1
jax: 0.10.0
libtpu: 0.0.40
codegen_flags: <defaults>
</compile_context>

<pallas_src>
import functools

import jax
import jax.numpy as jnp
from jax.experimental import pallas as pl
from jax.experimental.pallas import tpu as pltpu

_LANES = 128
_SUBLANES = 8


def _round_up(x, m):
    return ((x + m - 1) // m) * m


# ----------------------------- Pallas kernel --------------------------------


def _mlp_max_kernel(num_layers, k, x_ref, *args):
    """Channels-first position-wise MLP (1x1 conv == matmul, BN scale folded) + ReLU,
    with a running max over the k neighbour slabs (one slab live at a time)."""
    out_ref = args[-1]
    params = args[:-1]
    acc = None
    for i in range(k):                                   # one neighbour slab at a time
        h = x_ref[0, i]                                  # (cin, tile_s) bf16, lane-dense
        for l in range(num_layers):
            w = params[2 * l][...]                       # (cout_pad, cin_l) bf16, BN scale folded
            bias = params[2 * l + 1][...]                # (cout_pad, 1)     f32
            z = jnp.dot(w, h, preferred_element_type=jnp.float32)   # MXU, f32 accumulate
            z = jnp.maximum(z + bias, 0.0)               # BN bias + ReLU in f32
            h = z.astype(jnp.bfloat16) if l + 1 < num_layers else z
        acc = h if acc is None else jnp.maximum(acc, h)  # running max over k (pure VPU)
    # Single XLU transpose per tile -> lane-dense (tile_s, cout_pad) store.
    # TODO(synk): on v5e, emitting bf16 here halves writeback bytes if downstream allows it.
    out_ref[0] = jnp.transpose(acc).astype(out_ref.dtype)


# ----------------------------- Planning helpers ------------------------------


def _vmem_capacity_bytes():
    try:
        cap = int(pltpu.get_tpu_info().vmem_capacity_bytes)
        if cap > 0:
            return cap
    except Exception:
        pass
    return 64 * 1024 * 1024        # conservative default: v7x per-TensorCore VMEM


def _vmem_bytes_estimate(tile_s, k, cin, weights, biases, x_buffers):
    """Live-VMEM estimate for one grid step (buffered I/O + params + in-flight values)."""
    cout_pad = int(weights[-1].shape[0])
    max_c = max(int(w.shape[0]) for w in weights)
    x_tile = x_buffers * k * _round_up(cin, _SUBLANES) * tile_s * 2          # bf16 input tile
    out_tile = 2 * tile_s * cout_pad * 4                                     # f32 output tile
    params = 2 * sum(int(w.shape[0]) * _round_up(int(w.shape[1]), _LANES) * 2 for w in weights)
    params += 2 * sum(int(bv.shape[0]) * _LANES * 4 for bv in biases)
    # per-slab activations (bf16 input + f32 matmul result) + running max + transposed copy
    inter = tile_s * (max_c * (2 + 4) + cout_pad * 4 * 2)
    return x_tile + out_tile + params + inter


def _plan(nsamples, b, k, cin, weights, biases):
    cap = _vmem_capacity_bytes()
    x_buffers = 3 if cap >= 100 * 1024 * 1024 else 2     # Buffered(3) only on 128 MiB chips
    budget = int(0.6 * cap)                              # tile-selection budget (headroom)
    tile_s = max(_LANES, min(512, _round_up(min(nsamples, 512), _LANES)))
    while tile_s > _LANES and _vmem_bytes_estimate(tile_s, k, cin, weights, biases,
                                                   x_buffers) > budget:
        tile_s -= _LANES
    # avoid > ~12.5% nsamples padding
    while tile_s > _LANES and (_round_up(nsamples, tile_s) - nsamples) * 8 > nsamples:
        tile_s -= _LANES
    # keep >= 4 total grid steps when possible so both v7x TensorCores get work
    while tile_s > _LANES and b * pl.cdiv(nsamples, tile_s) < 4:
        tile_s -= _LANES
    s_pad = pl.cdiv(nsamples, tile_s) * tile_s
    est = _vmem_bytes_estimate(tile_s, k, cin, weights, biases, x_buffers)
    vmem_limit = int(max(32 * 1024 * 1024, min(0.85 * cap, 1.5 * est)))
    return dict(tile_s=tile_s, s_pad=s_pad, x_buffers=x_buffers, vmem_limit=vmem_limit)


def _make_in_specs(k, cin, tile_s, weights, biases, x_buffers, single_buffer_params):
    x_kw = {"pipeline_mode": pl.Buffered(x_buffers)} if x_buffers != 2 else {}
    in_specs = [pl.BlockSpec((1, k, cin, tile_s), lambda i, j: (i, 0, 0, j), **x_kw)]
    # Weights/biases never change across the grid (constant index_map): single-buffer them.
    p_kw = {"pipeline_mode": pl.Buffered(1)} if single_buffer_params else {}
    for w, bv in zip(weights, biases):
        in_specs.append(pl.BlockSpec(w.shape, lambda i, j: (0, 0), **p_kw))
        in_specs.append(pl.BlockSpec(bv.shape, lambda i, j: (0, 0), **p_kw))
    return in_specs


def mlp_max_pallas(x, weights, biases, plan, out_dtype=jnp.float32):
    """x: (b, k, cin, s_pad) bf16 -> (b, s_pad, cout_pad) out_dtype."""
    b, k, cin, s_pad = x.shape
    tile_s = plan["tile_s"]
    assert s_pad % tile_s == 0
    n_s_tiles = s_pad // tile_s
    num_layers = len(weights)
    cout_pad = int(weights[-1].shape[0])

    kernel = functools.partial(_mlp_max_kernel, num_layers, k)
    flat_params = []
    for w, bv in zip(weights, biases):
        flat_params += [w, bv]

    flops = 2 * b * k * s_pad * sum(int(w.shape[0]) * int(w.shape[1]) for w in weights)
    bytes_accessed = (
        int(x.size) * 2
        + sum(int(w.size) * 2 for w in weights)
        + sum(int(bv.size) * 4 for bv in biases)
        + b * s_pad * cout_pad * jnp.dtype(out_dtype).itemsize
    )

    def call(optimized):
        in_specs = _make_in_specs(k, cin, tile_s, weights, biases,
                                  plan["x_buffers"] if optimized else 2, optimized)
        return pl.pallas_call(
            kernel,
            out_shape=jax.ShapeDtypeStruct((b, s_pad, cout_pad), out_dtype),
            grid=(b, n_s_tiles),
            in_specs=in_specs,
            out_specs=pl.BlockSpec((1, tile_s, cout_pad), lambda i, j: (i, j, 0)),
            compiler_params=pltpu.CompilerParams(
                dimension_semantics=("parallel", "parallel"),
                vmem_limit_bytes=plan["vmem_limit"],
            ),
            cost_estimate=pl.CostEstimate(
                flops=flops, transcendentals=0, bytes_accessed=bytes_accessed),
        )(x, *flat_params)

    try:
        return call(True)
    except Exception:
        # TODO(synk): pipeline_mode=pl.Buffered(...) rejected by this Mosaic build;
        # fall back to default double-buffering for all operands.
        return call(False)


# ----------------------------- JAX glue (was CUDA ext) -----------------------


def farthest_point_sampling(points, nsamples):
    """points: (b, n, 3) -> indices (b, nsamples). Iterative FPS (== fps_cuda.fps, seed idx 0)."""
    # TODO(synk): serial-argmax FPS stays as plain-JAX glue; a VMEM-resident Pallas FPS kernel
    # would take the nsamples-long dependent loop off the XLA critical path.
    b, n, _ = points.shape
    dis0 = jnp.full((b, n), 1e10, dtype=jnp.float32)
    indices0 = jnp.zeros((b, nsamples), dtype=jnp.int32)   # indices[:, 0] = 0
    batch = jnp.arange(b)

    def body(i, state):
        dis, indices, last = state
        last_pt = points[batch, last]                      # (b, 3)
        d = jnp.sum((points - last_pt[:, None, :]) ** 2, axis=-1)
        dis = jnp.minimum(dis, d)
        nxt = jnp.argmax(dis, axis=-1).astype(jnp.int32)
        indices = indices.at[:, i].set(nxt)
        return dis, indices, nxt

    last0 = jnp.zeros((b,), dtype=jnp.int32)
    _, indices, _ = jax.lax.fori_loop(1, nsamples, body, (dis0, indices0, last0))
    return indices


def ball_query_group_cf(radius, k, centroids, points, features_bf16, cin_pad, s_pad):
    """== ball_query_cuda2 + centering + /radius + channel concat, emitted channels-first
    (b, k, cin_pad, s_pad) bf16 so the Pallas kernel sees lane-dense (positions-on-lanes)
    tiles.  Only tiny index / centroid arrays are transposed or padded on the host."""
    b, n, _ = points.shape
    s = centroids.shape[1]
    c = features_bf16.shape[-1]
    d2 = jnp.sum((centroids[:, :, None, :] - points[:, None, :, :]) ** 2, axis=-1)  # (b, s, n)
    arange_n = jnp.arange(n, dtype=jnp.int32)
    idx = jnp.where(d2 <= radius ** 2, arange_n[None, None, :], n)
    idx = jnp.sort(idx, axis=-1)[:, :, :k]                 # first k in-ball points (by index)
    first = idx[:, :, :1]
    idx = jnp.where(idx == n, first, idx)                  # pad short neighbourhoods with 1st hit
    idx = jnp.where(idx == n, 0, idx)                      # safeguard: no neighbour at all
    idx_t = jnp.transpose(idx, (0, 2, 1))                  # (b, k, s)   -- tiny int array
    cent_cf = jnp.transpose(centroids, (0, 2, 1))          # (b, 3, s)   -- tiny
    if s_pad > s:
        idx_t = jnp.pad(idx_t, ((0, 0), (0, 0), (0, s_pad - s)))
        cent_cf = jnp.pad(cent_cf, ((0, 0), (0, 0), (0, s_pad - s)))
    bidx = jnp.arange(b)[:, None, None, None]
    kidx = idx_t[:, :, None, :]                            # (b, k, 1, s_pad)
    ch3 = jnp.arange(3)[None, None, :, None]
    chc = jnp.arange(c)[None, None, :, None]
    # TODO(synk): fuse this gather into the kernel (idx via PrefetchScalarGridSpec + manual
    # per-tile DMA from HBM) to remove the (b, k, cin, s) HBM round trip entirely.
    grp_pts = points[bidx, kidx, ch3]                      # (b, k, 3, s_pad) f32, channels-first
    grp_feat = features_bf16[bidx, kidx, chc]              # (b, k, c, s_pad) bf16
    rel = (grp_pts - cent_cf[:, None, :, :]) / radius
    parts = [rel.astype(jnp.bfloat16), grp_feat]           # coords first (matches torch.cat dim=1)
    if cin_pad > 3 + c:
        parts.append(jnp.zeros((b, k, cin_pad - 3 - c, s_pad), jnp.bfloat16))
    return jnp.concatenate(parts, axis=2)


# ----------------------------- Module wrapper --------------------------------


class PointSetAbstractionLayerPallas:
    def __init__(self, stride, radius, k, in_channels, mlp_units, key):
        self.stride = stride
        self.radius = float(radius)
        self.k = k
        self.in_channels = int(in_channels)
        self.in_channels_pad = _round_up(self.in_channels, _SUBLANES)  # sublane-aligned layer-0 K
        self.out_channels = int(mlp_units[-1])
        # TODO(synk): BatchNorm2d is folded in eval mode (running stats); training-mode batch
        # statistics couple batch elements and are not reproduced here.
        eps = 1e-5
        self.weights, self.biases = [], []
        cin_logical, cin_padded = self.in_channels, self.in_channels_pad
        for cout in mlp_units:
            cout = int(cout)
            cout_pad = _round_up(cout, _LANES)             # lane-dense MXU passes & stores
            key, wk = jax.random.split(key)
            w = 0.1 * jax.random.normal(wk, (cout, cin_logical), dtype=jnp.float32)  # Conv2d 1x1
            gamma = 1.0 + 0.01 * jnp.arange(cout, dtype=jnp.float32)
            beta = 0.02 * jnp.arange(cout, dtype=jnp.float32)
            r_mean = 0.01 * jnp.arange(cout, dtype=jnp.float32)
            r_var = 1.0 + 0.05 * jnp.arange(cout, dtype=jnp.float32)
            scale = gamma / jnp.sqrt(r_var + eps)
            bias = beta - r_mean * scale
            w_folded = w * scale[:, None]                  # fold BN scale into weight rows
            w_pad = jnp.zeros((cout_pad, cin_padded), jnp.float32).at[:cout, :cin_logical].set(w_folded)
            b_pad = jnp.zeros((cout_pad, 1), jnp.float32).at[:cout, 0].set(bias)
            # TODO(synk): on v7x the weights / inter-layer activations could be fp8 (e4m3) for
            # extra VMEM/BW headroom; kept bf16 so the same code runs on v5e/v6e.
            self.weights.append(w_pad.astype(jnp.bfloat16))  # bf16 into the MXU
            self.biases.append(b_pad)                        # epilogue stays f32 (v5e-safe)
            cin_logical, cin_padded = cout, cout_pad
        self.out_channels_pad = cin_padded

    def __call__(self, points, features, gts=None):
        """
        points:   (b, n, 3)
        features: (b, n, c)
        gts:      (b, n) or None
        returns centroids (b, nsamples, 3), group_features (b, nsamples, c'), gts (b, nsamples)
        """
        b, n, _ = points.shape
        nsamples = n // self.stride
        fps_idx = farthest_point_sampling(points, nsamples)          # (b, nsamples)
        batch = jnp.arange(b)[:, None]
        centroids = points[batch, fps_idx]                           # (b, nsamples, 3)
        if gts is not None:
            gts = gts[batch, fps_idx]                                # (b, nsamples)
        plan = _plan(nsamples, b, self.k, self.in_channels_pad, self.weights, self.biases)
        x = ball_query_group_cf(self.radius, self.k, centroids, points,
                                features.astype(jnp.bfloat16),
                                self.in_channels_pad, plan["s_pad"])  # (b, k, cin_pad, s_pad) bf16
        gf = mlp_max_pallas(x, self.weights, self.biases, plan)      # (b, s_pad, cout_pad) f32
        # TODO(synk): downstream layers could consume the padded (s_pad, cout_pad) tensor directly
        # and skip this HBM de-padding copy.
        if plan["s_pad"] != nsamples or self.out_channels_pad != self.out_channels:
            gf = gf[:, :nsamples, :self.out_channels]
        return centroids, gf, gts


# ----------------------------- Demo ------------------------------------------


if __name__ == "__main__":
    key = jax.random.PRNGKey(0)
    k_pts, k_feat, k_layer = jax.random.split(key, 3)

    b, n, c = 2, 64, 4
    stride, radius, k = 4, 0.4, 8
    mlp_units = [16, 32]

    points = jax.random.uniform(k_pts, (b, n, 3), dtype=jnp.float32)
    features = jax.random.normal(k_feat, (b, n, c), dtype=jnp.float32)
    gts = jnp.arange(b * n, dtype=jnp.int32).reshape(b, n)

    layer = PointSetAbstractionLayerPallas(stride, radius, k, in_channels=3 + c,
                                           mlp_units=mlp_units, key=k_layer)

    centroids, group_features, gts_out = layer(points, features, gts)
    jax.block_until_ready((centroids, group_features, gts_out))

    assert centroids.shape == (b, n // stride, 3)
    assert group_features.shape == (b, n // stride, mlp_units[-1])
    assert gts_out.shape == (b, n // stride)
    assert bool(jnp.all(jnp.isfinite(group_features)))
    print("KERNEL_OK")
</pallas_src>

<mosaic_0001>
module attributes {stable_mosaic.version = 11 : i64} {
  func.func @_mlp_max_kernel(%arg0: i32, %arg1: i32, %arg2: memref<1x8x8x128xbf16, #tpu.memory_space<vmem>>, %arg3: memref<128x8xbf16, #tpu.memory_space<vmem>>, %arg4: memref<128x1xf32, #tpu.memory_space<vmem>>, %arg5: memref<128x128xbf16, #tpu.memory_space<vmem>>, %arg6: memref<128x1xf32, #tpu.memory_space<vmem>>, %arg7: memref<1x128x128xf32, #tpu.memory_space<vmem>>) attributes {dimension_semantics = [#tpu.dimension_semantics<parallel>, #tpu.dimension_semantics<parallel>], iteration_bounds = array<i64: 2, 1>, scalar_prefetch = 0 : i64, scratch_operands = 0 : i64, tpu.core_type = #tpu.core_type<tc>, window_params = [{transform_indices = @transform_0, window_bounds = array<i64: 1, 8, 8, 128>}, {pipeline_mode = #tpu.pipeline_mode<synchronous>, transform_indices = @transform_1, window_bounds = array<i64: 128, 8>}, {pipeline_mode = #tpu.pipeline_mode<synchronous>, transform_indices = @transform_2, window_bounds = array<i64: 128, 1>}, {pipeline_mode = #tpu.pipeline_mode<synchronous>, transform_indices = @transform_3, window_bounds = array<i64: 128, 128>}, {pipeline_mode = #tpu.pipeline_mode<synchronous>, transform_indices = @transform_4, window_bounds = array<i64: 128, 1>}, {transform_indices = @transform_5, window_bounds = array<i64: 1, 128, 128>}]} {
    %c0 = arith.constant 0 : index
    %c0_0 = arith.constant 0 : index
    %c0_1 = arith.constant 0 : index
    %c0_2 = arith.constant 0 : index
    %0 = vector.load %arg2[%c0, %c0_0, %c0_1, %c0_2] : memref<1x8x8x128xbf16, #tpu.memory_space<vmem>>, vector<1x1x8x128xbf16>
    %1 = vector.shape_cast %0 : vector<1x1x8x128xbf16> to vector<8x128xbf16>
    %c0_3 = arith.constant 0 : index
    %c0_4 = arith.constant 0 : index
    %2 = vector.load %arg3[%c0_3, %c0_4] : memref<128x8xbf16, #tpu.memory_space<vmem>>, vector<128x8xbf16>
    %c0_5 = arith.constant 0 : index
    %c0_6 = arith.constant 0 : index
    %3 = vector.load %arg4[%c0_5, %c0_6] : memref<128x1xf32, #tpu.memory_space<vmem>>, vector<128x1xf32>
    %cst = arith.constant dense<0.000000e+00> : vector<128x128xf32>
    %4 = tpu.matmul %2, %1, %cst {dimension_numbers = #tpu.dot_dimension_numbers<[1], [0], [0], [1], [0, 0, 1, 1], [], []>} : vector<128x8xbf16>, vector<8x128xbf16>, vector<128x128xf32> -> vector<128x128xf32>
    %5 = vector.broadcast %3 : vector<128x1xf32> to vector<128x128xf32>
    %6 = arith.addf %4, %5 : vector<128x128xf32>
    %cst_7 = arith.constant 0.000000e+00 : f32
    %7 = vector.broadcast %cst_7 : f32 to vector<128x128xf32>
    %8 = arith.maximumf %6, %7 : vector<128x128xf32>
    %9 = arith.truncf %8 : vector<128x128xf32> to vector<128x128xbf16>
    %c0_8 = arith.constant 0 : index
    %c0_9 = arith.constant 0 : index
    %10 = vector.load %arg5[%c0_8, %c0_9] : memref<128x128xbf16, #tpu.memory_space<vmem>>, vector<128x128xbf16>
    %c0_10 = arith.constant 0 : index
    %c0_11 = arith.constant 0 : index
    %11 = vector.load %arg6[%c0_10, %c0_11] : memref<128x1xf32, #tpu.memory_space<vmem>>, vector<128x1xf32>
    %cst_12 = arith.constant dense<0.000000e+00> : vector<128x128xf32>
    %12 = tpu.matmul %10, %9, %cst_12 {dimension_numbers = #tpu.dot_dimension_numbers<[1], [0], [0], [1], [0, 0, 1, 1], [], []>} : vector<128x128xbf16>, vector<128x128xbf16>, vector<128x128xf32> -> vector<128x128xf32>
    %13 = vector.broadcast %11 : vector<128x1xf32> to vector<128x128xf32>
    %14 = arith.addf %12, %13 : vector<128x128xf32>
    %cst_13 = arith.constant 0.000000e+00 : f32
    %15 = vector.broadcast %cst_13 : f32 to vector<128x128xf32>
    %16 = arith.maximumf %14, %15 : vector<128x128xf32>
    %c0_14 = arith.constant 0 : index
    %c1 = arith.constant 1 : index
    %c0_15 = arith.constant 0 : index
    %c0_16 = arith.constant 0 : index
    %17 = vector.load %arg2[%c0_14, %c1, %c0_15, %c0_16] : memref<1x8x8x128xbf16, #tpu.memory_space<vmem>>, vector<1x1x8x128xbf16>
    %18 = vector.shape_cast %17 : vector<1x1x8x128xbf16> to vector<8x128xbf16>
    %c0_17 = arith.constant 0 : index
    %c0_18 = arith.constant 0 : index
    %19 = vector.load %arg3[%c0_17, %c0_18] : memref<128x8xbf16, #tpu.memory_space<vmem>>, vector<128x8xbf16>
    %c0_19 = arith.constant 0 : index
    %c0_20 = arith.constant 0 : index
    %20 = vector.load %arg4[%c0_19, %c0_20] : memref<128x1xf32, #tpu.memory_space<vmem>>, vector<128x1xf32>
    %cst_21 = arith.constant dense<0.000000e+00> : vector<128x128xf32>
    %21 = tpu.matmul %19, %18, %cst_21 {dimension_numbers = #tpu.dot_dimension_numbers<[1], [0], [0], [1], [0, 0, 1, 1], [], []>} : vector<128x8xbf16>, vector<8x128xbf16>, vector<128x128xf32> -> vector<128x128xf32>
    %22 = vector.broadcast %20 : vector<128x1xf32> to vector<128x128xf32>
    %23 = arith.addf %21, %22 : vector<128x128xf32>
    %cst_22 = arith.constant 0.000000e+00 : f32
    %24 = vector.broadcast %cst_22 : f32 to vector<128x128xf32>
    %25 = arith.maximumf %23, %24 : vector<128x128xf32>
    %26 = arith.truncf %25 : vector<128x128xf32> to vector<128x128xbf16>
    %c0_23 = arith.constant 0 : index
    %c0_24 = arith.constant 0 : index
    %27 = vector.load %arg5[%c0_23, %c0_24] : memref<128x128xbf16, #tpu.memory_space<vmem>>, vector<128x128xbf16>
    %c0_25 = arith.constant 0 : index
    %c0_26 = arith.constant 0 : index
    %28 = vector.load %arg6[%c0_25, %c0_26] : memref<128x1xf32, #tpu.memory_space<vmem>>, vector<128x1xf32>
    %cst_27 = arith.constant dense<0.000000e+00> : vector<128x128xf32>
    %29 = tpu.matmul %27, %26, %cst_27 {dimension_numbers = #tpu.dot_dimension_numbers<[1], [0], [0], [1], [0, 0, 1, 1], [], []>} : vector<128x128xbf16>, vector<128x128xbf16>, vector<128x128xf32> -> vector<128x128xf32>
    %30 = vector.broadcast %28 : vector<128x1xf32> to vector<128x128xf32>
    %31 = arith.addf %29, %30 : vector<128x128xf32>
    %cst_28 = arith.constant 0.000000e+00 : f32
    %32 = vector.broadcast %cst_28 : f32 to vector<128x128xf32>
    %33 = arith.maximumf %31, %32 : vector<128x128xf32>
    %34 = arith.maximumf %16, %33 : vector<128x128xf32>
    %c0_29 = arith.constant 0 : index
    %c2 = arith.constant 2 : index
    %c0_30 = arith.constant 0 : index
    %c0_31 = arith.constant 0 : index
    %35 = vector.load %arg2[%c0_29, %c2, %c0_30, %c0_31] : memref<1x8x8x128xbf16, #tpu.memory_space<vmem>>, vector<1x1x8x128xbf16>
    %36 = vector.shape_cast %35 : vector<1x1x8x128xbf16> to vector<8x128xbf16>
    %c0_32 = arith.constant 0 : index
    %c0_33 = arith.constant 0 : index
    %37 = vector.load %arg3[%c0_32, %c0_33] : memref<128x8xbf16, #tpu.memory_space<vmem>>, vector<128x8xbf16>
    %c0_34 = arith.constant 0 : index
    %c0_35 = arith.constant 0 : index
    %38 = vector.load %arg4[%c0_34, %c0_35] : memref<128x1xf32, #tpu.memory_space<vmem>>, vector<128x1xf32>
    %cst_36 = arith.constant dense<0.000000e+00> : vector<128x128xf32>
    %39 = tpu.matmul %37, %36, %cst_36 {dimension_numbers = #tpu.dot_dimension_numbers<[1], [0], [0], [1], [0, 0, 1, 1], [], []>} : vector<128x8xbf16>, vector<8x128xbf16>, vector<128x128xf32> -> vector<128x128xf32>
    %40 = vector.broadcast %38 : vector<128x1xf32> to vector<128x128xf32>
    %41 = arith.addf %39, %40 : vector<128x128xf32>
    %cst_37 = arith.constant 0.000000e+00 : f32
    %42 = vector.broadcast %cst_37 : f32 to vector<128x128xf32>
    %43 = arith.maximumf %41, %42 : vector<128x128xf32>
    %44 = arith.truncf %43 : vector<128x128xf32> to vector<128x128xbf16>
    %c0_38 = arith.constant 0 : index
    %c0_39 = arith.constant 0 : index
    %45 = vector.load %arg5[%c0_38, %c0_39] : memref<128x128xbf16, #tpu.memory_space<vmem>>, vector<128x128xbf16>
    %c0_40 = arith.constant 0 : index
    %c0_41 = arith.constant 0 : index
    %46 = vector.load %arg6[%c0_40, %c0_41] : memref<128x1xf32, #tpu.memory_space<vmem>>, vector<128x1xf32>
    %cst_42 = arith.constant dense<0.000000e+00> : vector<128x128xf32>
    %47 = tpu.matmul %45, %44, %cst_42 {dimension_numbers = #tpu.dot_dimension_numbers<[1], [0], [0], [1], [0, 0, 1, 1], [], []>} : vector<128x128xbf16>, vector<128x128xbf16>, vector<128x128xf32> -> vector<128x128xf32>
    %48 = vector.broadcast %46 : vector<128x1xf32> to vector<128x128xf32>
    %49 = arith.addf %47, %48 : vector<128x128xf32>
    %cst_43 = arith.constant 0.000000e+00 : f32
    %50 = vector.broadcast %cst_43 : f32 to vector<128x128xf32>
    %51 = arith.maximumf %49, %50 : vector<128x128xf32>
    %52 = arith.maximumf %34, %51 : vector<128x128xf32>
    %c0_44 = arith.constant 0 : index
    %c3 = arith.constant 3 : index
    %c0_45 = arith.constant 0 : index
    %c0_46 = arith.constant 0 : index
    %53 = vector.load %arg2[%c0_44, %c3, %c0_45, %c0_46] : memref<1x8x8x128xbf16, #tpu.memory_space<vmem>>, vector<1x1x8x128xbf16>
    %54 = vector.shape_cast %53 : vector<1x1x8x128xbf16> to vector<8x128xbf16>
    %c0_47 = arith.constant 0 : index
    %c0_48 = arith.constant 0 : index
    %55 = vector.load %arg3[%c0_47, %c0_48] : memref<128x8xbf16, #tpu.memory_space<vmem>>, vector<128x8xbf16>
    %c0_49 = arith.constant 0 : index
    %c0_50 = arith.constant 0 : index
    %56 = vector.load %arg4[%c0_49, %c0_50] : memref<128x1xf32, #tpu.memory_space<vmem>>, vector<128x1xf32>
    %cst_51 = arith.constant dense<0.000000e+00> : vector<128x128xf32>
    %57 = tpu.matmul %55, %54, %cst_51 {dimension_numbers = #tpu.dot_dimension_numbers<[1], [0], [0], [1], [0, 0, 1, 1], [], []>} : vector<128x8xbf16>, vector<8x128xbf16>, vector<128x128xf32> -> vector<128x128xf32>
    %58 = vector.broadcast %56 : vector<128x1xf32> to vector<128x128xf32>
    %59 = arith.addf %57, %58 : vector<128x128xf32>
    %cst_52 = arith.constant 0.000000e+00 : f32
    %60 = vector.broadcast %cst_52 : f32 to vector<128x128xf32>
    %61 = arith.maximumf %59, %60 : vector<128x128xf32>
    %62 = arith.truncf %61 : vector<128x128xf32> to vector<128x128xbf16>
    %c0_53 = arith.constant 0 : index
    %c0_54 = arith.constant 0 : index
    %63 = vector.load %arg5[%c0_53, %c0_54] : memref<128x128xbf16, #tpu.memory_space<vmem>>, vector<128x128xbf16>
    %c0_55 = arith.constant 0 : index
    %c0_56 = arith.constant 0 : index
    %64 = vector.load %arg6[%c0_55, %c0_56] : memref<128x1xf32, #tpu.memory_space<vmem>>, vector<128x1xf32>
    %cst_57 = arith.constant dense<0.000000e+00> : vector<128x128xf32>
    %65 = tpu.matmul %63, %62, %cst_57 {dimension_numbers = #tpu.dot_dimension_numbers<[1], [0], [0], [1], [0, 0, 1, 1], [], []>} : vector<128x128xbf16>, vector<128x128xbf16>, vector<128x128xf32> -> vector<128x128xf32>
    %66 = vector.broadcast %64 : vector<128x1xf32> to vector<128x128xf32>
    %67 = arith.addf %65, %66 : vector<128x128xf32>
    %cst_58 = arith.constant 0.000000e+00 : f32
    %68 = vector.broadcast %cst_58 : f32 to vector<128x128xf32>
    %69 = arith.maximumf %67, %68 : vector<128x128xf32>
    %70 = arith.maximumf %52, %69 : vector<128x128xf32>
    %c0_59 = arith.constant 0 : index
    %c4 = arith.constant 4 : index
    %c0_60 = arith.constant 0 : index
    %c0_61 = arith.constant 0 : index
    %71 = vector.load %arg2[%c0_59, %c4, %c0_60, %c0_61] : memref<1x8x8x128xbf16, #tpu.memory_space<vmem>>, vector<1x1x8x128xbf16>
    %72 = vector.shape_cast %71 : vector<1x1x8x128xbf16> to vector<8x128xbf16>
    %c0_62 = arith.constant 0 : index
    %c0_63 = arith.constant 0 : index
    %73 = vector.load %arg3[%c0_62, %c0_63] : memref<128x8xbf16, #tpu.memory_space<vmem>>, vector<128x8xbf16>
    %c0_64 = arith.constant 0 : index
    %c0_65 = arith.constant 0 : index
    %74 = vector.load %arg4[%c0_64, %c0_65] : memref<128x1xf32, #tpu.memory_space<vmem>>, vector<128x1xf32>
    %cst_66 = arith.constant dense<0.000000e+00> : vector<128x128xf32>
    %75 = tpu.matmul %73, %72, %cst_66 {dimension_numbers = #tpu.dot_dimension_numbers<[1], [0], [0], [1], [0, 0, 1, 1], [], []>} : vector<128x8xbf16>, vector<8x128xbf16>, vector<128x128xf32> -> vector<128x128xf32>
    %76 = vector.broadcast %74 : vector<128x1xf32> to vector<128x128xf32>
    %77 = arith.addf %75, %76 : vector<128x128xf32>
    %cst_67 = arith.constant 0.000000e+00 : f32
    %78 = vector.broadcast %cst_67 : f32 to vector<128x128xf32>
    %79 = arith.maximumf %77, %78 : vector<128x128xf32>
    %80 = arith.truncf %79 : vector<128x128xf32> to vector<128x128xbf16>
    %c0_68 = arith.constant 0 : index
    %c0_69 = arith.constant 0 : index
    %81 = vector.load %arg5[%c0_68, %c0_69] : memref<128x128xbf16, #tpu.memory_space<vmem>>, vector<128x128xbf16>
    %c0_70 = arith.constant 0 : index
    %c0_71 = arith.constant 0 : index
    %82 = vector.load %arg6[%c0_70, %c0_71] : memref<128x1xf32, #tpu.memory_space<vmem>>, vector<128x1xf32>
    %cst_72 = arith.constant dense<0.000000e+00> : vector<128x128xf32>
    %83 = tpu.matmul %81, %80, %cst_72 {dimension_numbers = #tpu.dot_dimension_numbers<[1], [0], [0], [1], [0, 0, 1, 1], [], []>} : vector<128x128xbf16>, vector<128x128xbf16>, vector<128x128xf32> -> vector<128x128xf32>
    %84 = vector.broadcast %82 : vector<128x1xf32> to vector<128x128xf32>
    %85 = arith.addf %83, %84 : vector<128x128xf32>
    %cst_73 = arith.constant 0.000000e+00 : f32
    %86 = vector.broadcast %cst_73 : f32 to vector<128x128xf32>
    %87 = arith.maximumf %85, %86 : vector<128x128xf32>
    %88 = arith.maximumf %70, %87 : vector<128x128xf32>
    %c0_74 = arith.constant 0 : index
    %c5 = arith.constant 5 : index
    %c0_75 = arith.constant 0 : index
    %c0_76 = arith.constant 0 : index
    %89 = vector.load %arg2[%c0_74, %c5, %c0_75, %c0_76] : memref<1x8x8x128xbf16, #tpu.memory_space<vmem>>, vector<1x1x8x128xbf16>
    %90 = vector.shape_cast %89 : vector<1x1x8x128xbf16> to vector<8x128xbf16>
    %c0_77 = arith.constant 0 : index
    %c0_78 = arith.constant 0 : index
    %91 = vector.load %arg3[%c0_77, %c0_78] : memref<128x8xbf16, #tpu.memory_space<vmem>>, vector<128x8xbf16>
    %c0_79 = arith.constant 0 : index
    %c0_80 = arith.constant 0 : index
    %92 = vector.load %arg4[%c0_79, %c0_80] : memref<128x1xf32, #tpu.memory_space<vmem>>, vector<128x1xf32>
    %cst_81 = arith.constant dense<0.000000e+00> : vector<128x128xf32>
    %93 = tpu.matmul %91, %90, %cst_81 {dimension_numbers = #tpu.dot_dimension_numbers<[1], [0], [0], [1], [0, 0, 1, 1], [], []>} : vector<128x8xbf16>, vector<8x128xbf16>, vector<128x128xf32> -> vector<128x128xf32>
    %94 = vector.broadcast %92 : vector<128x1xf32> to vector<128x128xf32>
    %95 = arith.addf %93, %94 : vector<128x128xf32>
    %cst_82 = arith.constant 0.000000e+00 : f32
    %96 = vector.broadcast %cst_82 : f32 to vector<128x128xf32>
    %97 = arith.maximumf %95, %96 : vector<128x128xf32>
    %98 = arith.truncf %97 : vector<128x128xf32> to vector<128x128xbf16>
    %c0_83 = arith.constant 0 : index
    %c0_84 = arith.constant 0 : index
    %99 = vector.load %arg5[%c0_83, %c0_84] : memref<128x128xbf16, #tpu.memory_space<vmem>>, vector<128x128xbf16>
    %c0_85 = arith.constant 0 : index
    %c0_86 = arith.constant 0 : index
    %100 = vector.load %arg6[%c0_85, %c0_86] : memref<128x1xf32, #tpu.memory_space<vmem>>, vector<128x1xf32>
    %cst_87 = arith.constant dense<0.000000e+00> : vector<128x128xf32>
    %101 = tpu.matmul %99, %98, %cst_87 {dimension_numbers = #tpu.dot_dimension_numbers<[1], [0], [0], [1], [0, 0, 1, 1], [], []>} : vector<128x128xbf16>, vector<128x128xbf16>, vector<128x128xf32> -> vector<128x128xf32>
    %102 = vector.broadcast %100 : vector<128x1xf32> to vector<128x128xf32>
    %103 = arith.addf %101, %102 : vector<128x128xf32>
    %cst_88 = arith.constant 0.000000e+00 : f32
    %104 = vector.broadcast %cst_88 : f32 to vector<128x128xf32>
    %105 = arith.maximumf %103, %104 : vector<128x128xf32>
    %106 = arith.maximumf %88, %105 : vector<128x128xf32>
    %c0_89 = arith.constant 0 : index
    %c6 = arith.constant 6 : index
    %c0_90 = arith.constant 0 : index
    %c0_91 = arith.constant 0 : index
    %107 = vector.load %arg2[%c0_89, %c6, %c0_90, %c0_91] : memref<1x8x8x128xbf16, #tpu.memory_space<vmem>>, vector<1x1x8x128xbf16>
    %108 = vector.shape_cast %107 : vector<1x1x8x128xbf16> to vector<8x128xbf16>
    %c0_92 = arith.constant 0 : index
    %c0_93 = arith.constant 0 : index
    %109 = vector.load %arg3[%c0_92, %c0_93] : memref<128x8xbf16, #tpu.memory_space<vmem>>, vector<128x8xbf16>
    %c0_94 = arith.constant 0 : index
    %c0_95 = arith.constant 0 : index
    %110 = vector.load %arg4[%c0_94, %c0_95] : memref<128x1xf32, #tpu.memory_space<vmem>>, vector<128x1xf32>
    %cst_96 = arith.constant dense<0.000000e+00> : vector<128x128xf32>
    %111 = tpu.matmul %109, %108, %cst_96 {dimension_numbers = #tpu.dot_dimension_numbers<[1], [0], [0], [1], [0, 0, 1, 1], [], []>} : vector<128x8xbf16>, vector<8x128xbf16>, vector<128x128xf32> -> vector<128x128xf32>
    %112 = vector.broadcast %110 : vector<128x1xf32> to vector<128x128xf32>
    %113 = arith.addf %111, %112 : vector<128x128xf32>
    %cst_97 = arith.constant 0.000000e+00 : f32
    %114 = vector.broadcast %cst_97 : f32 to vector<128x128xf32>
    %115 = arith.maximumf %113, %114 : vector<128x128xf32>
    %116 = arith.truncf %115 : vector<128x128xf32> to vector<128x128xbf16>
    %c0_98 = arith.constant 0 : index
    %c0_99 = arith.constant 0 : index
    %117 = vector.load %arg5[%c0_98, %c0_99] : memref<128x128xbf16, #tpu.memory_space<vmem>>, vector<128x128xbf16>
    %c0_100 = arith.constant 0 : index
    %c0_101 = arith.constant 0 : index
    %118 = vector.load %arg6[%c0_100, %c0_101] : memref<128x1xf32, #tpu.memory_space<vmem>>, vector<128x1xf32>
    %cst_102 = arith.constant dense<0.000000e+00> : vector<128x128xf32>
    %119 = tpu.matmul %117, %116, %cst_102 {dimension_numbers = #tpu.dot_dimension_numbers<[1], [0], [0], [1], [0, 0, 1, 1], [], []>} : vector<128x128xbf16>, vector<128x128xbf16>, vector<128x128xf32> -> vector<128x128xf32>
    %120 = vector.broadcast %118 : vector<128x1xf32> to vector<128x128xf32>
    %121 = arith.addf %119, %120 : vector<128x128xf32>
    %cst_103 = arith.constant 0.000000e+00 : f32
    %122 = vector.broadcast %cst_103 : f32 to vector<128x128xf32>
    %123 = arith.maximumf %121, %122 : vector<128x128xf32>
    %124 = arith.maximumf %106, %123 : vector<128x128xf32>
    %c0_104 = arith.constant 0 : index
    %c7 = arith.constant 7 : index
    %c0_105 = arith.constant 0 : index
    %c0_106 = arith.constant 0 : index
    %125 = vector.load %arg2[%c0_104, %c7, %c0_105, %c0_106] : memref<1x8x8x128xbf16, #tpu.memory_space<vmem>>, vector<1x1x8x128xbf16>
    %126 = vector.shape_cast %125 : vector<1x1x8x128xbf16> to vector<8x128xbf16>
    %c0_107 = arith.constant 0 : index
    %c0_108 = arith.constant 0 : index
    %127 = vector.load %arg3[%c0_107, %c0_108] : memref<128x8xbf16, #tpu.memory_space<vmem>>, vector<128x8xbf16>
    %c0_109 = arith.constant 0 : index
    %c0_110 = arith.constant 0 : index
    %128 = vector.load %arg4[%c0_109, %c0_110] : memref<128x1xf32, #tpu.memory_space<vmem>>, vector<128x1xf32>
    %cst_111 = arith.constant dense<0.000000e+00> : vector<128x128xf32>
    %129 = tpu.matmul %127, %126, %cst_111 {dimension_numbers = #tpu.dot_dimension_numbers<[1], [0], [0], [1], [0, 0, 1, 1], [], []>} : vector<128x8xbf16>, vector<8x128xbf16>, vector<128x128xf32> -> vector<128x128xf32>
    %130 = vector.broadcast %128 : vector<128x1xf32> to vector<128x128xf32>
    %131 = arith.addf %129, %130 : vector<128x128xf32>
    %cst_112 = arith.constant 0.000000e+00 : f32
    %132 = vector.broadcast %cst_112 : f32 to vector<128x128xf32>
    %133 = arith.maximumf %131, %132 : vector<128x128xf32>
    %134 = arith.truncf %133 : vector<128x128xf32> to vector<128x128xbf16>
    %c0_113 = arith.constant 0 : index
    %c0_114 = arith.constant 0 : index
    %135 = vector.load %arg5[%c0_113, %c0_114] : memref<128x128xbf16, #tpu.memory_space<vmem>>, vector<128x128xbf16>
    %c0_115 = arith.constant 0 : index
    %c0_116 = arith.constant 0 : index
    %136 = vector.load %arg6[%c0_115, %c0_116] : memref<128x1xf32, #tpu.memory_space<vmem>>, vector<128x1xf32>
    %cst_117 = arith.constant dense<0.000000e+00> : vector<128x128xf32>
    %137 = tpu.matmul %135, %134, %cst_117 {dimension_numbers = #tpu.dot_dimension_numbers<[1], [0], [0], [1], [0, 0, 1, 1], [], []>} : vector<128x128xbf16>, vector<128x128xbf16>, vector<128x128xf32> -> vector<128x128xf32>
    %138 = vector.broadcast %136 : vector<128x1xf32> to vector<128x128xf32>
    %139 = arith.addf %137, %138 : vector<128x128xf32>
    %cst_118 = arith.constant 0.000000e+00 : f32
    %140 = vector.broadcast %cst_118 : f32 to vector<128x128xf32>
    %141 = arith.maximumf %139, %140 : vector<128x128xf32>
    %142 = arith.maximumf %124, %141 : vector<128x128xf32>
    %143 = tpu.transpose %142, [1, 0] : vector<128x128xf32> -> vector<128x128xf32>
    %c0_119 = arith.constant 0 : index
    %c0_120 = arith.constant 0 : index
    %c0_121 = arith.constant 0 : index
    %144 = vector.load %arg7[%c0_119, %c0_120, %c0_121] : memref<1x128x128xf32, #tpu.memory_space<vmem>>, vector<1x128x128xf32>
    %145 = vector.shape_cast %144 : vector<1x128x128xf32> to vector<128x128xf32>
    %146 = vector.shape_cast %143 : vector<128x128xf32> to vector<1x128x128xf32>
    tpu.vector_store %arg7[%c0_119, %c0_120, %c0_121], %146 {strides = array<i32>} : memref<1x128x128xf32, #tpu.memory_space<vmem>>, vector<1x128x128xf32>,
    return
  }
  func.func @transform_0(%arg0: i32, %arg1: i32) -> (i32, i32, i32, i32) {
    %c0_i32 = arith.constant 0 : i32
    %c0_i32_0 = arith.constant 0 : i32
    %c0_i32_1 = arith.constant 0 : i32
    return %arg0, %c0_i32, %c0_i32_0, %arg1 : i32, i32, i32, i32
  }
  func.func @transform_1(%arg0: i32, %arg1: i32) -> (i32, i32) {
    %c0_i32 = arith.constant 0 : i32
    %c0_i32_0 = arith.constant 0 : i32
    %c0_i32_1 = arith.constant 0 : i32
    return %c0_i32, %c0_i32_0 : i32, i32
  }
  func.func @transform_2(%arg0: i32, %arg1: i32) -> (i32, i32) {
    %c0_i32 = arith.constant 0 : i32
    %c0_i32_0 = arith.constant 0 : i32
    %c0_i32_1 = arith.constant 0 : i32
    return %c0_i32, %c0_i32_0 : i32, i32
  }
  func.func @transform_3(%arg0: i32, %arg1: i32) -> (i32, i32) {
    %c0_i32 = arith.constant 0 : i32
    %c0_i32_0 = arith.constant 0 : i32
    %c0_i32_1 = arith.constant 0 : i32
    return %c0_i32, %c0_i32_0 : i32, i32
  }
  func.func @transform_4(%arg0: i32, %arg1: i32) -> (i32, i32) {
    %c0_i32 = arith.constant 0 : i32
    %c0_i32_0 = arith.constant 0 : i32
    %c0_i32_1 = arith.constant 0 : i32
    return %c0_i32, %c0_i32_0 : i32, i32
  }
  func.func @transform_5(%arg0: i32, %arg1: i32) -> (i32, i32, i32) {
    %c0_i32 = arith.constant 0 : i32
    %c0_i32_0 = arith.constant 0 : i32
    return %arg0, %arg1, %c0_i32 : i32, i32, i32
  }
}

module attributes {stable_mosaic.version = 11 : i64} {
  func.func @_mlp_max_kernel(%arg0: i32, %arg1: i32, %arg2: memref<1x8x8x128xbf16, #tpu.memory_space<vmem>>, %arg3: memref<128x8xbf16, #tpu.memory_space<vmem>>, %arg4: memref<128x1xf32, #tpu.memory_space<vmem>>, %arg5: memref<128x128xbf16, #tpu.memory_space<vmem>>, %arg6: memref<128x1xf32, #tpu.memory_space<vmem>>, %arg7: memref<1x128x128xf32, #tpu.memory_space<vmem>>) attributes {dimension_semantics = [#tpu.dimension_semantics<parallel>, #tpu.dimension_semantics<parallel>], iteration_bounds = array<i64: 2, 1>, scalar_prefetch = 0 : i64, scratch_operands = 0 : i64, tpu.core_type = #tpu.core_type<tc>, window_params = [{transform_indices = @transform_0, window_bounds = array<i64: 1, 8, 8, 128>}, {pipeline_mode = #tpu.pipeline_mode<synchronous>, transform_indices = @transform_1, window_bounds = array<i64: 128, 8>}, {pipeline_mode = #tpu.pipeline_mode<synchronous>, transform_indices = @transform_2, window_bounds = array<i64: 128, 1>}, {pipeline_mode = #tpu.pipeline_mode<synchronous>, transform_indices = @transform_3, window_bounds = array<i64: 128, 128>}, {pipeline_mode = #tpu.pipeline_mode<synchronous>, transform_indices = @transform_4, window_bounds = array<i64: 128, 1>}, {transform_indices = @transform_5, window_bounds = array<i64: 1, 128, 128>}]} {
    %c0 = arith.constant 0 : index
    %c0_0 = arith.constant 0 : index
    %c0_1 = arith.constant 0 : index
    %c0_2 = arith.constant 0 : index
    %0 = vector.load %arg2[%c0, %c0_0, %c0_1, %c0_2] : memref<1x8x8x128xbf16, #tpu.memory_space<vmem>>, vector<1x1x8x128xbf16>
    %1 = vector.shape_cast %0 : vector<1x1x8x128xbf16> to vector<8x128xbf16>
    %c0_3 = arith.constant 0 : index
    %c0_4 = arith.constant 0 : index
    %2 = vector.load %arg3[%c0_3, %c0_4] : memref<128x8xbf16, #tpu.memory_space<vmem>>, vector<128x8xbf16>
    %c0_5 = arith.constant 0 : index
    %c0_6 = arith.constant 0 : index
    %3 = vector.load %arg4[%c0_5, %c0_6] : memref<128x1xf32, #tpu.memory_space<vmem>>, vector<128x1xf32>
    %cst = arith.constant dense<0.000000e+00> : vector<128x128xf32>
    %4 = tpu.matmul %2, %1, %cst {dimension_numbers = #tpu.dot_dimension_numbers<[1], [0], [0], [1], [0, 0, 1, 1], [], []>} : vector<128x8xbf16>, vector<8x128xbf16>, vector<128x128xf32> -> vector<128x128xf32>
    %5 = vector.broadcast %3 : vector<128x1xf32> to vector<128x128xf32>
    %6 = arith.addf %4, %5 : vector<128x128xf32>
    %cst_7 = arith.constant 0.000000e+00 : f32
    %7 = vector.broadcast %cst_7 : f32 to vector<128x128xf32>
    %8 = arith.maximumf %6, %7 : vector<128x128xf32>
    %9 = arith.truncf %8 : vector<128x128xf32> to vector<128x128xbf16>
    %c0_8 = arith.constant 0 : index
    %c0_9 = arith.constant 0 : index
    %10 = vector.load %arg5[%c0_8, %c0_9] : memref<128x128xbf16, #tpu.memory_space<vmem>>, vector<128x128xbf16>
    %c0_10 = arith.constant 0 : index
    %c0_11 = arith.constant 0 : index
    %11 = vector.load %arg6[%c0_10, %c0_11] : memref<128x1xf32, #tpu.memory_space<vmem>>, vector<128x1xf32>
    %cst_12 = arith.constant dense<0.000000e+00> : vector<128x128xf32>
    %12 = tpu.matmul %10, %9, %cst_12 {dimension_numbers = #tpu.dot_dimension_numbers<[1], [0], [0], [1], [0, 0, 1, 1], [], []>} : vector<128x128xbf16>, vector<128x128xbf16>, vector<128x128xf32> -> vector<128x128xf32>
    %13 = vector.broadcast %11 : vector<128x1xf32> to vector<128x128xf32>
    %14 = arith.addf %12, %13 : vector<128x128xf32>
    %cst_13 = arith.constant 0.000000e+00 : f32
    %15 = vector.broadcast %cst_13 : f32 to vector<128x128xf32>
    %16 = arith.maximumf %14, %15 : vector<128x128xf32>
    %c0_14 = arith.constant 0 : index
    %c1 = arith.constant 1 : index
    %c0_15 = arith.constant 0 : index
    %c0_16 = arith.constant 0 : index
    %17 = vector.load %arg2[%c0_14, %c1, %c0_15, %c0_16] : memref<1x8x8x128xbf16, #tpu.memory_space<vmem>>, vector<1x1x8x128xbf16>
    %18 = vector.shape_cast %17 : vector<1x1x8x128xbf16> to vector<8x128xbf16>
    %c0_17 = arith.constant 0 : index
    %c0_18 = arith.constant 0 : index
    %19 = vector.load %arg3[%c0_17, %c0_18] : memref<128x8xbf16, #tpu.memory_space<vmem>>, vector<128x8xbf16>
    %c0_19 = arith.constant 0 : index
    %c0_20 = arith.constant 0 : index
    %20 = vector.load %arg4[%c0_19, %c0_20] : memref<128x1xf32, #tpu.memory_space<vmem>>, vector<128x1xf32>
    %cst_21 = arith.constant dense<0.000000e+00> : vector<128x128xf32>
    %21 = tpu.matmul %19, %18, %cst_21 {dimension_numbers = #tpu.dot_dimension_numbers<[1], [0], [0], [1], [0, 0, 1, 1], [], []>} : vector<128x8xbf16>, vector<8x128xbf16>, vector<128x128xf32> -> vector<128x128xf32>
    %22 = vector.broadcast %20 : vector<128x1xf32> to vector<128x128xf32>
    %23 = arith.addf %21, %22 : vector<128x128xf32>
    %cst_22 = arith.constant 0.000000e+00 : f32
    %24 = vector.broadcast %cst_22 : f32 to vector<128x128xf32>
    %25 = arith.maximumf %23, %24 : vector<128x128xf32>
    %26 = arith.truncf %25 : vector<128x128xf32> to vector<128x128xbf16>
    %c0_23 = arith.constant 0 : index
    %c0_24 = arith.constant 0 : index
    %27 = vector.load %arg5[%c0_23, %c0_24] : memref<128x128xbf16, #tpu.memory_space<vmem>>, vector<128x128xbf16>
    %c0_25 = arith.constant 0 : index
    %c0_26 = arith.constant 0 : index
    %28 = vector.load %arg6[%c0_25, %c0_26] : memref<128x1xf32, #tpu.memory_space<vmem>>, vector<128x1xf32>
    %cst_27 = arith.constant dense<0.000000e+00> : vector<128x128xf32>
    %29 = tpu.matmul %27, %26, %cst_27 {dimension_numbers = #tpu.dot_dimension_numbers<[1], [0], [0], [1], [0, 0, 1, 1], [], []>} : vector<128x128xbf16>, vector<128x128xbf16>, vector<128x128xf32> -> vector<128x128xf32>
    %30 = vector.broadcast %28 : vector<128x1xf32> to vector<128x128xf32>
    %31 = arith.addf %29, %30 : vector<128x128xf32>
    %cst_28 = arith.constant 0.000000e+00 : f32
    %32 = vector.broadcast %cst_28 : f32 to vector<128x128xf32>
    %33 = arith.maximumf %31, %32 : vector<128x128xf32>
    %34 = arith.maximumf %16, %33 : vector<128x128xf32>
    %c0_29 = arith.constant 0 : index
    %c2 = arith.constant 2 : index
    %c0_30 = arith.constant 0 : index
    %c0_31 = arith.constant 0 : index
    %35 = vector.load %arg2[%c0_29, %c2, %c0_30, %c0_31] : memref<1x8x8x128xbf16, #tpu.memory_space<vmem>>, vector<1x1x8x128xbf16>
    %36 = vector.shape_cast %35 : vector<1x1x8x128xbf16> to vector<8x128xbf16>
    %c0_32 = arith.constant 0 : index
    %c0_33 = arith.constant 0 : index
    %37 = vector.load %arg3[%c0_32, %c0_33] : memref<128x8xbf16, #tpu.memory_space<vmem>>, vector<128x8xbf16>
    %c0_34 = arith.constant 0 : index
    %c0_35 = arith.constant 0 : index
    %38 = vector.load %arg4[%c0_34, %c0_35] : memref<128x1xf32, #tpu.memory_space<vmem>>, vector<128x1xf32>
    %cst_36 = arith.constant dense<0.000000e+00> : vector<128x128xf32>
    %39 = tpu.matmul %37, %36, %cst_36 {dimension_numbers = #tpu.dot_dimension_numbers<[1], [0], [0], [1], [0, 0, 1, 1], [], []>} : vector<128x8xbf16>, vector<8x128xbf16>, vector<128x128xf32> -> vector<128x128xf32>
    %40 = vector.broadcast %38 : vector<128x1xf32> to vector<128x128xf32>
    %41 = arith.addf %39, %40 : vector<128x128xf32>
    %cst_37 = arith.constant 0.000000e+00 : f32
    %42 = vector.broadcast %cst_37 : f32 to vector<128x128xf32>
    %43 = arith.maximumf %41, %42 : vector<128x128xf32>
    %44 = arith.truncf %43 : vector<128x128xf32> to vector<128x128xbf16>
    %c0_38 = arith.constant 0 : index
    %c0_39 = arith.constant 0 : index
    %45 = vector.load %arg5[%c0_38, %c0_39] : memref<128x128xbf16, #tpu.memory_space<vmem>>, vector<128x128xbf16>
    %c0_40 = arith.constant 0 : index
    %c0_41 = arith.constant 0 : index
    %46 = vector.load %arg6[%c0_40, %c0_41] : memref<128x1xf32, #tpu.memory_space<vmem>>, vector<128x1xf32>
    %cst_42 = arith.constant dense<0.000000e+00> : vector<128x128xf32>
    %47 = tpu.matmul %45, %44, %cst_42 {dimension_numbers = #tpu.dot_dimension_numbers<[1], [0], [0], [1], [0, 0, 1, 1], [], []>} : vector<128x128xbf16>, vector<128x128xbf16>, vector<128x128xf32> -> vector<128x128xf32>
    %48 = vector.broadcast %46 : vector<128x1xf32> to vector<128x128xf32>
    %49 = arith.addf %47, %48 : vector<128x128xf32>
    %cst_43 = arith.constant 0.000000e+00 : f32
    %50 = vector.broadcast %cst_43 : f32 to vector<128x128xf32>
    %51 = arith.maximumf %49, %50 : vector<128x128xf32>
    %52 = arith.maximumf %34, %51 : vector<128x128xf32>
    %c0_44 = arith.constant 0 : index
    %c3 = arith.constant 3 : index
    %c0_45 = arith.constant 0 : index
    %c0_46 = arith.constant 0 : index
    %53 = vector.load %arg2[%c0_44, %c3, %c0_45, %c0_46] : memref<1x8x8x128xbf16, #tpu.memory_space<vmem>>, vector<1x1x8x128xbf16>
    %54 = vector.shape_cast %53 : vector<1x1x8x128xbf16> to vector<8x128xbf16>
    %c0_47 = arith.constant 0 : index
    %c0_48 = arith.constant 0 : index
    %55 = vector.load %arg3[%c0_47, %c0_48] : memref<128x8xbf16, #tpu.memory_space<vmem>>, vector<128x8xbf16>
    %c0_49 = arith.constant 0 : index
    %c0_50 = arith.constant 0 : index
    %56 = vector.load %arg4[%c0_49, %c0_50] : memref<128x1xf32, #tpu.memory_space<vmem>>, vector<128x1xf32>
    %cst_51 = arith.constant dense<0.000000e+00> : vector<128x128xf32>
    %57 = tpu.matmul %55, %54, %cst_51 {dimension_numbers = #tpu.dot_dimension_numbers<[1], [0], [0], [1], [0, 0, 1, 1], [], []>} : vector<128x8xbf16>, vector<8x128xbf16>, vector<128x128xf32> -> vector<128x128xf32>
    %58 = vector.broadcast %56 : vector<128x1xf32> to vector<128x128xf32>
    %59 = arith.addf %57, %58 : vector<128x128xf32>
    %cst_52 = arith.constant 0.000000e+00 : f32
    %60 = vector.broadcast %cst_52 : f32 to vector<128x128xf32>
    %61 = arith.maximumf %59, %60 : vector<128x128xf32>
    %62 = arith.truncf %61 : vector<128x128xf32> to vector<128x128xbf16>
    %c0_53 = arith.constant 0 : index
    %c0_54 = arith.constant 0 : index
    %63 = vector.load %arg5[%c0_53, %c0_54] : memref<128x128xbf16, #tpu.memory_space<vmem>>, vector<128x128xbf16>
    %c0_55 = arith.constant 0 : index
    %c0_56 = arith.constant 0 : index
    %64 = vector.load %arg6[%c0_55, %c0_56] : memref<128x1xf32, #tpu.memory_space<vmem>>, vector<128x1xf32>
    %cst_57 = arith.constant dense<0.000000e+00> : vector<128x128xf32>
    %65 = tpu.matmul %63, %62, %cst_57 {dimension_numbers = #tpu.dot_dimension_numbers<[1], [0], [0], [1], [0, 0, 1, 1], [], []>} : vector<128x128xbf16>, vector<128x128xbf16>, vector<128x128xf32> -> vector<128x128xf32>
    %66 = vector.broadcast %64 : vector<128x1xf32> to vector<128x128xf32>
    %67 = arith.addf %65, %66 : vector<128x128xf32>
    %cst_58 = arith.constant 0.000000e+00 : f32
    %68 = vector.broadcast %cst_58 : f32 to vector<128x128xf32>
    %69 = arith.maximumf %67, %68 : vector<128x128xf32>
    %70 = arith.maximumf %52, %69 : vector<128x128xf32>
    %c0_59 = arith.constant 0 : index
    %c4 = arith.constant 4 : index
    %c0_60 = arith.constant 0 : index
    %c0_61 = arith.constant 0 : index
    %71 = vector.load %arg2[%c0_59, %c4, %c0_60, %c0_61] : memref<1x8x8x128xbf16, #tpu.memory_space<vmem>>, vector<1x1x8x128xbf16>
    %72 = vector.shape_cast %71 : vector<1x1x8x128xbf16> to vector<8x128xbf16>
    %c0_62 = arith.constant 0 : index
    %c0_63 = arith.constant 0 : index
    %73 = vector.load %arg3[%c0_62, %c0_63] : memref<128x8xbf16, #tpu.memory_space<vmem>>, vector<128x8xbf16>
    %c0_64 = arith.constant 0 : index
    %c0_65 = arith.constant 0 : index
    %74 = vector.load %arg4[%c0_64, %c0_65] : memref<128x1xf32, #tpu.memory_space<vmem>>, vector<128x1xf32>
    %cst_66 = arith.constant dense<0.000000e+00> : vector<128x128xf32>
    %75 = tpu.matmul %73, %72, %cst_66 {dimension_numbers = #tpu.dot_dimension_numbers<[1], [0], [0], [1], [0, 0, 1, 1], [], []>} : vector<128x8xbf16>, vector<8x128xbf16>, vector<128x128xf32> -> vector<128x128xf32>
    %76 = vector.broadcast %74 : vector<128x1xf32> to vector<128x128xf32>
    %77 = arith.addf %75, %76 : vector<128x128xf32>
    %cst_67 = arith.constant 0.000000e+00 : f32
    %78 = vector.broadcast %cst_67 : f32 to vector<128x128xf32>
    %79 = arith.maximumf %77, %78 : vector<128x128xf32>
    %80 = arith.truncf %79 : vector<128x128xf32> to vector<128x128xbf16>
    %c0_68 = arith.constant 0 : index
    %c0_69 = arith.constant 0 : index
    %81 = vector.load %arg5[%c0_68, %c0_69] : memref<128x128xbf16, #tpu.memory_space<vmem>>, vector<128x128xbf16>
    %c0_70 = arith.constant 0 : index
    %c0_71 = arith.constant 0 : index
    %82 = vector.load %arg6[%c0_70, %c0_71] : memref<128x1xf32, #tpu.memory_space<vmem>>, vector<128x1xf32>
    %cst_72 = arith.constant dense<0.000000e+00> : vector<128x128xf32>
    %83 = tpu.matmul %81, %80, %cst_72 {dimension_numbers = #tpu.dot_dimension_numbers<[1], [0], [0], [1], [0, 0, 1, 1], [], []>} : vector<128x128xbf16>, vector<128x128xbf16>, vector<128x128xf32> -> vector<128x128xf32>
    %84 = vector.broadcast %82 : vector<128x1xf32> to vector<128x128xf32>
    %85 = arith.addf %83, %84 : vector<128x128xf32>
    %cst_73 = arith.constant 0.000000e+00 : f32
    %86 = vector.broadcast %cst_73 : f32 to vector<128x128xf32>
    %87 = arith.maximumf %85, %86 : vector<128x128xf32>
    %88 = arith.maximumf %70, %87 : vector<128x128xf32>
    %c0_74 = arith.constant 0 : index
    %c5 = arith.constant 5 : index
    %c0_75 = arith.constant 0 : index
    %c0_76 = arith.constant 0 : index
    %89 = vector.load %arg2[%c0_74, %c5, %c0_75, %c0_76] : memref<1x8x8x128xbf16, #tpu.memory_space<vmem>>, vector<1x1x8x128xbf16>
    %90 = vector.shape_cast %89 : vector<1x1x8x128xbf16> to vector<8x128xbf16>
    %c0_77 = arith.constant 0 : index
    %c0_78 = arith.constant 0 : index
    %91 = vector.load %arg3[%c0_77, %c0_78] : memref<128x8xbf16, #tpu.memory_space<vmem>>, vector<128x8xbf16>
    %c0_79 = arith.constant 0 : index
    %c0_80 = arith.constant 0 : index
    %92 = vector.load %arg4[%c0_79, %c0_80] : memref<128x1xf32, #tpu.memory_space<vmem>>, vector<128x1xf32>
    %cst_81 = arith.constant dense<0.000000e+00> : vector<128x128xf32>
    %93 = tpu.matmul %91, %90, %cst_81 {dimension_numbers = #tpu.dot_dimension_numbers<[1], [0], [0], [1], [0, 0, 1, 1], [], []>} : vector<128x8xbf16>, vector<8x128xbf16>, vector<128x128xf32> -> vector<128x128xf32>
    %94 = vector.broadcast %92 : vector<128x1xf32> to vector<128x128xf32>
    %95 = arith.addf %93, %94 : vector<128x128xf32>
    %cst_82 = arith.constant 0.000000e+00 : f32
    %96 = vector.broadcast %cst_82 : f32 to vector<128x128xf32>
    %97 = arith.maximumf %95, %96 : vector<128x128xf32>
    %98 = arith.truncf %97 : vector<128x128xf32> to vector<128x128xbf16>
    %c0_83 = arith.constant 0 : index
    %c0_84 = arith.constant 0 : index
    %99 = vector.load %arg5[%c0_83, %c0_84] : memref<128x128xbf16, #tpu.memory_space<vmem>>, vector<128x128xbf16>
    %c0_85 = arith.constant 0 : index
    %c0_86 = arith.constant 0 : index
    %100 = vector.load %arg6[%c0_85, %c0_86] : memref<128x1xf32, #tpu.memory_space<vmem>>, vector<128x1xf32>
    %cst_87 = arith.constant dense<0.000000e+00> : vector<128x128xf32>
    %101 = tpu.matmul %99, %98, %cst_87 {dimension_numbers = #tpu.dot_dimension_numbers<[1], [0], [0], [1], [0, 0, 1, 1], [], []>} : vector<128x128xbf16>, vector<128x128xbf16>, vector<128x128xf32> -> vector<128x128xf32>
    %102 = vector.broadcast %100 : vector<128x1xf32> to vector<128x128xf32>
    %103 = arith.addf %101, %102 : vector<128x128xf32>
    %cst_88 = arith.constant 0.000000e+00 : f32
    %104 = vector.broadcast %cst_88 : f32 to vector<128x128xf32>
    %105 = arith.maximumf %103, %104 : vector<128x128xf32>
    %106 = arith.maximumf %88, %105 : vector<128x128xf32>
    %c0_89 = arith.constant 0 : index
    %c6 = arith.constant 6 : index
    %c0_90 = arith.constant 0 : index
    %c0_91 = arith.constant 0 : index
    %107 = vector.load %arg2[%c0_89, %c6, %c0_90, %c0_91] : memref<1x8x8x128xbf16, #tpu.memory_space<vmem>>, vector<1x1x8x128xbf16>
    %108 = vector.shape_cast %107 : vector<1x1x8x128xbf16> to vector<8x128xbf16>
    %c0_92 = arith.constant 0 : index
    %c0_93 = arith.constant 0 : index
    %109 = vector.load %arg3[%c0_92, %c0_93] : memref<128x8xbf16, #tpu.memory_space<vmem>>, vector<128x8xbf16>
    %c0_94 = arith.constant 0 : index
    %c0_95 = arith.constant 0 : index
    %110 = vector.load %arg4[%c0_94, %c0_95] : memref<128x1xf32, #tpu.memory_space<vmem>>, vector<128x1xf32>
    %cst_96 = arith.constant dense<0.000000e+00> : vector<128x128xf32>
    %111 = tpu.matmul %109, %108, %cst_96 {dimension_numbers = #tpu.dot_dimension_numbers<[1], [0], [0], [1], [0, 0, 1, 1], [], []>} : vector<128x8xbf16>, vector<8x128xbf16>, vector<128x128xf32> -> vector<128x128xf32>
    %112 = vector.broadcast %110 : vector<128x1xf32> to vector<128x128xf32>
    %113 = arith.addf %111, %112 : vector<128x128xf32>
    %cst_97 = arith.constant 0.000000e+00 : f32
    %114 = vector.broadcast %cst_97 : f32 to vector<128x128xf32>
    %115 = arith.maximumf %113, %114 : vector<128x128xf32>
    %116 = arith.truncf %115 : vector<128x128xf32> to vector<128x128xbf16>
    %c0_98 = arith.constant 0 : index
    %c0_99 = arith.constant 0 : index
    %117 = vector.load %arg5[%c0_98, %c0_99] : memref<128x128xbf16, #tpu.memory_space<vmem>>, vector<128x128xbf16>
    %c0_100 = arith.constant 0 : index
    %c0_101 = arith.constant 0 : index
    %118 = vector.load %arg6[%c0_100, %c0_101] : memref<128x1xf32, #tpu.memory_space<vmem>>, vector<128x1xf32>
    %cst_102 = arith.constant dense<0.000000e+00> : vector<128x128xf32>
    %119 = tpu.matmul %117, %116, %cst_102 {dimension_numbers = #tpu.dot_dimension_numbers<[1], [0], [0], [1], [0, 0, 1, 1], [], []>} : vector<128x128xbf16>, vector<128x128xbf16>, vector<128x128xf32> -> vector<128x128xf32>
    %120 = vector.broadcast %118 : vector<128x1xf32> to vector<128x128xf32>
    %121 = arith.addf %119, %120 : vector<128x128xf32>
    %cst_103 = arith.constant 0.000000e+00 : f32
    %122 = vector.broadcast %cst_103 : f32 to vector<128x128xf32>
    %123 = arith.maximumf %121, %122 : vector<128x128xf32>
    %124 = arith.maximumf %106, %123 : vector<128x128xf32>
    %c0_104 = arith.constant 0 : index
    %c7 = arith.constant 7 : index
    %c0_105 = arith.constant 0 : index
    %c0_106 = arith.constant 0 : index
    %125 = vector.load %arg2[%c0_104, %c7, %c0_105, %c0_106] : memref<1x8x8x128xbf16, #tpu.memory_space<vmem>>, vector<1x1x8x128xbf16>
    %126 = vector.shape_cast %125 : vector<1x1x8x128xbf16> to vector<8x128xbf16>
    %c0_107 = arith.constant 0 : index
    %c0_108 = arith.constant 0 : index
    %127 = vector.load %arg3[%c0_107, %c0_108] : memref<128x8xbf16, #tpu.memory_space<vmem>>, vector<128x8xbf16>
    %c0_109 = arith.constant 0 : index
    %c0_110 = arith.constant 0 : index
    %128 = vector.load %arg4[%c0_109, %c0_110] : memref<128x1xf32, #tpu.memory_space<vmem>>, vector<128x1xf32>
    %cst_111 = arith.constant dense<0.000000e+00> : vector<128x128xf32>
    %129 = tpu.matmul %127, %126, %cst_111 {dimension_numbers = #tpu.dot_dimension_numbers<[1], [0], [0], [1], [0, 0, 1, 1], [], []>} : vector<128x8xbf16>, vector<8x128xbf16>, vector<128x128xf32> -> vector<128x128xf32>
    %130 = vector.broadcast %128 : vector<128x1xf32> to vector<128x128xf32>
    %131 = arith.addf %129, %130 : vector<128x128xf32>
    %cst_112 = arith.constant 0.000000e+00 : f32
    %132 = vector.broadcast %cst_112 : f32 to vector<128x128xf32>
    %133 = arith.maximumf %131, %132 : vector<128x128xf32>
    %134 = arith.truncf %133 : vector<128x128xf32> to vector<128x128xbf16>
    %c0_113 = arith.constant 0 : index
    %c0_114 = arith.constant 0 : index
    %135 = vector.load %arg5[%c0_113, %c0_114] : memref<128x128xbf16, #tpu.memory_space<vmem>>, vector<128x128xbf16>
    %c0_115 = arith.constant 0 : index
    %c0_116 = arith.constant 0 : index
    %136 = vector.load %arg6[%c0_115, %c0_116] : memref<128x1xf32, #tpu.memory_space<vmem>>, vector<128x1xf32>
    %cst_117 = arith.constant dense<0.000000e+00> : vector<128x128xf32>
    %137 = tpu.matmul %135, %134, %cst_117 {dimension_numbers = #tpu.dot_dimension_numbers<[1], [0], [0], [1], [0, 0, 1, 1], [], []>} : vector<128x128xbf16>, vector<128x128xbf16>, vector<128x128xf32> -> vector<128x128xf32>
    %138 = vector.broadcast %136 : vector<128x1xf32> to vector<128x128xf32>
    %139 = arith.addf %137, %138 : vector<128x128xf32>
    %cst_118 = arith.constant 0.000000e+00 : f32
    %140 = vector.broadcast %cst_118 : f32 to vector<128x128xf32>
    %141 = arith.maximumf %139, %140 : vector<128x128xf32>
    %142 = arith.maximumf %124, %141 : vector<128x128xf32>
    %143 = tpu.transpose %142, [1, 0] : vector<128x128xf32> -> vector<128x128xf32>
    %c0_119 = arith.constant 0 : index
    %c0_120 = arith.constant 0 : index
    %c0_121 = arith.constant 0 : index
    %144 = vector.load %arg7[%c0_119, %c0_120, %c0_121] : memref<1x128x128xf32, #tpu.memory_space<vmem>>, vector<1x128x128xf32>
    %145 = vector.shape_cast %144 : vector<1x128x128xf32> to vector<128x128xf32>
    %146 = vector.shape_cast %143 : vector<128x128xf32> to vector<1x128x128xf32>
    tpu.vector_store %arg7[%c0_119, %c0_120, %c0_121], %146 {strides = array<i32>} : memref<1x128x128xf32, #tpu.memory_space<vmem>>, vector<1x128x128xf32>,
    return
  }
  func.func @transform_0(%arg0: i32, %arg1: i32) -> (i32, i32, i32, i32) {
    %c0_i32 = arith.constant 0 : i32
    %c0_i32_0 = arith.constant 0 : i32
    %c0_i32_1 = arith.constant 0 : i32
    return %arg0, %c0_i32, %c0_i32_0, %arg1 : i32, i32, i32, i32
  }
  func.func @transform_1(%arg0: i32, %arg1: i32) -> (i32, i32) {
    %c0_i32 = arith.constant 0 : i32
    %c0_i32_0 = arith.constant 0 : i32
    %c0_i32_1 = arith.constant 0 : i32
    return %c0_i32, %c0_i32_0 : i32, i32
  }
  func.func @transform_2(%arg0: i32, %arg1: i32) -> (i32, i32) {
    %c0_i32 = arith.constant 0 : i32
    %c0_i32_0 = arith.constant 0 : i32
    %c0_i32_1 = arith.constant 0 : i32
    return %c0_i32, %c0_i32_0 : i32, i32
  }
  func.func @transform_3(%arg0: i32, %arg1: i32) -> (i32, i32) {
    %c0_i32 = arith.constant 0 : i32
    %c0_i32_0 = arith.constant 0 : i32
    %c0_i32_1 = arith.constant 0 : i32
    return %c0_i32, %c0_i32_0 : i32, i32
  }
  func.func @transform_4(%arg0: i32, %arg1: i32) -> (i32, i32) {
    %c0_i32 = arith.constant 0 : i32
    %c0_i32_0 = arith.constant 0 : i32
    %c0_i32_1 = arith.constant 0 : i32
    return %c0_i32, %c0_i32_0 : i32, i32
  }
  func.func @transform_5(%arg0: i32, %arg1: i32) -> (i32, i32, i32) {
    %c0_i32 = arith.constant 0 : i32
    %c0_i32_0 = arith.constant 0 : i32
    return %arg0, %arg1, %c0_i32 : i32, i32, i32
  }
}

</mosaic_0001>

<bundles_post_ra>
// kernel: tpu_custom_call.1
= control target key start
LH: loop header
LB: loop body
LE: loop exit
PB: predicated region body
PF: predicated region fallthrough
CT: control target
= control target key end

     0   :  { %10 = vsyncpa [#allocation3], 0  ;;  %s4855_s0 = inlined_call_operand.vmem [shape: bf16[2,8,8,128], index: 0, kind: input, shape index: {}]   ;;  %s4856_s1 = inlined_call_operand.vmem [shape: bf16[128,8], index: 1, kind: input, shape index: {}]   ;;  %s4857_s2 = inlined_call_operand.vmem [shape: f32[128,1], index: 2, kind: input, shape index: {}]   ;;  %s4858_s3 = inlined_call_operand.vmem [shape: bf16[128,128], index: 3, kind: input, shape index: {}]   ;;  %s4859_s4 = inlined_call_operand.vmem [shape: f32[128,1], index: 4, kind: input, shape index: {}]   ;;  %s4860_s5 = inlined_call_operand.hbm [shape: f32[2,128,128], index: 5, kind: output, shape index: {}]  }
   0x1   :  { %12 = vsyncpa [#allocation3 + $0x1], 0  ;;  %s3678_s18 = smov 0   ;;  %s3680_s19 = smov 0  }
   0x2   :  { %s3682_s20 = smov 0   ;;  %s3684_s21 = smov 0  }
   0x3   :  { %s3686_s22 = smov 0   ;;  %s3688_s23 = smov 0  }
   0x4 LB: > { %s2754_s24 = sadd.s32 4294967295, %s3642_s23   ;;  %s2755_s25 = sadd.s32 4294967294, %s3642_s23   ;;  %s3642_s23 = sphi %s3688_s23, %s18_s23   ;;  %s3638_s22 = sphi %s3686_s22, %s4867_s22   ;;  %s3634_s21 = sphi %s3684_s21, %s4866_s21   ;;  %s3630_s20 = sphi %s3682_s20, %s4865_s20   ;;  %s3626_s19 = sphi %s3680_s19, %s4864_s19   ;;  %s3622_s18 = sphi %s3678_s18, %s4863_s18  }
   0x5   : > { %s30_s26 = sadd.s32 1, %s3638_s22  ;;  %s151_s27 = sadd.s32 1, %s3630_s20 }
   0x6   : > { %p32_p0 = scmp.ge.s32.totalorder %s30_s26, 2  ;;  %p161_p1 = scmp.ne.s32.totalorder %s3630_s20, %s3626_s19 }
   0x7   : > { %p162_p2 = scmp.eq.s32.totalorder %s2754_s24, 1  ;;  %p167_p3 = scmp.ne.s32.totalorder %s3626_s19, %s3622_s18 }
   0x8   : > { %s4869_s26 = smov (%p32_p0, %s30_s26), 0  ;;  %p168_p5 = scmp.eq.s32.totalorder %s2755_s25, 1 }
   0x9   : > { %p3718_p4 = por %p162_p2, %p161_p1  ;;  %s146_s29 = ssub.s32 %s3638_s22, %s4869_s26 }
   0xa   : > { %p2758_p6 = scmp.ge.s32.totalorder %s3642_s23, 1  ;;  %p149_p7 = scmp.eq.s32.totalorder %s146_s29, 0 }
   0xb   : > { %p3725_p8 = por %p168_p5, %p167_p3  ;;  %p209_p9 = scmp.lt.s32.totalorder %s3642_s23, 3 }
   0xc   : > { %s3731_s6 = scalar_select %p149_p7, %s3630_s20, %s151_s27  }
   0xd   : > { %p210_p10 = pnand %p2758_p6, %p209_p9 }
   0xe   : > { %p240_p11 = scmp.lt.s32.totalorder (!%p210_p10), %s3634_s21, 1  ;;  %v3737_v0 = vld [vmem:[%s4856_s1] sm:$0xff] (!%p210_p10)   ;;  %vm403_vm0 = vcmask (!%p210_p10), 64512   ;;  %vm428_vm1 = vcmask (!%p210_p10), 1043456   ;;  %v3644_v1 = vmov (!%p210_p10), 0   ;;  %v3754_v5 = vld [vmem:[%s4856_s1 + $0x8] sm:$0xff] (!%p210_p10)  }
   0xf   : > { %213 = sbr.rel (%p210_p10) target bundleno = 931 (0x3a3), region = 40  ;;  %3058 = vmatprep.mubr.msk.bf16.mxu0 (!%p210_p10), %vm403_vm0, %v3737_v0  ;;  %3538 = vset.pattern.permute.xlu0 (!%p210_p10), %v3644_v1  ;;  %v3759_v6 = vld [vmem:[%s4856_s1 + $0x10] sm:$0xff] (!%p210_p10)   ;;  %v267_v8 = vld [vmem:[%s4857_s2] sm:$0xff] (!%p210_p10)  ;;  %v268_v11 = vld [vmem:[%s4857_s2 + $0x8] sm:$0xff] (!%p210_p10)  ;;  %s2855_s11 = sshll.u32 (!%p210_p10), %s3634_s21, 11 }
  0x10   : > { %3539 = vset.pattern.permute.xlu1 (!%p210_p10), %v3644_v1  ;;  %285 = vperm.xlu0 (!%p210_p10), %3538, %v267_v8   ;;  %v269_v10 = vld [vmem:[%s4857_s2 + $0x10] sm:$0xff] (!%p210_p10)  ;;  %v270_v12 = vld [vmem:[%s4857_s2 + $0x18] sm:$0xff] (!%p210_p10)  ;;  %v271_v14 = vld [vmem:[%s4857_s2 + $0x20] sm:$0xff] (!%p210_p10)  ;;  %s4802_s16 = scalar_lea.hbm (!%p210_p10), %s4860_s5, %s2855_s11 }
  0x11   : > { %295 = vperm.xlu1 (!%p210_p10), %3539, %v269_v10   ;;  %v3784_v13 = vld [vmem:[%s4856_s1 + $0x18] sm:$0xff] (!%p210_p10)   ;;  %v3792_v15 = vld [vmem:[%s4856_s1 + $0x20] sm:$0xff] (!%p210_p10)   ;;  %v272_v16 = vld [vmem:[%s4857_s2 + $0x28] sm:$0xff] (!%p210_p10) }
  0x12   : > { %v273_v17 = vld [vmem:[%s4857_s2 + $0x30] sm:$0xff] (!%p210_p10)  ;;  %v274_v18 = vld [vmem:[%s4857_s2 + $0x38] sm:$0xff] (!%p210_p10)  ;;  %v3810_v19 = vld [vmem:[%s4856_s1 + $0x28] sm:$0xff] (!%p210_p10)  }
  0x13   : > { %v275_v20 = vld [vmem:[%s4857_s2 + $0x40] sm:$0xff] (!%p210_p10)  ;;  %v3818_v21 = vld [vmem:[%s4856_s1 + $0x30] sm:$0xff] (!%p210_p10)   ;;  %v276_v22 = vld [vmem:[%s4857_s2 + $0x48] sm:$0xff] (!%p210_p10) }
  0x14   : > { %290 = vperm.xlu0 (!%p210_p10), %3538, %v268_v11   ;;  %v277_v23 = vld [vmem:[%s4857_s2 + $0x50] sm:$0xff] (!%p210_p10)  ;;  %v278_v24 = vld [vmem:[%s4857_s2 + $0x58] sm:$0xff] (!%p210_p10)  ;;  %v279_v26 = vld [vmem:[%s4857_s2 + $0x60] sm:$0xff] (!%p210_p10) }
  0x15   : > { %300 = vperm.xlu1 (!%p210_p10), %3539, %v270_v12   ;;  %v3836_v25 = vld [vmem:[%s4856_s1 + $0x38] sm:$0xff] (!%p210_p10)   ;;  %v280_v27 = vld [vmem:[%s4857_s2 + $0x68] sm:$0xff] (!%p210_p10)  ;;  %v281_v28 = vld [vmem:[%s4857_s2 + $0x70] sm:$0xff] (!%p210_p10) }
  0x16   : > { %s241_s9 = scalar_select %p240_p11, %s3634_s21, 1  ;;  %v282_v29 = vld [vmem:[%s4857_s2 + $0x78] sm:$0xff]  ;;  %v569_v30 = vld [vmem:[%s4859_s4] sm:$0xff]  ;;  %v570_v31 = vld [vmem:[%s4859_s4 + $0x8] sm:$0xff] }
  0x17   : > { %v571_v34 = vld [vmem:[%s4859_s4 + $0x10] sm:$0xff]  ;;  %v572_v35 = vld [vmem:[%s4859_s4 + $0x18] sm:$0xff]  ;;  %v573_v36 = vld [vmem:[%s4859_s4 + $0x20] sm:$0xff]  ;;  %s3645_s21 = smov [#allocation2]  }
  0x18   : > { %s2854_s10 = sshll.u32 %s241_s9, 5  ;;  %305 = vperm.xlu0 %3538, %v271_v14   ;;  %v574_v37 = vld [vmem:[%s4859_s4 + $0x28] sm:$0xff]  ;;  %v575_v38 = vld [vmem:[%s4859_s4 + $0x30] sm:$0xff]  ;;  %v576_v39 = vld [vmem:[%s4859_s4 + $0x38] sm:$0xff]  ;;  %s3568_s25 = sshll.u32 %s3645_s21, 4  ;;  %s3569_s25 = int_to_ptr.vmem [resolvable:$false] %s3568_s25 }
  0x19   : > { %s3745_s13 = scalar_lea.vmem %s4855_s0, %s2854_s10  ;;  %310 = vperm.xlu1 %3539, %v272_v16   ;;  %v577_v40 = vld [vmem:[%s4859_s4 + $0x40] sm:$0xff]  ;;  %v578_v41 = vld [vmem:[%s4859_s4 + $0x48] sm:$0xff]  ;;  %v579_v42 = vld [vmem:[%s4859_s4 + $0x50] sm:$0xff]  ;;  %s3570_s27 = scalar_lea.vmem %s3569_s25, 4096 }
  0x1a   : > { %v250_v2 = vld [vmem:[%s3745_s13] sm:$0xf]  ;;  %v2786_v3 = vld [vmem:[%s3745_s13 + $0x4] sm:$0xf]  ;;  %v2795_v9 = vld [vmem:[%s3745_s13 + $0x8] sm:$0xf] }
  0x1b   : > { %3472 = vmatprep.subr.msk.bf16.mxu0 %vm428_vm1, %v250_v2  ;;  %v430_v4 = vsel %vm428_vm1, %v250_v2, 0  ;;  %v829_v7 = vsel %vm428_vm1, %v2786_v3, 0  ;;  %v1084_v32 = vsel %vm428_vm1, %v2795_v9, 0  ;;  %v2804_v33 = vld [vmem:[%s3745_s13 + $0xc] sm:$0xf]  ;;  %v580_v43 = vld [vmem:[%s4859_s4 + $0x58] sm:$0xff] }
  0x1c   : > { %3057 = vmatpush3.bf16.msra.mxu0 %v430_v4  ;;  %315 = vperm.xlu0 %3538, %v273_v17   ;;  %v581_v44 = vld [vmem:[%s4859_s4 + $0x60] sm:$0xff]  ;;  %v582_v45 = vld [vmem:[%s4859_s4 + $0x68] sm:$0xff]  ;;  %v583_v46 = vld [vmem:[%s4859_s4 + $0x70] sm:$0xff]  ;;  %v1339_v48 = vsel %vm428_vm1, %v2804_v33, 0 }
  0x1d   : > { %3473 = vmatprep.subr.msk.bf16.mxu0 %vm428_vm1, %v2786_v3  ;;  %320 = vperm.xlu1 %3539, %v274_v18   ;;  %v584_v47 = vld [vmem:[%s4859_s4 + $0x78] sm:$0xff]  ;;  %v2813_v49 = vld [vmem:[%s3745_s13 + $0x10] sm:$0xf]  ;;  %v2822_v51 = vld [vmem:[%s3745_s13 + $0x14] sm:$0xf] }
  0x1e   : > { %v1594_v50 = vsel %vm428_vm1, %v2813_v49, 0  ;;  %v3962_v52 = vld [vmem:[%s4858_s3] sm:$0xff]   ;;  %v1849_v53 = vsel %vm428_vm1, %v2822_v51, 0  ;;  %v2831_v54 = vld [vmem:[%s3745_s13 + $0x18] sm:$0xf] }
  0x1f   : > { %3059 = vmatmul.mubr.msk.bf16.vlgmr.msra.gmra.mrb[0].mxu0 %vm403_vm0, %v3754_v5  ;;  %3090 = vmatprep.mubr.bf16.mxu1 %v3962_v52  ;;  %v2104_v55 = vsel %vm428_vm1, %v2831_v54, 0  ;;  %v2840_v56 = vld [vmem:[%s3745_s13 + $0x1c] sm:$0xf]  ;;  %s237_s13 = sand.u32 1, %s3626_s19  }
  0x20   : > { %3107 = vmatpush3.bf16.msra.mxu0 %v829_v7  ;;  %3062 = vmatprep.mubr.msk.bf16.mxu0 %vm403_vm0, %v3759_v6  ;;  %v2359_v57 = vsel %vm428_vm1, %v2840_v56, 0  ;;  %s2759_s9 = sshll.u32 %s237_s13, 7  ;;  %s4809_s17 = scalar_lea.sflag [#allocation3], %s237_s13 }
  0x21   : > { %3474 = vmatprep.subr.msk.bf16.mxu0 %vm428_vm1, %v2795_v9  ;;  %325 = vperm.xlu0 %3538, %v275_v20   ;;  %s4780_s10 = scalar_lea.vmem [#allocation2], %s2759_s9 }
  0x22   : > { %330 = vperm.xlu1 %3539, %v276_v22   ;;  %s2675_s12 = sshll.u32 %s4780_s10, 4  ;;  %s4804_s12 = int_to_ptr.vmem [resolvable:$true] %s2675_s12 }
  0x23   : > { %s3564_s24 = scalar_lea.vmem %s4804_s12, 2048  ;;  %p3571_p1 = scmp.lt.s32.totalorder %s4804_s12, %s3569_s25 }
  0x24   : > { %p3565_p12 = scmp.ne.s32.totalorder %s4804_s12, %s3564_s24  ;;  %p3572_p2 = scmp.lt.s32.totalorder %s3570_s27, %s3564_s24 }
  0x25   : > { %335 = vperm.xlu0 %3538, %v277_v23  }
  0x26   : > { %340 = vperm.xlu1 %3539, %v278_v24   ;;  %p3566_p13 = pnand %p3565_p12, %p3718_p4  ;;  %p3573_p3 = por %p3572_p2, %p3571_p1 }
  0x27   : > { %3063 = vmatmul.mubr.msk.bf16.gmra.mrb[4].mxu0 %vm403_vm0, %v3784_v13 }
  0x28   : > { %3066 = vmatprep.mubr.msk.bf16.mxu0 %vm403_vm0, %v3792_v15  ;;  %p3567_p0 = pneg %p3566_p13 }
  0x29   : > { %345 = vperm.xlu0 %3538, %v279_v26  }
  0x2a   : > { %350 = vperm.xlu1 %3539, %v280_v27   ;;  %p3574_p5 = pnand %p3573_p3, %p3567_p0 }
  0x2d   : > { %355 = vperm.xlu0 %3538, %v281_v28  }
  0x2e   : > { %360 = vperm.xlu1 %3539, %v282_v29  }
  0x2f   : > { %3067 = vmatmul.mubr.msk.bf16.gmra.mrb[8].mxu0 %vm403_vm0, %v3810_v19 }
  0x30   : > { %3070 = vmatprep.mubr.msk.bf16.mxu0 %vm403_vm0, %v3818_v21 }
  0x31   : > { %587 = vperm.xlu0 %3538, %v569_v30  }
  0x32   : > { %592 = vperm.xlu1 %3539, %v570_v31  }
  0x35   : > { %597 = vperm.xlu0 %3538, %v571_v34  }
  0x36   : > { %602 = vperm.xlu1 %3539, %v572_v35  }
  0x37   : > { %3071 = vmatmul.mubr.msk.bf16.gmra.mrb[12].mxu0 %vm403_vm0, %v3836_v25 }
  0x38   : > { %3108 = vmatprep.mubr.msk.bf16.mxu0 %vm403_vm0, %v3737_v0 }
  0x39   : > { %607 = vperm.xlu0 %3538, %v573_v36  }
  0x3a   : > { %612 = vperm.xlu1 %3539, %v574_v37  }
  0x3d   : > { %617 = vperm.xlu0 %3538, %v575_v38  }
  0x3e   : > { %622 = vperm.xlu1 %3539, %v576_v39  }
  0x3f   : > { %3109 = vmatmul.mubr.msk.bf16.vlgmr.msra.gmra.mrb[16].mxu0 %vm403_vm0, %v3754_v5 }
  0x40   : > { %3157 = vmatpush3.bf16.msra.mxu0 %v1084_v32  ;;  %3112 = vmatprep.mubr.msk.bf16.mxu0 %vm403_vm0, %v3759_v6 }
  0x41   : > { %3475 = vmatprep.subr.msk.bf16.mxu0 %vm428_vm1, %v2804_v33  ;;  %627 = vperm.xlu0 %3538, %v577_v40  }
  0x42   : > { %632 = vperm.xlu1 %3539, %v578_v41  }
  0x45   : > { %637 = vperm.xlu0 %3538, %v579_v42  }
  0x46   : > { %642 = vperm.xlu1 %3539, %v580_v43  }
  0x47   : > { %3113 = vmatmul.mubr.msk.bf16.gmra.mrb[20].mxu0 %vm403_vm0, %v3784_v13 }
  0x48   : > { %3116 = vmatprep.mubr.msk.bf16.mxu0 %vm403_vm0, %v3792_v15 }
  0x49   : > { %647 = vperm.xlu0 %3538, %v581_v44  }
  0x4a   : > { %652 = vperm.xlu1 %3539, %v582_v45  }
  0x4d   : > { %657 = vperm.xlu0 %3538, %v583_v46  }
  0x4e   : > { %662 = vperm.xlu1 %3539, %v584_v47  }
  0x4f   : > { %3117 = vmatmul.mubr.msk.bf16.gmra.mrb[24].mxu0 %vm403_vm0, %v3810_v19 }
  0x50   : > { %3120 = vmatprep.mubr.msk.bf16.mxu0 %vm403_vm0, %v3818_v21 }
  0x57   : > { %3121 = vmatmul.mubr.msk.bf16.gmra.mrb[28].mxu0 %vm403_vm0, %v3836_v25 }
  0x58   : > { %3158 = vmatprep.mubr.msk.bf16.mxu0 %vm403_vm0, %v3737_v0 }
  0x5f   : > { %3159 = vmatmul.mubr.msk.bf16.vlgmr.msra.gmra.mrb[32].mxu0 %vm403_vm0, %v3754_v5 }
  0x60   : > { %3207 = vmatpush3.bf16.msra.mxu0 %v1339_v48  ;;  %3162 = vmatprep.mubr.msk.bf16.mxu0 %vm403_vm0, %v3759_v6 }
  0x61   : > { %3476 = vmatprep.subr.msk.bf16.mxu0 %vm428_vm1, %v2813_v49 }
  0x67   : > { %3163 = vmatmul.mubr.msk.bf16.gmra.mrb[36].mxu0 %vm403_vm0, %v3784_v13 }
  0x68   : > { %3166 = vmatprep.mubr.msk.bf16.mxu0 %vm403_vm0, %v3792_v15 }
  0x6f   : > { %3167 = vmatmul.mubr.msk.bf16.gmra.mrb[40].mxu0 %vm403_vm0, %v3810_v19 }
  0x70   : > { %3170 = vmatprep.mubr.msk.bf16.mxu0 %vm403_vm0, %v3818_v21 }
  0x77   : > { %3171 = vmatmul.mubr.msk.bf16.gmra.mrb[44].mxu0 %vm403_vm0, %v3836_v25 }
  0x78   : > { %3208 = vmatprep.mubr.msk.bf16.mxu0 %vm403_vm0, %v3737_v0 }
  0x7f   : > { %3209 = vmatmul.mubr.msk.bf16.vlgmr.msra.gmra.mrb[48].mxu0 %vm403_vm0, %v3754_v5 }
  0x80   : > { %3257 = vmatpush3.bf16.msra.mxu0 %v1594_v50  ;;  %3212 = vmatprep.mubr.msk.bf16.mxu0 %vm403_vm0, %v3759_v6 }
  0x81   : > { %3477 = vmatprep.subr.msk.bf16.mxu0 %vm428_vm1, %v2822_v51 }
  0x87   : > { %3213 = vmatmul.mubr.msk.bf16.gmra.mrb[52].mxu0 %vm403_vm0, %v3784_v13 }
  0x88   : > { %3216 = vmatprep.mubr.msk.bf16.mxu0 %vm403_vm0, %v3792_v15 }
  0x8f   : > { %3217 = vmatmul.mubr.msk.bf16.gmra.mrb[56].mxu0 %vm403_vm0, %v3810_v19  ;;  %v4006_v58 = vpop.permute.xlu0 %285 }
  0x90   : > { %3220 = vmatprep.mubr.msk.bf16.mxu0 %vm403_vm0, %v3818_v21  ;;  %v4010_v59 = vpop.permute.xlu1 %295 }
  0x93   : > { %v4012_v60 = vpop.permute.xlu0 %290 }
  0x94   : > { %v4016_v61 = vpop.permute.xlu1 %300 }
  0x97   : > { %3221 = vmatmul.mubr.msk.bf16.gmra.mrb[60].mxu0 %vm403_vm0, %v3836_v25  ;;  %v4020_v62 = vpop.permute.xlu0 %305 }
  0x98   : > { %3258 = vmatprep.mubr.msk.bf16.mxu0 %vm403_vm0, %v3737_v0  ;;  %v4022_v63 = vpop.permute.xlu1 %310 }
  0x9b   : > { %v4028_v1 = vpop.permute.xlu0 %315 }
  0x9c   : > { %v4031_v7 = vpop.permute.xlu1 %320 }
  0x9f   : > { %3259 = vmatmul.mubr.msk.bf16.vlgmr.msra.gmra.mrb[64].mxu0 %vm403_vm0, %v3754_v5 }
  0xa0   : > { %3307 = vmatpush3.bf16.msra.mxu0 %v1849_v53  ;;  %3262 = vmatprep.mubr.msk.bf16.mxu0 %vm403_vm0, %v3759_v6  ;;  %v4038_v17 = vpop.permute.xlu0 %325 }
  0xa1   : > { %3478 = vmatprep.subr.msk.bf16.mxu0 %vm428_vm1, %v2831_v54  ;;  %v4042_v23 = vpop.permute.xlu1 %330 }
  0xa4   : > { %v4047_v33 = vpop.permute.xlu0 %335 }
  0xa5   : > { %v4052_v36 = vpop.permute.xlu1 %340 }
  0xa7   : > { %3263 = vmatmul.mubr.msk.bf16.gmra.mrb[68].mxu0 %vm403_vm0, %v3784_v13 }
  0xa8   : > { %3266 = vmatprep.mubr.msk.bf16.mxu0 %vm403_vm0, %v3792_v15  ;;  %v4057_v44 = vpop.permute.xlu0 %345 }
  0xa9   : > { %v4061_v48 = vpop.permute.xlu1 %350 }
  0xaf   : > { %3267 = vmatmul.mubr.msk.bf16.gmra.mrb[72].mxu0 %vm403_vm0, %v3810_v19 }
  0xb0   : > { %3270 = vmatprep.mubr.msk.bf16.mxu0 %vm403_vm0, %v3818_v21 }
  0xb7   : > { %3271 = vmatmul.mubr.msk.bf16.gmra.mrb[76].mxu0 %vm403_vm0, %v3836_v25 }
  0xb8   : > { %3308 = vmatprep.mubr.msk.bf16.mxu0 %vm403_vm0, %v3737_v0 }
  0xbf   : > { %3309 = vmatmul.mubr.msk.bf16.vlgmr.msra.gmra.mrb[80].mxu0 %vm403_vm0, %v3754_v5 }
  0xc0   : > { %3357 = vmatpush3.bf16.msra.mxu0 %v2104_v55  ;;  %3312 = vmatprep.mubr.msk.bf16.mxu0 %vm403_vm0, %v3759_v6  ;;  %v4068_v55 = vpop.permute.xlu0 %355 }
  0xc1   : > { %3479 = vmatprep.subr.msk.bf16.mxu0 %vm428_vm1, %v2840_v56 }
  0xc7   : > { %3313 = vmatmul.mubr.msk.bf16.gmra.mrb[84].mxu0 %vm403_vm0, %v3784_v13 }
  0xc8   : > { %3316 = vmatprep.mubr.msk.bf16.mxu0 %vm403_vm0, %v3792_v15 }
  0xcf   : > { %3317 = vmatmul.mubr.msk.bf16.gmra.mrb[88].mxu0 %vm403_vm0, %v3810_v19 }
  0xd0   : > { %3320 = vmatprep.mubr.msk.bf16.mxu0 %vm403_vm0, %v3818_v21 }
  0xd7   : > { %3321 = vmatmul.mubr.msk.bf16.gmra.mrb[92].mxu0 %vm403_vm0, %v3836_v25 }
  0xd8   : > { %3358 = vmatprep.mubr.msk.bf16.mxu0 %vm403_vm0, %v3737_v0 }
  0xdf   : > { %3359 = vmatmul.mubr.msk.bf16.vlgmr.msra.gmra.mrb[96].mxu0 %vm403_vm0, %v3754_v5 }
  0xe0   : > { %3407 = vmatpush3.bf16.msra.mxu0 %v2359_v57  ;;  %3362 = vmatprep.mubr.msk.bf16.mxu0 %vm403_vm0, %v3759_v6 }
  0xe7   : > { %3363 = vmatmul.mubr.msk.bf16.gmra.mrb[100].mxu0 %vm403_vm0, %v3784_v13 }
  0xe8   : > { %3366 = vmatprep.mubr.msk.bf16.mxu0 %vm403_vm0, %v3792_v15 }
  0xef   : > { %3367 = vmatmul.mubr.msk.bf16.gmra.mrb[104].mxu0 %vm403_vm0, %v3810_v19 }
  0xf0   : > { %3370 = vmatprep.mubr.msk.bf16.mxu0 %vm403_vm0, %v3818_v21 }
  0xf2   : > { %v3060_v2 = vpop.f32.mrb[0].mxu0 }
  0xf3   : > { %v475_v3 = vadd.f32 %v3060_v2, %v4010_v59  ;;  %v466_v4 = vpop.f32.mrb[1].mxu0 }
  0xf4   : > { %v467_v8 = vadd.f32 %v466_v4, %v4006_v58  ;;  %v3061_v9 = vpop.f32.mrb[2].mxu0  ;;  %v4071_v4 = vpop.permute.xlu1 %360 }
  0xf5   : > { %v478_v10 = vadd.f32 %v3061_v9, %v4016_v61  ;;  %v469_v11 = vpop.f32.mrb[3].mxu0  ;;  %v531_v14 = vmax.f32 %v475_v3, 0.0 }
  0xf6   : > { %v470_v12 = vadd.f32 %v469_v11, %v4012_v60  ;;  %v529_v18 = vmax.f32 %v467_v8, 0.0 }
  0xf7   : > { %v532_v16 = vmax.f32 %v478_v10, 0.0  ;;  %3371 = vmatmul.mubr.msk.bf16.gmra.mrb[108].mxu0 %vm403_vm0, %v3836_v25 }
  0xf8   : > { %v530_v20 = vmax.f32 %v470_v12, 0.0  ;;  %3408 = vmatprep.mubr.msk.bf16.mxu0 %vm403_vm0, %v3737_v0 }
  0xf9   : > { %v546_v22 = vpack.c.bf16 %v532_v16, %v531_v14 }
  0xfa   : > { %v3064_v24 = vpop.f32.mrb[4].mxu0  ;;  %v545_v26 = vpack.c.bf16 %v530_v20, %v529_v18 }
  0xfb   : > { %v491_v27 = vadd.f32 %v3064_v24, %v4028_v1  ;;  %v482_v28 = vpop.f32.mrb[5].mxu0 }
  0xfc   : > { %v483_v29 = vadd.f32 %v482_v28, %v4020_v62  ;;  %v3065_v30 = vpop.f32.mrb[6].mxu0  ;;  %3074 = vmatprep.subr.bf16.mxu1 %v545_v26 }
  0xfd   : > { %v494_v31 = vadd.f32 %v3065_v30, %v4031_v7  ;;  %v485_v32 = vpop.f32.mrb[7].mxu0  ;;  %3075 = vmatpush3.bf16.msra.mxu1 %v545_v26  ;;  %v535_v34 = vmax.f32 %v491_v27, 0.0 }
  0xfe   : > { %v486_v0 = vadd.f32 %v485_v32, %v4022_v63  ;;  %3076 = vmatprep.subr.bf16.mxu1 %v546_v22  ;;  %v533_v37 = vmax.f32 %v483_v29, 0.0 }
  0xff   : > { %v536_v35 = vmax.f32 %v494_v31, 0.0  ;;  %3409 = vmatmul.mubr.msk.bf16.vlgmr.msra.gmra.mrb[112].mxu0 %vm403_vm0, %v3754_v5 }
 0x100   : > { %v534_v38 = vmax.f32 %v486_v0, 0.0  ;;  %3412 = vmatprep.mubr.msk.bf16.mxu0 %vm403_vm0, %v3759_v6 }
 0x101   : > { %v548_v39 = vpack.c.bf16 %v536_v35, %v535_v34  ;;  %3077 = vmatpush3.bf16.msra.mxu1 %v546_v22  ;;  %v4089_v34 = vld [vmem:[%s4858_s3 + $0x8] sm:$0xff]  }
 0x102   : > { %v547_v40 = vpack.c.bf16 %v534_v38, %v533_v37  ;;  %v3068_v41 = vpop.f32.mrb[8].mxu0  ;;  %v4095_v37 = vld [vmem:[%s4858_s3 + $0x10] sm:$0xff]  }
 0x103   : > { %v507_v42 = vadd.f32 %v3068_v41, %v4047_v33  ;;  %v498_v43 = vpop.f32.mrb[9].mxu0 }
 0x104   : > { %v499_v45 = vadd.f32 %v498_v43, %v4038_v17  ;;  %v3069_v46 = vpop.f32.mrb[10].mxu0  ;;  %3078 = vmatprep.subr.bf16.mxu1 %v547_v40 }
 0x105   : > { %v510_v5 = vadd.f32 %v3069_v46, %v4052_v36  ;;  %v501_v47 = vpop.f32.mrb[11].mxu0  ;;  %3079 = vmatpush3.bf16.msra.mxu1 %v547_v40  ;;  %v539_v49 = vmax.f32 %v507_v42, 0.0 }
 0x106   : > { %v502_v6 = vadd.f32 %v501_v47, %v4042_v23  ;;  %3080 = vmatprep.subr.bf16.mxu1 %v548_v39  ;;  %v537_v51 = vmax.f32 %v499_v45, 0.0 }
 0x107   : > { %v540_v50 = vmax.f32 %v510_v5, 0.0  ;;  %3413 = vmatmul.mubr.msk.bf16.gmra.mrb[116].mxu0 %vm403_vm0, %v3784_v13 }
 0x108   : > { %v538_v53 = vmax.f32 %v502_v6, 0.0  ;;  %3416 = vmatprep.mubr.msk.bf16.mxu0 %vm403_vm0, %v3792_v15 }
 0x109   : > { %v550_v54 = vpack.c.bf16 %v540_v50, %v539_v49  ;;  %3081 = vmatpush3.bf16.msra.mxu1 %v548_v39  ;;  %v4106_v50 = vld [vmem:[%s4858_s3 + $0x18] sm:$0xff]  }
 0x10a   : > { %v549_v56 = vpack.c.bf16 %v538_v53, %v537_v51  ;;  %v3072_v57 = vpop.f32.mrb[12].mxu0  ;;  %v4111_v53 = vld [vmem:[%s4858_s3 + $0x20] sm:$0xff]  }
 0x10b   : > { %v523_v2 = vadd.f32 %v3072_v57, %v4068_v55  ;;  %v514_v3 = vpop.f32.mrb[13].mxu0 }
 0x10c   : > { %v515_v8 = vadd.f32 %v514_v3, %v4057_v44  ;;  %v3073_v9 = vpop.f32.mrb[14].mxu0  ;;  %3082 = vmatprep.subr.bf16.mxu1 %v549_v56 }
 0x10d   : > { %v526_v13 = vadd.f32 %v3073_v9, %v4071_v4  ;;  %v517_v10 = vpop.f32.mrb[15].mxu0  ;;  %3083 = vmatpush3.bf16.msra.mxu1 %v549_v56  ;;  %v543_v11 = vmax.f32 %v523_v2, 0.0 }
 0x10e   : > { %v518_v15 = vadd.f32 %v517_v10, %v4061_v48  ;;  %3084 = vmatprep.subr.bf16.mxu1 %v550_v54  ;;  %v541_v14 = vmax.f32 %v515_v8, 0.0 }
 0x10f   : > { %v544_v12 = vmax.f32 %v526_v13, 0.0  ;;  %3417 = vmatmul.mubr.msk.bf16.gmra.mrb[120].mxu0 %vm403_vm0, %v3810_v19 }
 0x110   : > { %v542_v16 = vmax.f32 %v518_v15, 0.0  ;;  %3420 = vmatprep.mubr.msk.bf16.mxu0 %vm403_vm0, %v3818_v21 }
 0x111   : > { %v552_v18 = vpack.c.bf16 %v544_v12, %v543_v11  ;;  %3085 = vmatpush3.bf16.msra.mxu1 %v550_v54 }
 0x112   : > { %v551_v20 = vpack.c.bf16 %v542_v16, %v541_v14  ;;  %v3110_v22 = vpop.f32.mrb[16].mxu0  ;;  %v4122_v16 = vld [vmem:[%s4858_s3 + $0x28] sm:$0xff]  }
 0x113   : > { %v874_v24 = vadd.f32 %v3110_v22, %v4010_v59  ;;  %v865_v26 = vpop.f32.mrb[17].mxu0 }
 0x114   : > { %v866_v27 = vadd.f32 %v865_v26, %v4006_v58  ;;  %3086 = vmatprep.subr.bf16.mxu1 %v551_v20  ;;  %v3111_v28 = vpop.f32.mrb[18].mxu0 }
 0x115   : > { %v877_v29 = vadd.f32 %v3111_v28, %v4016_v61  ;;  %3087 = vmatpush3.bf16.msra.mxu1 %v551_v20  ;;  %v868_v19 = vpop.f32.mrb[19].mxu0  ;;  %v930_v31 = vmax.f32 %v874_v24, 0.0  ;;  %v4127_v20 = vld [vmem:[%s4858_s3 + $0x30] sm:$0xff]  }
 0x116   : > { %v869_v30 = vadd.f32 %v868_v19, %v4012_v60  ;;  %3088 = vmatprep.subr.bf16.mxu1 %v552_v18  ;;  %v928_v32 = vmax.f32 %v866_v27, 0.0 }
 0x117   : > { %v931_v21 = vmax.f32 %v877_v29, 0.0  ;;  %3421 = vmatmul.mubr.msk.bf16.gmra.mrb[124].mxu0 %vm403_vm0, %v3836_v25 }
 0x118   : > { %v929_v0 = vmax.f32 %v869_v30, 0.0  ;;  %3440 = vmatprep.mubr.bf16.mxu0 %v3962_v52 }
 0x119   : > { %v945_v35 = vpack.c.bf16 %v931_v21, %v930_v31  ;;  %3089 = vmatpush3.bf16.msra.mxu1 %v552_v18 }
 0x11a   : > { %v944_v38 = vpack.c.bf16 %v929_v0, %v928_v32  ;;  %v3114_v39 = vpop.f32.mrb[20].mxu0 }
 0x11b   : > { %v890_v25 = vadd.f32 %v3114_v39, %v4028_v1  ;;  %v881_v40 = vpop.f32.mrb[21].mxu0 }
 0x11c   : > { %v882_v41 = vadd.f32 %v881_v40, %v4020_v62  ;;  %3091 = vmatmul.mubr.bf16.vlgmr.msra.gmra.mrb[0].mxu1 %v4089_v34  ;;  %v3115_v42 = vpop.f32.mrb[22].mxu0  ;;  %3124 = vmatprep.subr.bf16.mxu1 %v944_v38 }
 0x11d   : > { %v893_v43 = vadd.f32 %v3115_v42, %v4031_v7  ;;  %v884_v45 = vpop.f32.mrb[23].mxu0  ;;  %3125 = vmatpush3.bf16.msra.mxu1 %v944_v38  ;;  %3094 = vmatprep.mubr.bf16.mxu1 %v4095_v37  ;;  %v934_v5 = vmax.f32 %v890_v25, 0.0  ;;  %v4138_v38 = vld [vmem:[%s4858_s3 + $0x38] sm:$0xff]  }
 0x11e   : > { %v885_v46 = vadd.f32 %v884_v45, %v4022_v63  ;;  %3126 = vmatprep.subr.bf16.mxu1 %v945_v35  ;;  %v932_v6 = vmax.f32 %v882_v41, 0.0 }
 0x11f   : > { %v935_v47 = vmax.f32 %v893_v43, 0.0 }
 0x120   : > { %v933_v49 = vmax.f32 %v885_v46, 0.0 }
 0x121   : > { %v947_v51 = vpack.c.bf16 %v935_v47, %v934_v5  ;;  %3127 = vmatpush3.bf16.msra.mxu1 %v945_v35 }
 0x122   : > { %v946_v54 = vpack.c.bf16 %v933_v49, %v932_v6  ;;  %v3118_v56 = vpop.f32.mrb[24].mxu0 }
 0x123   : > { %v906_v57 = vadd.f32 %v3118_v56, %v4047_v33  ;;  %v897_v2 = vpop.f32.mrb[25].mxu0 }
 0x124   : > { %v898_v3 = vadd.f32 %v897_v2, %v4038_v17  ;;  %3095 = vmatmul.mubr.bf16.gmra.mrb[4].mxu1 %v4106_v50  ;;  %v3119_v8 = vpop.f32.mrb[26].mxu0  ;;  %3128 = vmatprep.subr.bf16.mxu1 %v946_v54 }
 0x125   : > { %v909_v9 = vadd.f32 %v3119_v8, %v4052_v36  ;;  %v900_v13 = vpop.f32.mrb[27].mxu0  ;;  %3129 = vmatpush3.bf16.msra.mxu1 %v946_v54  ;;  %3098 = vmatprep.mubr.bf16.mxu1 %v4111_v53  ;;  %v938_v15 = vmax.f32 %v906_v57, 0.0 }
 0x126   : > { %v901_v10 = vadd.f32 %v900_v13, %v4042_v23  ;;  %3130 = vmatprep.subr.bf16.mxu1 %v947_v51  ;;  %v936_v12 = vmax.f32 %v898_v3, 0.0 }
 0x127   : > { %v939_v11 = vmax.f32 %v909_v9, 0.0 }
 0x128   : > { %v937_v14 = vmax.f32 %v901_v10, 0.0 }
 0x129   : > { %v949_v18 = vpack.c.bf16 %v939_v11, %v938_v15  ;;  %3131 = vmatpush3.bf16.msra.mxu1 %v947_v51 }
 0x12a   : > { %v948_v22 = vpack.c.bf16 %v937_v14, %v936_v12  ;;  %v3122_v24 = vpop.f32.mrb[28].mxu0 }
 0x12b   : > { %v922_v26 = vadd.f32 %v3122_v24, %v4068_v55  ;;  %v913_v27 = vpop.f32.mrb[29].mxu0 }
 0x12c   : > { %v914_v28 = vadd.f32 %v913_v27, %v4057_v44  ;;  %3099 = vmatmul.mubr.bf16.gmra.mrb[8].mxu1 %v4122_v16  ;;  %v3123_v29 = vpop.f32.mrb[30].mxu0  ;;  %3132 = vmatprep.subr.bf16.mxu1 %v948_v22 }
 0x12d   : > { %v925_v19 = vadd.f32 %v3123_v29, %v4071_v4  ;;  %v916_v30 = vpop.f32.mrb[31].mxu0  ;;  %3133 = vmatpush3.bf16.msra.mxu1 %v948_v22  ;;  %3102 = vmatprep.mubr.bf16.mxu1 %v4127_v20  ;;  %v942_v21 = vmax.f32 %v922_v26, 0.0 }
 0x12e   : > { %v917_v31 = vadd.f32 %v916_v30, %v4061_v48  ;;  %3134 = vmatprep.subr.bf16.mxu1 %v949_v18  ;;  %v940_v0 = vmax.f32 %v914_v28, 0.0 }
 0x12f   : > { %v943_v32 = vmax.f32 %v925_v19, 0.0 }
 0x130   : > { %v941_v35 = vmax.f32 %v917_v31, 0.0 }
 0x131   : > { %v951_v39 = vpack.c.bf16 %v943_v32, %v942_v21  ;;  %3135 = vmatpush3.bf16.msra.mxu1 %v949_v18 }
 0x132   : > { %v950_v25 = vpack.c.bf16 %v941_v35, %v940_v0  ;;  %v3160_v40 = vpop.f32.mrb[32].mxu0 }
 0x133   : > { %v1129_v41 = vadd.f32 %v3160_v40, %v4010_v59  ;;  %v1120_v42 = vpop.f32.mrb[33].mxu0 }
 0x134   : > { %v1121_v43 = vadd.f32 %v1120_v42, %v4006_v58  ;;  %3103 = vmatmul.mubr.bf16.gmra.mrb[12].mxu1 %v4138_v38  ;;  %3136 = vmatprep.subr.bf16.mxu1 %v950_v25  ;;  %v3161_v45 = vpop.f32.mrb[34].mxu0 }
 0x135   : > { %v1132_v46 = vadd.f32 %v3161_v45, %v4016_v61  ;;  %3137 = vmatpush3.bf16.msra.mxu1 %v950_v25  ;;  %v1123_v5 = vpop.f32.mrb[35].mxu0  ;;  %3140 = vmatprep.mubr.bf16.mxu1 %v3962_v52  ;;  %v1185_v6 = vmax.f32 %v1129_v41, 0.0 }
 0x136   : > { %v1124_v47 = vadd.f32 %v1123_v5, %v4012_v60  ;;  %3138 = vmatprep.subr.bf16.mxu1 %v951_v39  ;;  %v1183_v51 = vmax.f32 %v1121_v43, 0.0 }
 0x137   : > { %v1186_v49 = vmax.f32 %v1132_v46, 0.0 }
 0x138   : > { %v1184_v54 = vmax.f32 %v1124_v47, 0.0 }
 0x139   : > { %v1200_v56 = vpack.c.bf16 %v1186_v49, %v1185_v6  ;;  %3139 = vmatpush3.bf16.msra.mxu1 %v951_v39 }
 0x13a   : > { %v1199_v57 = vpack.c.bf16 %v1184_v54, %v1183_v51  ;;  %v3164_v2 = vpop.f32.mrb[36].mxu0 }
 0x13b   : > { %v1145_v3 = vadd.f32 %v3164_v2, %v4028_v1  ;;  %v1136_v8 = vpop.f32.mrb[37].mxu0 }
 0x13c   : > { %v1137_v9 = vadd.f32 %v1136_v8, %v4020_v62  ;;  %3141 = vmatmul.mubr.bf16.vlgmr.msra.gmra.mrb[16].mxu1 %v4089_v34  ;;  %v3165_v13 = vpop.f32.mrb[38].mxu0  ;;  %3174 = vmatprep.subr.bf16.mxu1 %v1199_v57 }
 0x13d   : > { %v1148_v10 = vadd.f32 %v3165_v13, %v4031_v7  ;;  %v1139_v15 = vpop.f32.mrb[39].mxu0  ;;  %3175 = vmatpush3.bf16.msra.mxu1 %v1199_v57  ;;  %3144 = vmatprep.mubr.bf16.mxu1 %v4095_v37  ;;  %v1189_v12 = vmax.f32 %v1145_v3, 0.0 }
 0x13e   : > { %v1140_v11 = vadd.f32 %v1139_v15, %v4022_v63  ;;  %3176 = vmatprep.subr.bf16.mxu1 %v1200_v56  ;;  %v1187_v18 = vmax.f32 %v1137_v9, 0.0 }
 0x13f   : > { %v1190_v14 = vmax.f32 %v1148_v10, 0.0 }
 0x140   : > { %v1188_v22 = vmax.f32 %v1140_v11, 0.0 }
 0x141   : > { %v1202_v24 = vpack.c.bf16 %v1190_v14, %v1189_v12  ;;  %3177 = vmatpush3.bf16.msra.mxu1 %v1200_v56 }
 0x142   : > { %v1201_v26 = vpack.c.bf16 %v1188_v22, %v1187_v18  ;;  %v3168_v27 = vpop.f32.mrb[40].mxu0 }
 0x143   : > { %v1161_v28 = vadd.f32 %v3168_v27, %v4047_v33  ;;  %v1152_v29 = vpop.f32.mrb[41].mxu0 }
 0x144   : > { %v1153_v19 = vadd.f32 %v1152_v29, %v4038_v17  ;;  %3145 = vmatmul.mubr.bf16.gmra.mrb[20].mxu1 %v4106_v50  ;;  %v3169_v30 = vpop.f32.mrb[42].mxu0  ;;  %3178 = vmatprep.subr.bf16.mxu1 %v1201_v26 }
 0x145   : > { %v1164_v31 = vadd.f32 %v3169_v30, %v4052_v36  ;;  %v1155_v21 = vpop.f32.mrb[43].mxu0  ;;  %3179 = vmatpush3.bf16.msra.mxu1 %v1201_v26  ;;  %3148 = vmatprep.mubr.bf16.mxu1 %v4111_v53  ;;  %v1193_v0 = vmax.f32 %v1161_v28, 0.0 }
 0x146   : > { %v1156_v32 = vadd.f32 %v1155_v21, %v4042_v23  ;;  %3180 = vmatprep.subr.bf16.mxu1 %v1202_v24  ;;  %v1191_v39 = vmax.f32 %v1153_v19, 0.0 }
 0x147   : > { %v1194_v35 = vmax.f32 %v1164_v31, 0.0 }
 0x148   : > { %v1192_v25 = vmax.f32 %v1156_v32, 0.0 }
 0x149   : > { %v1204_v40 = vpack.c.bf16 %v1194_v35, %v1193_v0  ;;  %3181 = vmatpush3.bf16.msra.mxu1 %v1202_v24 }
 0x14a   : > { %v1203_v41 = vpack.c.bf16 %v1192_v25, %v1191_v39  ;;  %v3172_v42 = vpop.f32.mrb[44].mxu0 }
 0x14b   : > { %v1177_v43 = vadd.f32 %v3172_v42, %v4068_v55  ;;  %v1168_v45 = vpop.f32.mrb[45].mxu0 }
 0x14c   : > { %v1169_v46 = vadd.f32 %v1168_v45, %v4057_v44  ;;  %3149 = vmatmul.mubr.bf16.gmra.mrb[24].mxu1 %v4122_v16  ;;  %v3173_v5 = vpop.f32.mrb[46].mxu0  ;;  %3182 = vmatprep.subr.bf16.mxu1 %v1203_v41 }
 0x14d   : > { %v1180_v47 = vadd.f32 %v3173_v5, %v4071_v4  ;;  %v1171_v6 = vpop.f32.mrb[47].mxu0  ;;  %3183 = vmatpush3.bf16.msra.mxu1 %v1203_v41  ;;  %3152 = vmatprep.mubr.bf16.mxu1 %v4127_v20  ;;  %v1197_v51 = vmax.f32 %v1177_v43, 0.0 }
 0x14e   : > { %v1172_v49 = vadd.f32 %v1171_v6, %v4061_v48  ;;  %3184 = vmatprep.subr.bf16.mxu1 %v1204_v40  ;;  %v1195_v56 = vmax.f32 %v1169_v46, 0.0 }
 0x14f   : > { %v1198_v54 = vmax.f32 %v1180_v47, 0.0 }
 0x150   : > { %v1196_v57 = vmax.f32 %v1172_v49, 0.0 }
 0x151   : > { %v1206_v2 = vpack.c.bf16 %v1198_v54, %v1197_v51  ;;  %3185 = vmatpush3.bf16.msra.mxu1 %v1204_v40 }
 0x152   : > { %v1205_v3 = vpack.c.bf16 %v1196_v57, %v1195_v56  ;;  %v3210_v8 = vpop.f32.mrb[48].mxu0 }
 0x153   : > { %v1384_v9 = vadd.f32 %v3210_v8, %v4010_v59  ;;  %v1375_v13 = vpop.f32.mrb[49].mxu0 }
 0x154   : > { %v1376_v10 = vadd.f32 %v1375_v13, %v4006_v58  ;;  %3153 = vmatmul.mubr.bf16.gmra.mrb[28].mxu1 %v4138_v38  ;;  %3186 = vmatprep.subr.bf16.mxu1 %v1205_v3  ;;  %v3211_v15 = vpop.f32.mrb[50].mxu0 }
 0x155   : > { %v1387_v11 = vadd.f32 %v3211_v15, %v4016_v61  ;;  %3187 = vmatpush3.bf16.msra.mxu1 %v1205_v3  ;;  %v1378_v12 = vpop.f32.mrb[51].mxu0  ;;  %3190 = vmatprep.mubr.bf16.mxu1 %v3962_v52  ;;  %v1440_v18 = vmax.f32 %v1384_v9, 0.0 }
 0x156   : > { %v1379_v14 = vadd.f32 %v1378_v12, %v4012_v60  ;;  %3188 = vmatprep.subr.bf16.mxu1 %v1206_v2  ;;  %v1438_v24 = vmax.f32 %v1376_v10, 0.0 }
 0x157   : > { %v1441_v22 = vmax.f32 %v1387_v11, 0.0 }
 0x158   : > { %v1439_v26 = vmax.f32 %v1379_v14, 0.0 }
 0x159   : > { %v1455_v27 = vpack.c.bf16 %v1441_v22, %v1440_v18  ;;  %3189 = vmatpush3.bf16.msra.mxu1 %v1206_v2 }
 0x15a   : > { %v1454_v28 = vpack.c.bf16 %v1439_v26, %v1438_v24  ;;  %v3214_v29 = vpop.f32.mrb[52].mxu0 }
 0x15b   : > { %v1400_v19 = vadd.f32 %v3214_v29, %v4028_v1  ;;  %v1391_v30 = vpop.f32.mrb[53].mxu0 }
 0x15c   : > { %v1392_v31 = vadd.f32 %v1391_v30, %v4020_v62  ;;  %3191 = vmatmul.mubr.bf16.vlgmr.msra.gmra.mrb[32].mxu1 %v4089_v34  ;;  %v3215_v21 = vpop.f32.mrb[54].mxu0  ;;  %3224 = vmatprep.subr.bf16.mxu1 %v1454_v28 }
 0x15d   : > { %v1403_v32 = vadd.f32 %v3215_v21, %v4031_v7  ;;  %v1394_v0 = vpop.f32.mrb[55].mxu0  ;;  %3225 = vmatpush3.bf16.msra.mxu1 %v1454_v28  ;;  %3194 = vmatprep.mubr.bf16.mxu1 %v4095_v37  ;;  %v1444_v39 = vmax.f32 %v1400_v19, 0.0 }
 0x15e   : > { %v1395_v35 = vadd.f32 %v1394_v0, %v4022_v63  ;;  %3226 = vmatprep.subr.bf16.mxu1 %v1455_v27  ;;  %v1442_v40 = vmax.f32 %v1392_v31, 0.0 }
 0x15f   : > { %v1445_v25 = vmax.f32 %v1403_v32, 0.0 }
 0x160   : > { %v1443_v41 = vmax.f32 %v1395_v35, 0.0 }
 0x161   : > { %v1457_v42 = vpack.c.bf16 %v1445_v25, %v1444_v39  ;;  %3227 = vmatpush3.bf16.msra.mxu1 %v1455_v27 }
 0x162   : > { %v1456_v43 = vpack.c.bf16 %v1443_v41, %v1442_v40  ;;  %v3218_v45 = vpop.f32.mrb[56].mxu0 }
 0x163   : > { %v1416_v46 = vadd.f32 %v3218_v45, %v4047_v33  ;;  %v1407_v5 = vpop.f32.mrb[57].mxu0 }
 0x164   : > { %v1408_v47 = vadd.f32 %v1407_v5, %v4038_v17  ;;  %3195 = vmatmul.mubr.bf16.gmra.mrb[36].mxu1 %v4106_v50  ;;  %v3219_v6 = vpop.f32.mrb[58].mxu0  ;;  %3228 = vmatprep.subr.bf16.mxu1 %v1456_v43 }
 0x165   : > { %v1419_v49 = vadd.f32 %v3219_v6, %v4052_v36  ;;  %v1410_v51 = vpop.f32.mrb[59].mxu0  ;;  %3229 = vmatpush3.bf16.msra.mxu1 %v1456_v43  ;;  %3198 = vmatprep.mubr.bf16.mxu1 %v4111_v53  ;;  %v1448_v56 = vmax.f32 %v1416_v46, 0.0 }
 0x166   : > { %v1411_v54 = vadd.f32 %v1410_v51, %v4042_v23  ;;  %3230 = vmatprep.subr.bf16.mxu1 %v1457_v42  ;;  %v1446_v2 = vmax.f32 %v1408_v47, 0.0 }
 0x167   : > { %v1449_v57 = vmax.f32 %v1419_v49, 0.0 }
 0x168   : > { %v1447_v3 = vmax.f32 %v1411_v54, 0.0 }
 0x169   : > { %v1459_v8 = vpack.c.bf16 %v1449_v57, %v1448_v56  ;;  %3231 = vmatpush3.bf16.msra.mxu1 %v1457_v42 }
 0x16a   : > { %v1458_v9 = vpack.c.bf16 %v1447_v3, %v1446_v2  ;;  %v3222_v13 = vpop.f32.mrb[60].mxu0 }
 0x16b   : > { %v1432_v10 = vadd.f32 %v3222_v13, %v4068_v55  ;;  %v1423_v15 = vpop.f32.mrb[61].mxu0 }
 0x16c   : > { %v1424_v11 = vadd.f32 %v1423_v15, %v4057_v44  ;;  %3199 = vmatmul.mubr.bf16.gmra.mrb[40].mxu1 %v4122_v16  ;;  %v3223_v12 = vpop.f32.mrb[62].mxu0  ;;  %3232 = vmatprep.subr.bf16.mxu1 %v1458_v9 }
 0x16d   : > { %v1435_v14 = vadd.f32 %v3223_v12, %v4071_v4  ;;  %v1426_v18 = vpop.f32.mrb[63].mxu0  ;;  %3233 = vmatpush3.bf16.msra.mxu1 %v1458_v9  ;;  %3202 = vmatprep.mubr.bf16.mxu1 %v4127_v20  ;;  %v1452_v24 = vmax.f32 %v1432_v10, 0.0 }
 0x16e   : > { %v1427_v22 = vadd.f32 %v1426_v18, %v4061_v48  ;;  %3234 = vmatprep.subr.bf16.mxu1 %v1459_v8  ;;  %v1450_v27 = vmax.f32 %v1424_v11, 0.0 }
 0x16f   : > { %v1453_v26 = vmax.f32 %v1435_v14, 0.0 }
 0x170   : > { %v1451_v28 = vmax.f32 %v1427_v22, 0.0 }
 0x171   : > { %v1461_v29 = vpack.c.bf16 %v1453_v26, %v1452_v24  ;;  %3235 = vmatpush3.bf16.msra.mxu1 %v1459_v8 }
 0x172   : > { %v1460_v19 = vpack.c.bf16 %v1451_v28, %v1450_v27  ;;  %v3260_v30 = vpop.f32.mrb[64].mxu0 }
 0x173   : > { %v1639_v31 = vadd.f32 %v3260_v30, %v4010_v59  ;;  %v1630_v21 = vpop.f32.mrb[65].mxu0 }
 0x174   : > { %v1631_v32 = vadd.f32 %v1630_v21, %v4006_v58  ;;  %3203 = vmatmul.mubr.bf16.gmra.mrb[44].mxu1 %v4138_v38  ;;  %3236 = vmatprep.subr.bf16.mxu1 %v1460_v19  ;;  %v3261_v0 = vpop.f32.mrb[66].mxu0 }
 0x175   : > { %v1642_v35 = vadd.f32 %v3261_v0, %v4016_v61  ;;  %3237 = vmatpush3.bf16.msra.mxu1 %v1460_v19  ;;  %v1633_v39 = vpop.f32.mrb[67].mxu0  ;;  %3240 = vmatprep.mubr.bf16.mxu1 %v3962_v52  ;;  %v1695_v40 = vmax.f32 %v1639_v31, 0.0 }
 0x176   : > { %v1634_v25 = vadd.f32 %v1633_v39, %v4012_v60  ;;  %3238 = vmatprep.subr.bf16.mxu1 %v1461_v29  ;;  %v1693_v42 = vmax.f32 %v1631_v32, 0.0 }
 0x177   : > { %v1696_v41 = vmax.f32 %v1642_v35, 0.0 }
 0x178   : > { %v1694_v43 = vmax.f32 %v1634_v25, 0.0 }
 0x179   : > { %v1710_v45 = vpack.c.bf16 %v1696_v41, %v1695_v40  ;;  %3239 = vmatpush3.bf16.msra.mxu1 %v1461_v29 }
 0x17a   : > { %v1709_v46 = vpack.c.bf16 %v1694_v43, %v1693_v42  ;;  %v3264_v5 = vpop.f32.mrb[68].mxu0 }
 0x17b   : > { %v1655_v47 = vadd.f32 %v3264_v5, %v4028_v1  ;;  %v1646_v6 = vpop.f32.mrb[69].mxu0 }
 0x17c   : > { %v1647_v49 = vadd.f32 %v1646_v6, %v4020_v62  ;;  %3241 = vmatmul.mubr.bf16.vlgmr.msra.gmra.mrb[48].mxu1 %v4089_v34  ;;  %v3265_v51 = vpop.f32.mrb[70].mxu0  ;;  %3274 = vmatprep.subr.bf16.mxu1 %v1709_v46 }
 0x17d   : > { %v1658_v54 = vadd.f32 %v3265_v51, %v4031_v7  ;;  %v1649_v56 = vpop.f32.mrb[71].mxu0  ;;  %3275 = vmatpush3.bf16.msra.mxu1 %v1709_v46  ;;  %3244 = vmatprep.mubr.bf16.mxu1 %v4095_v37  ;;  %v1699_v2 = vmax.f32 %v1655_v47, 0.0 }
 0x17e   : > { %v1650_v57 = vadd.f32 %v1649_v56, %v4022_v63  ;;  %3276 = vmatprep.subr.bf16.mxu1 %v1710_v45  ;;  %v1697_v8 = vmax.f32 %v1647_v49, 0.0 }
 0x17f   : > { %v1700_v3 = vmax.f32 %v1658_v54, 0.0 }
 0x180   : > { %v1698_v9 = vmax.f32 %v1650_v57, 0.0 }
 0x181   : > { %v1712_v13 = vpack.c.bf16 %v1700_v3, %v1699_v2  ;;  %3277 = vmatpush3.bf16.msra.mxu1 %v1710_v45 }
 0x182   : > { %v1711_v10 = vpack.c.bf16 %v1698_v9, %v1697_v8  ;;  %v3268_v15 = vpop.f32.mrb[72].mxu0 }
 0x183   : > { %v1671_v11 = vadd.f32 %v3268_v15, %v4047_v33  ;;  %v1662_v12 = vpop.f32.mrb[73].mxu0 }
 0x184   : > { %v1663_v14 = vadd.f32 %v1662_v12, %v4038_v17  ;;  %3245 = vmatmul.mubr.bf16.gmra.mrb[52].mxu1 %v4106_v50  ;;  %v3269_v18 = vpop.f32.mrb[74].mxu0  ;;  %3278 = vmatprep.subr.bf16.mxu1 %v1711_v10 }
 0x185   : > { %v1674_v22 = vadd.f32 %v3269_v18, %v4052_v36  ;;  %v1665_v24 = vpop.f32.mrb[75].mxu0  ;;  %3279 = vmatpush3.bf16.msra.mxu1 %v1711_v10  ;;  %3248 = vmatprep.mubr.bf16.mxu1 %v4111_v53  ;;  %v1703_v27 = vmax.f32 %v1671_v11, 0.0 }
 0x186   : > { %v1666_v26 = vadd.f32 %v1665_v24, %v4042_v23  ;;  %3280 = vmatprep.subr.bf16.mxu1 %v1712_v13  ;;  %v1701_v29 = vmax.f32 %v1663_v14, 0.0 }
 0x187   : > { %v1704_v28 = vmax.f32 %v1674_v22, 0.0 }
 0x188   : > { %v1702_v19 = vmax.f32 %v1666_v26, 0.0 }
 0x189   : > { %v1714_v30 = vpack.c.bf16 %v1704_v28, %v1703_v27  ;;  %3281 = vmatpush3.bf16.msra.mxu1 %v1712_v13 }
 0x18a   : > { %v1713_v31 = vpack.c.bf16 %v1702_v19, %v1701_v29  ;;  %v3272_v21 = vpop.f32.mrb[76].mxu0 }
 0x18b   : > { %v1687_v32 = vadd.f32 %v3272_v21, %v4068_v55  ;;  %v1678_v0 = vpop.f32.mrb[77].mxu0 }
 0x18c   : > { %v1679_v35 = vadd.f32 %v1678_v0, %v4057_v44  ;;  %3249 = vmatmul.mubr.bf16.gmra.mrb[56].mxu1 %v4122_v16  ;;  %v3273_v39 = vpop.f32.mrb[78].mxu0  ;;  %3282 = vmatprep.subr.bf16.mxu1 %v1713_v31 }
 0x18d   : > { %v1690_v25 = vadd.f32 %v3273_v39, %v4071_v4  ;;  %v1681_v40 = vpop.f32.mrb[79].mxu0  ;;  %3283 = vmatpush3.bf16.msra.mxu1 %v1713_v31  ;;  %3252 = vmatprep.mubr.bf16.mxu1 %v4127_v20  ;;  %v1707_v42 = vmax.f32 %v1687_v32, 0.0 }
 0x18e   : > { %v1682_v41 = vadd.f32 %v1681_v40, %v4061_v48  ;;  %3284 = vmatprep.subr.bf16.mxu1 %v1714_v30  ;;  %v1705_v45 = vmax.f32 %v1679_v35, 0.0 }
 0x18f   : > { %v1708_v43 = vmax.f32 %v1690_v25, 0.0 }
 0x190   : > { %v1706_v46 = vmax.f32 %v1682_v41, 0.0 }
 0x191   : > { %v1716_v5 = vpack.c.bf16 %v1708_v43, %v1707_v42  ;;  %3285 = vmatpush3.bf16.msra.mxu1 %v1714_v30 }
 0x192   : > { %v1715_v47 = vpack.c.bf16 %v1706_v46, %v1705_v45  ;;  %v3310_v6 = vpop.f32.mrb[80].mxu0 }
 0x193   : > { %v1894_v49 = vadd.f32 %v3310_v6, %v4010_v59  ;;  %v1885_v51 = vpop.f32.mrb[81].mxu0 }
 0x194   : > { %v1886_v54 = vadd.f32 %v1885_v51, %v4006_v58  ;;  %3253 = vmatmul.mubr.bf16.gmra.mrb[60].mxu1 %v4138_v38  ;;  %3286 = vmatprep.subr.bf16.mxu1 %v1715_v47  ;;  %v3311_v56 = vpop.f32.mrb[82].mxu0 }
 0x195   : > { %v1897_v57 = vadd.f32 %v3311_v56, %v4016_v61  ;;  %3287 = vmatpush3.bf16.msra.mxu1 %v1715_v47  ;;  %v1888_v2 = vpop.f32.mrb[83].mxu0  ;;  %3290 = vmatprep.mubr.bf16.mxu1 %v3962_v52  ;;  %v1950_v8 = vmax.f32 %v1894_v49, 0.0 }
 0x196   : > { %v1889_v3 = vadd.f32 %v1888_v2, %v4012_v60  ;;  %3288 = vmatprep.subr.bf16.mxu1 %v1716_v5  ;;  %v1948_v13 = vmax.f32 %v1886_v54, 0.0 }
 0x197   : > { %v1951_v9 = vmax.f32 %v1897_v57, 0.0 }
 0x198   : > { %v1949_v10 = vmax.f32 %v1889_v3, 0.0 }
 0x199   : > { %v1965_v15 = vpack.c.bf16 %v1951_v9, %v1950_v8  ;;  %3289 = vmatpush3.bf16.msra.mxu1 %v1716_v5 }
 0x19a   : > { %v1964_v11 = vpack.c.bf16 %v1949_v10, %v1948_v13  ;;  %v3314_v12 = vpop.f32.mrb[84].mxu0 }
 0x19b   : > { %v1910_v14 = vadd.f32 %v3314_v12, %v4028_v1  ;;  %v1901_v18 = vpop.f32.mrb[85].mxu0 }
 0x19c   : > { %v1902_v22 = vadd.f32 %v1901_v18, %v4020_v62  ;;  %3291 = vmatmul.mubr.bf16.vlgmr.msra.gmra.mrb[64].mxu1 %v4089_v34  ;;  %v3315_v24 = vpop.f32.mrb[86].mxu0  ;;  %3324 = vmatprep.subr.bf16.mxu1 %v1964_v11 }
 0x19d   : > { %v1913_v52 = vadd.f32 %v3315_v24, %v4031_v7  ;;  %v1904_v26 = vpop.f32.mrb[87].mxu0  ;;  %3325 = vmatpush3.bf16.msra.mxu1 %v1964_v11  ;;  %3294 = vmatprep.mubr.bf16.mxu1 %v4095_v37  ;;  %v1954_v28 = vmax.f32 %v1910_v14, 0.0 }
 0x19e   : > { %v1905_v27 = vadd.f32 %v1904_v26, %v4022_v63  ;;  %3326 = vmatprep.subr.bf16.mxu1 %v1965_v15  ;;  %v1952_v19 = vmax.f32 %v1902_v22, 0.0 }
 0x19f   : > { %v1955_v29 = vmax.f32 %v1913_v52, 0.0 }
 0x1a0   : > { %v1953_v30 = vmax.f32 %v1905_v27, 0.0 }
 0x1a1   : > { %v1967_v31 = vpack.c.bf16 %v1955_v29, %v1954_v28  ;;  %3327 = vmatpush3.bf16.msra.mxu1 %v1965_v15  ;;  %v4243_v28 = vld [vmem:[%s4858_s3] sm:$0xff]  }
 0x1a2   : > { %v1966_v21 = vpack.c.bf16 %v1953_v30, %v1952_v19  ;;  %v3318_v32 = vpop.f32.mrb[88].mxu0 }
 0x1a3   : > { %v1926_v0 = vadd.f32 %v3318_v32, %v4047_v33  ;;  %v1917_v35 = vpop.f32.mrb[89].mxu0 }
 0x1a4   : > { %v1918_v39 = vadd.f32 %v1917_v35, %v4038_v17  ;;  %3295 = vmatmul.mubr.bf16.gmra.mrb[68].mxu1 %v4106_v50  ;;  %v3319_v25 = vpop.f32.mrb[90].mxu0  ;;  %3328 = vmatprep.subr.bf16.mxu1 %v1966_v21 }
 0x1a5   : > { %v1929_v40 = vadd.f32 %v3319_v25, %v4052_v36  ;;  %v1920_v41 = vpop.f32.mrb[91].mxu0  ;;  %3329 = vmatpush3.bf16.msra.mxu1 %v1966_v21  ;;  %3298 = vmatprep.mubr.bf16.mxu1 %v4111_v53  ;;  %v1958_v43 = vmax.f32 %v1926_v0, 0.0 }
 0x1a6   : > { %v1921_v42 = vadd.f32 %v1920_v41, %v4042_v23  ;;  %3330 = vmatprep.subr.bf16.mxu1 %v1967_v31  ;;  %v1956_v46 = vmax.f32 %v1918_v39, 0.0 }
 0x1a7   : > { %v1959_v45 = vmax.f32 %v1929_v40, 0.0 }
 0x1a8   : > { %v1957_v5 = vmax.f32 %v1921_v42, 0.0 }
 0x1a9   : > { %v1969_v47 = vpack.c.bf16 %v1959_v45, %v1958_v43  ;;  %3331 = vmatpush3.bf16.msra.mxu1 %v1967_v31 }
 0x1aa   : > { %v1968_v6 = vpack.c.bf16 %v1957_v5, %v1956_v46  ;;  %v3322_v49 = vpop.f32.mrb[92].mxu0 }
 0x1ab   : > { %v1942_v51 = vadd.f32 %v3322_v49, %v4068_v55  ;;  %v1933_v54 = vpop.f32.mrb[93].mxu0 }
 0x1ac   : > { %v1934_v56 = vadd.f32 %v1933_v54, %v4057_v44  ;;  %3299 = vmatmul.mubr.bf16.gmra.mrb[72].mxu1 %v4122_v16  ;;  %v3323_v57 = vpop.f32.mrb[94].mxu0  ;;  %3332 = vmatprep.subr.bf16.mxu1 %v1968_v6 }
 0x1ad   : > { %v1945_v2 = vadd.f32 %v3323_v57, %v4071_v4  ;;  %v1936_v3 = vpop.f32.mrb[95].mxu0  ;;  %3333 = vmatpush3.bf16.msra.mxu1 %v1968_v6  ;;  %3302 = vmatprep.mubr.bf16.mxu1 %v4127_v20  ;;  %v1962_v9 = vmax.f32 %v1942_v51, 0.0 }
 0x1ae   : > { %v1937_v8 = vadd.f32 %v1936_v3, %v4061_v48  ;;  %3334 = vmatprep.subr.bf16.mxu1 %v1969_v47  ;;  %v1960_v10 = vmax.f32 %v1934_v56, 0.0 }
 0x1af   : > { %v1963_v13 = vmax.f32 %v1945_v2, 0.0 }
 0x1b0   : > { %v1961_v15 = vmax.f32 %v1937_v8, 0.0 }
 0x1b1   : > { %v1971_v11 = vpack.c.bf16 %v1963_v13, %v1962_v9  ;;  %3335 = vmatpush3.bf16.msra.mxu1 %v1969_v47 }
 0x1b2   : > { %v1970_v12 = vpack.c.bf16 %v1961_v15, %v1960_v10  ;;  %v3360_v14 = vpop.f32.mrb[96].mxu0 }
 0x1b3   : > { %v2149_v18 = vadd.f32 %v3360_v14, %v4010_v59  ;;  %v2140_v22 = vpop.f32.mrb[97].mxu0 }
 0x1b4   : > { %v2141_v24 = vadd.f32 %v2140_v22, %v4006_v58  ;;  %3303 = vmatmul.mubr.bf16.gmra.mrb[76].mxu1 %v4138_v38  ;;  %3336 = vmatprep.subr.bf16.mxu1 %v1970_v12  ;;  %v3361_v52 = vpop.f32.mrb[98].mxu0 }
 0x1b5   : > { %v2152_v26 = vadd.f32 %v3361_v52, %v4016_v61  ;;  %3337 = vmatpush3.bf16.msra.mxu1 %v1970_v12  ;;  %v2143_v27 = vpop.f32.mrb[99].mxu0  ;;  %3340 = vmatprep.mubr.bf16.mxu1 %v4243_v28  ;;  %v2205_v19 = vmax.f32 %v2149_v18, 0.0 }
 0x1b6   : > { %v2144_v29 = vadd.f32 %v2143_v27, %v4012_v60  ;;  %3338 = vmatprep.subr.bf16.mxu1 %v1971_v11  ;;  %v2203_v31 = vmax.f32 %v2141_v24, 0.0 }
 0x1b7   : > { %v2206_v30 = vmax.f32 %v2152_v26, 0.0 }
 0x1b8   : > { %v2204_v21 = vmax.f32 %v2144_v29, 0.0 }
 0x1b9   : > { %v2220_v32 = vpack.c.bf16 %v2206_v30, %v2205_v19  ;;  %3339 = vmatpush3.bf16.msra.mxu1 %v1971_v11 }
 0x1ba   : > { %v2219_v0 = vpack.c.bf16 %v2204_v21, %v2203_v31  ;;  %v3364_v35 = vpop.f32.mrb[100].mxu0 }
 0x1bb   : > { %v2165_v39 = vadd.f32 %v3364_v35, %v4028_v1  ;;  %v2156_v25 = vpop.f32.mrb[101].mxu0 }
 0x1bc   : > { %v2157_v40 = vadd.f32 %v2156_v25, %v4020_v62  ;;  %3341 = vmatmul.mubr.bf16.vlgmr.msra.gmra.mrb[80].mxu1 %v4089_v34  ;;  %v3365_v41 = vpop.f32.mrb[102].mxu0  ;;  %3374 = vmatprep.subr.bf16.mxu1 %v2219_v0 }
 0x1bd   : > { %v2168_v42 = vadd.f32 %v3365_v41, %v4031_v7  ;;  %v2159_v43 = vpop.f32.mrb[103].mxu0  ;;  %3375 = vmatpush3.bf16.msra.mxu1 %v2219_v0  ;;  %3344 = vmatprep.mubr.bf16.mxu1 %v4095_v37  ;;  %v2209_v46 = vmax.f32 %v2165_v39, 0.0 }
 0x1be   : > { %v2160_v45 = vadd.f32 %v2159_v43, %v4022_v63  ;;  %3376 = vmatprep.subr.bf16.mxu1 %v2220_v32  ;;  %v2207_v47 = vmax.f32 %v2157_v40, 0.0 }
 0x1bf   : > { %v2210_v5 = vmax.f32 %v2168_v42, 0.0 }
 0x1c0   : > { %v2208_v6 = vmax.f32 %v2160_v45, 0.0 }
 0x1c1   : > { %v2222_v49 = vpack.c.bf16 %v2210_v5, %v2209_v46  ;;  %3377 = vmatpush3.bf16.msra.mxu1 %v2220_v32 }
 0x1c2   : > { %v2221_v51 = vpack.c.bf16 %v2208_v6, %v2207_v47  ;;  %v3368_v54 = vpop.f32.mrb[104].mxu0 }
 0x1c3   : > { %v2181_v56 = vadd.f32 %v3368_v54, %v4047_v33  ;;  %v2172_v57 = vpop.f32.mrb[105].mxu0 }
 0x1c4   : > { %v2173_v2 = vadd.f32 %v2172_v57, %v4038_v17  ;;  %3345 = vmatmul.mubr.bf16.gmra.mrb[84].mxu1 %v4106_v50  ;;  %v3369_v3 = vpop.f32.mrb[106].mxu0  ;;  %3378 = vmatprep.subr.bf16.mxu1 %v2221_v51 }
 0x1c5   : > { %v2184_v8 = vadd.f32 %v3369_v3, %v4052_v36  ;;  %v2175_v9 = vpop.f32.mrb[107].mxu0  ;;  %3379 = vmatpush3.bf16.msra.mxu1 %v2221_v51  ;;  %3348 = vmatprep.mubr.bf16.mxu1 %v4111_v53  ;;  %v2213_v10 = vmax.f32 %v2181_v56, 0.0 }
 0x1c6   : > { %v2176_v13 = vadd.f32 %v2175_v9, %v4042_v23  ;;  %3380 = vmatprep.subr.bf16.mxu1 %v2222_v49  ;;  %v2211_v11 = vmax.f32 %v2173_v2, 0.0 }
 0x1c7   : > { %v2214_v15 = vmax.f32 %v2184_v8, 0.0 }
 0x1c8   : > { %v2212_v12 = vmax.f32 %v2176_v13, 0.0 }
 0x1c9   : > { %v2224_v14 = vpack.c.bf16 %v2214_v15, %v2213_v10  ;;  %3381 = vmatpush3.bf16.msra.mxu1 %v2222_v49 }
 0x1ca   : > { %v2223_v18 = vpack.c.bf16 %v2212_v12, %v2211_v11  ;;  %v3372_v22 = vpop.f32.mrb[108].mxu0 }
 0x1cb   : > { %v2197_v24 = vadd.f32 %v3372_v22, %v4068_v55  ;;  %v2188_v52 = vpop.f32.mrb[109].mxu0 }
 0x1cc   : > { %v2189_v26 = vadd.f32 %v2188_v52, %v4057_v44  ;;  %3349 = vmatmul.mubr.bf16.gmra.mrb[88].mxu1 %v4122_v16  ;;  %v3373_v27 = vpop.f32.mrb[110].mxu0  ;;  %3382 = vmatprep.subr.bf16.mxu1 %v2223_v18 }
 0x1cd   : > { %v2200_v29 = vadd.f32 %v3373_v27, %v4071_v4  ;;  %v2191_v19 = vpop.f32.mrb[111].mxu0  ;;  %3383 = vmatpush3.bf16.msra.mxu1 %v2223_v18  ;;  %3352 = vmatprep.mubr.bf16.mxu1 %v4127_v20  ;;  %v2217_v31 = vmax.f32 %v2197_v24, 0.0 }
 0x1ce   : > { %v2192_v30 = vadd.f32 %v2191_v19, %v4061_v48  ;;  %3384 = vmatprep.subr.bf16.mxu1 %v2224_v14  ;;  %v2215_v32 = vmax.f32 %v2189_v26, 0.0 }
 0x1cf   : > { %v2218_v21 = vmax.f32 %v2200_v29, 0.0 }
 0x1d0   : > { %v2216_v0 = vmax.f32 %v2192_v30, 0.0 }
 0x1d1   : > { %v2226_v35 = vpack.c.bf16 %v2218_v21, %v2217_v31  ;;  %3385 = vmatpush3.bf16.msra.mxu1 %v2224_v14 }
 0x1d2   : > { %v2225_v39 = vpack.c.bf16 %v2216_v0, %v2215_v32  ;;  %v3410_v25 = vpop.f32.mrb[112].mxu0 }
 0x1d3   : > { %v2404_v40 = vadd.f32 %v3410_v25, %v4010_v59  ;;  %v2395_v41 = vpop.f32.mrb[113].mxu0 }
 0x1d4   : > { %v2396_v42 = vadd.f32 %v2395_v41, %v4006_v58  ;;  %3353 = vmatmul.mubr.bf16.gmra.mrb[92].mxu1 %v4138_v38  ;;  %3386 = vmatprep.subr.bf16.mxu1 %v2225_v39  ;;  %v3411_v43 = vpop.f32.mrb[114].mxu0  ;;  %v4293_v41 = vpop.permute.xlu0 %587 }
 0x1d5   : > { %v2407_v45 = vadd.f32 %v3411_v43, %v4016_v61  ;;  %3387 = vmatpush3.bf16.msra.mxu1 %v2225_v39  ;;  %v2398_v46 = vpop.f32.mrb[115].mxu0  ;;  %3390 = vmatprep.mubr.bf16.mxu1 %v4243_v28  ;;  %v2460_v47 = vmax.f32 %v2404_v40, 0.0  ;;  %v3559_v43 = vld [vmem:[%s4858_s3 + $0x18] sm:$0xff]  }
 0x1d6   : > { %v2399_v5 = vadd.f32 %v2398_v46, %v4012_v60  ;;  %3388 = vmatprep.subr.bf16.mxu1 %v2226_v35  ;;  %v2458_v49 = vmax.f32 %v2396_v42, 0.0  ;;  %v4298_v42 = vpop.permute.xlu1 %592 }
 0x1d7   : > { %v2461_v6 = vmax.f32 %v2407_v45, 0.0  ;;  %v3560_v45 = vld [vmem:[%s4858_s3 + $0x20] sm:$0xff]  }
 0x1d8   : > { %v2459_v59 = vmax.f32 %v2399_v5, 0.0 }
 0x1d9   : > { %v2475_v51 = vpack.c.bf16 %v2461_v6, %v2460_v47  ;;  %3389 = vmatpush3.bf16.msra.mxu1 %v2226_v35  ;;  %v4310_v47 = vpop.permute.xlu0 %597 }
 0x1da   : > { %v2474_v58 = vpack.c.bf16 %v2459_v59, %v2458_v49  ;;  %v3414_v54 = vpop.f32.mrb[116].mxu0  ;;  %v4316_v59 = vpop.permute.xlu1 %602 }
 0x1db   : > { %v2420_v56 = vadd.f32 %v3414_v54, %v4028_v1  ;;  %v2411_v57 = vpop.f32.mrb[117].mxu0 }
 0x1dc   : > { %v2412_v61 = vadd.f32 %v2411_v57, %v4020_v62  ;;  %3391 = vmatmul.mubr.bf16.vlgmr.msra.gmra.mrb[96].mxu1 %v4089_v34  ;;  %v3415_v2 = vpop.f32.mrb[118].mxu0  ;;  %3424 = vmatprep.subr.bf16.mxu0 %v2474_v58 }
 0x1dd   : > { %v2423_v60 = vadd.f32 %v3415_v2, %v4031_v7  ;;  %3456 = vmatprep.subr.bf16.mxu1 %v2474_v58  ;;  %v2414_v28 = vpop.f32.mrb[119].mxu0  ;;  %3425 = vmatpush3.bf16.msra.mxu0 %v2474_v58  ;;  %v2464_v8 = vmax.f32 %v2420_v56, 0.0  ;;  %v4324_v54 = vpop.permute.xlu0 %607 }
 0x1de   : > { %v2415_v3 = vadd.f32 %v2414_v28, %v4022_v63  ;;  %3464 = vmatpush3.bf16.msra.mxu1 %v2474_v58  ;;  %3426 = vmatprep.subr.bf16.mxu0 %v2475_v51  ;;  %v2462_v1 = vmax.f32 %v2412_v61, 0.0  ;;  %v3562_v58 = vld [vmem:[%s4858_s3 + $0x30] sm:$0xff]   ;;  %v4330_v61 = vpop.permute.xlu1 %612 }
 0x1df   : > { %v2465_v9 = vmax.f32 %v2423_v60, 0.0  ;;  %3457 = vmatprep.subr.bf16.mxu1 %v2475_v51  ;;  %3394 = vmatprep.mubr.bf16.mxu1 %v4095_v37 }
 0x1e0   : > { %v2463_v62 = vmax.f32 %v2415_v3, 0.0  ;;  %v3563_v3 = vld [vmem:[%s4858_s3 + $0x38] sm:$0xff]  }
 0x1e1   : > { %v2477_v13 = vpack.c.bf16 %v2465_v9, %v2464_v8  ;;  %3427 = vmatpush3.bf16.msra.mxu0 %v2475_v51  ;;  %v4336_v28 = vpop.permute.xlu0 %617 }
 0x1e2   : > { %v2476_v34 = vpack.c.bf16 %v2463_v62, %v2462_v1  ;;  %3465 = vmatpush3.bf16.msra.mxu1 %v2475_v51  ;;  %v3418_v10 = vpop.f32.mrb[120].mxu0  ;;  %v3561_v51 = vld [vmem:[%s4858_s3 + $0x28] sm:$0xff]   ;;  %v4342_v9 = vpop.permute.xlu1 %622 }
 0x1e3   : > { %v2436_v7 = vadd.f32 %v3418_v10, %v4047_v33  ;;  %v2427_v15 = vpop.f32.mrb[121].mxu0 }
 0x1e4   : > { %v2428_v11 = vadd.f32 %v2427_v15, %v4038_v17  ;;  %3395 = vmatmul.mubr.bf16.gmra.mrb[100].mxu1 %v4106_v50  ;;  %v3419_v63 = vpop.f32.mrb[122].mxu0  ;;  %3428 = vmatprep.subr.bf16.mxu0 %v2476_v34 }
 0x1e5   : > { %v2439_v12 = vadd.f32 %v3419_v63, %v4052_v36  ;;  %3458 = vmatprep.subr.bf16.mxu1 %v2476_v34  ;;  %v2430_v37 = vpop.f32.mrb[123].mxu0  ;;  %3429 = vmatpush3.bf16.msra.mxu0 %v2476_v34  ;;  %v2468_v18 = vmax.f32 %v2436_v7, 0.0 }
 0x1e6   : > { %v2431_v14 = vadd.f32 %v2430_v37, %v4042_v23  ;;  %3466 = vmatpush3.bf16.msra.mxu1 %v2476_v34  ;;  %3430 = vmatprep.subr.bf16.mxu0 %v2477_v13  ;;  %v2466_v33 = vmax.f32 %v2428_v11, 0.0 }
 0x1e7   : > { %v2469_v22 = vmax.f32 %v2439_v12, 0.0  ;;  %3459 = vmatprep.subr.bf16.mxu1 %v2477_v13  ;;  %3398 = vmatprep.mubr.bf16.mxu1 %v4111_v53 }
 0x1e8   : > { %v2467_v17 = vmax.f32 %v2431_v14, 0.0 }
 0x1e9   : > { %v2479_v24 = vpack.c.bf16 %v2469_v22, %v2468_v18  ;;  %3431 = vmatpush3.bf16.msra.mxu0 %v2477_v13  ;;  %v4350_v18 = vpop.permute.xlu0 %627 }
 0x1ea   : > { %v2478_v50 = vpack.c.bf16 %v2467_v17, %v2466_v33  ;;  %3467 = vmatpush3.bf16.msra.mxu1 %v2477_v13  ;;  %v3422_v52 = vpop.f32.mrb[124].mxu0 }
 0x1eb   : > { %v2452_v36 = vadd.f32 %v3422_v52, %v4068_v55  ;;  %v2443_v26 = vpop.f32.mrb[125].mxu0 }
 0x1ec   : > { %v2444_v27 = vadd.f32 %v2443_v26, %v4057_v44  ;;  %3399 = vmatmul.mubr.bf16.gmra.mrb[104].mxu1 %v4122_v16  ;;  %v3423_v23 = vpop.f32.mrb[126].mxu0  ;;  %3432 = vmatprep.subr.bf16.mxu0 %v2478_v50 }
 0x1ed   : > { %v2455_v29 = vadd.f32 %v3423_v23, %v4071_v4  ;;  %3460 = vmatprep.subr.bf16.mxu1 %v2478_v50  ;;  %v2446_v53 = vpop.f32.mrb[127].mxu0  ;;  %3433 = vmatpush3.bf16.msra.mxu0 %v2478_v50  ;;  %v2472_v30 = vmax.f32 %v2452_v36, 0.0  ;;  %v4355_v36 = vpop.permute.xlu1 %632 }
 0x1ee   : > { %v2447_v19 = vadd.f32 %v2446_v53, %v4061_v48  ;;  %3468 = vmatpush3.bf16.msra.mxu1 %v2478_v50  ;;  %3434 = vmatprep.subr.bf16.mxu0 %v2479_v24  ;;  %v2470_v44 = vmax.f32 %v2444_v27, 0.0 }
 0x1ef   : > { %v2473_v31 = vmax.f32 %v2455_v29, 0.0  ;;  %3461 = vmatprep.subr.bf16.mxu1 %v2479_v24  ;;  %v3092_v55 = vpop.f32.mrb[0].mxu1  ;;  %3402 = vmatprep.mubr.bf16.mxu1 %v4127_v20  ;;  %v3557_v20 = vld [vmem:[%s4858_s3 + $0x10] sm:$0xff]  }
 0x1f0   : > { %v2471_v21 = vmax.f32 %v2447_v19, 0.0  ;;  %v747_v16 = vpop.f32.mrb[1].mxu1  ;;  %v756_v8 = vadd.f32 %v3092_v55, %v4310_v47 }
 0x1f1   : > { %v2481_v32 = vpack.c.bf16 %v2473_v31, %v2472_v30  ;;  %v3093_v0 = vpop.f32.mrb[2].mxu1  ;;  %3435 = vmatpush3.bf16.msra.mxu0 %v2479_v24  ;;  %v748_v1 = vadd.f32 %v747_v16, %v4293_v41  ;;  %v4367_v16 = vpop.permute.xlu0 %637 }
 0x1f2   : > { %v2480_v4 = vpack.c.bf16 %v2471_v21, %v2470_v44  ;;  %3469 = vmatpush3.bf16.msra.mxu1 %v2479_v24  ;;  %v750_v35 = vpop.f32.mrb[3].mxu1  ;;  %v759_v13 = vadd.f32 %v3093_v0, %v4316_v59  ;;  %v812_v63 = vmax.f32 %v756_v8, 0.0 }
 0x1f3   : > { %v751_v7 = vadd.f32 %v750_v35, %v4298_v42  ;;  %v810_v22 = vmax.f32 %v748_v1, 0.0 }
 0x1f4   : > { %3403 = vmatmul.mubr.bf16.gmra.mrb[108].mxu1 %v4138_v38  ;;  %3436 = vmatprep.subr.bf16.mxu0 %v2480_v4  ;;  %v3558_v38 = vld [vmem:[%s4858_s3 + $0x8] sm:$0xff]   ;;  %v813_v24 = vmax.f32 %v759_v13, 0.0 }
 0x1f5   : > { %3462 = vmatprep.subr.bf16.mxu1 %v2480_v4  ;;  %3437 = vmatpush3.bf16.msra.mxu0 %v2480_v4  ;;  %v811_v26 = vmax.f32 %v751_v7, 0.0 }
 0x1f6   : > { %3470 = vmatpush3.bf16.msra.mxu1 %v2480_v4  ;;  %3438 = vmatprep.subr.bf16.mxu0 %v2481_v32 }
 0x1f7   : > { %3463 = vmatprep.subr.bf16.mxu1 %v2481_v32  ;;  %v3096_v48 = vpop.f32.mrb[4].mxu1  ;;  %3444 = vmatprep.mubr.bf16.mxu1 %v3557_v20 }
 0x1f8   : > { %v763_v39 = vpop.f32.mrb[5].mxu1  ;;  %v772_v29 = vadd.f32 %v3096_v48, %v4336_v28 }
 0x1f9   : > { %v3097_v25 = vpop.f32.mrb[6].mxu1  ;;  %3439 = vmatpush3.bf16.msra.mxu0 %v2481_v32  ;;  %v764_v19 = vadd.f32 %v763_v39, %v4324_v54 }
 0x1fa   : > { %3471 = vmatpush3.bf16.msra.mxu1 %v2481_v32  ;;  %v766_v40 = vpop.f32.mrb[7].mxu1  ;;  %v775_v55 = vadd.f32 %v3097_v25, %v4342_v9  ;;  %v816_v35 = vmax.f32 %v772_v29, 0.0 }
 0x1fb   : > { %v767_v32 = vadd.f32 %v766_v40, %v4330_v61 }
 0x1fc   : > { %3441 = vmatmul.mubr.bf16.vlgmr.msra.gmra.mrb[128].mxu0 %v3558_v38  ;;  %v4372_v38 = vpop.permute.xlu1 %642 }
 0x1fd   : > { %3445 = vmatmul.mubr.bf16.vlgmr.msra.gmra.mrb[112].mxu1 %v3559_v43  ;;  %v814_v43 = vmax.f32 %v764_v19, 0.0  ;;  %v815_v8 = vmax.f32 %v767_v32, 0.0 }
 0x1fe   : > { %3448 = vmatprep.mubr.bf16.mxu1 %v3560_v45 }
 0x1ff   : > { %v4306_v46 = vpop.f32.mrb[8].mxu1 }
 0x200   : > { %v4308_v5 = vpop.f32.mrb[9].mxu1 }
 0x201   : > { %v4312_v6 = vpop.f32.mrb[10].mxu1 }
 0x202   : > { %v4314_v49 = vpop.f32.mrb[11].mxu1 }
 0x205   : > { %3449 = vmatmul.mubr.bf16.gmra.mrb[116].mxu1 %v3561_v51  ;;  %v817_v51 = vmax.f32 %v775_v55, 0.0 }
 0x206   : > { %3452 = vmatprep.mubr.bf16.mxu1 %v3562_v58 }
 0x207   : > { %v4326_v56 = vpop.f32.mrb[12].mxu1 }
 0x208   : > { %v4328_v57 = vpop.f32.mrb[13].mxu1 }
 0x209   : > { %v4332_v2 = vpop.f32.mrb[14].mxu1 }
 0x20a   : > { %v4334_v60 = vpop.f32.mrb[15].mxu1 }
 0x20d   : > { %3453 = vmatmul.mubr.bf16.gmra.mrb[120].mxu1 %v3563_v3 }
 0x20f   : > { %v3142_v62 = vpop.f32.mrb[16].mxu1 }
 0x210   : > { %v995_v34 = vadd.f32 %v3142_v62, %v4310_v47  ;;  %v986_v10 = vpop.f32.mrb[17].mxu1  ;;  %v788_v62 = vadd.f32 %v4306_v46, %v4367_v16  ;;  %v783_v46 = vadd.f32 %v4314_v49, %v4355_v36 }
 0x211   : > { %v987_v15 = vadd.f32 %v986_v10, %v4293_v41  ;;  %v3143_v11 = vpop.f32.mrb[18].mxu1  ;;  %v780_v10 = vadd.f32 %v4308_v5, %v4350_v18 }
 0x212   : > { %v1051_v12 = vmax.f32 %v995_v34, 0.0  ;;  %v998_v37 = vadd.f32 %v3143_v11, %v4316_v59  ;;  %v989_v14 = vpop.f32.mrb[19].mxu1  ;;  %v4383_v34 = vpop.permute.xlu0 %647  ;;  %v791_v11 = vadd.f32 %v4312_v6, %v4372_v38  ;;  %v819_v55 = vmax.f32 %v783_v46, 0.0 }
 0x213   : > { %v1049_v33 = vmax.f32 %v987_v15, 0.0  ;;  %v990_v17 = vadd.f32 %v989_v14, %v4298_v42 }
 0x214   : > { %v4353_v50 = vmax.f32 %v812_v63, %v1051_v12  ;;  %v1052_v52 = vmax.f32 %v998_v37, 0.0  ;;  %v4392_v37 = vpop.permute.xlu1 %652 }
 0x215   : > { %v4357_v27 = vmax.f32 %v810_v22, %v1049_v33  ;;  %v1050_v23 = vmax.f32 %v990_v17, 0.0  ;;  %v820_v33 = vmax.f32 %v788_v62, 0.0 }
 0x216   : > { %v4360_v53 = vmax.f32 %v813_v24, %v1052_v52  ;;  %v818_v52 = vmax.f32 %v780_v10, 0.0 }
 0x217   : > { %v4363_v30 = vmax.f32 %v811_v26, %v1050_v23  ;;  %v3146_v31 = vpop.f32.mrb[20].mxu1  ;;  %v821_v23 = vmax.f32 %v791_v11, 0.0 }
 0x218   : > { %v1011_v44 = vadd.f32 %v3146_v31, %v4336_v28  ;;  %v1002_v21 = vpop.f32.mrb[21].mxu1  ;;  %v4401_v31 = vpop.permute.xlu0 %657 }
 0x219   : > { %v1003_v0 = vadd.f32 %v1002_v21, %v4324_v54  ;;  %v3147_v4 = vpop.f32.mrb[22].mxu1  ;;  %v804_v21 = vadd.f32 %v4326_v56, %v4401_v31 }
 0x21a   : > { %v1055_v48 = vmax.f32 %v1011_v44, 0.0  ;;  %v1014_v20 = vadd.f32 %v3147_v4, %v4342_v9  ;;  %v1005_v39 = vpop.f32.mrb[23].mxu1  ;;  %v796_v4 = vadd.f32 %v4328_v57, %v4383_v34 }
 0x21b   : > { %v1053_v45 = vmax.f32 %v1003_v0, 0.0  ;;  %v1006_v25 = vadd.f32 %v1005_v39, %v4330_v61  ;;  %v4409_v0 = vpop.permute.xlu1 %662 }
 0x21c   : > { %v4375_v58 = vmax.f32 %v816_v35, %v1055_v48  ;;  %v1056_v3 = vmax.f32 %v1014_v20, 0.0  ;;  %v807_v20 = vadd.f32 %v4332_v2, %v4409_v0 }
 0x21d   : > { %v4377_v40 = vmax.f32 %v814_v43, %v1053_v45  ;;  %v1054_v1 = vmax.f32 %v1006_v25, 0.0  ;;  %v799_v45 = vadd.f32 %v4334_v60, %v4392_v37 }
 0x21e   : > { %v4381_v13 = vmax.f32 %v817_v51, %v1056_v3  ;;  %v824_v51 = vmax.f32 %v804_v21, 0.0 }
 0x21f   : > { %v4387_v7 = vmax.f32 %v815_v8, %v1054_v1  ;;  %v3150_v15 = vpop.f32.mrb[24].mxu1  ;;  %v822_v1 = vmax.f32 %v796_v4, 0.0 }
 0x220   : > { %v1027_v63 = vadd.f32 %v3150_v15, %v4367_v16  ;;  %v1018_v12 = vpop.f32.mrb[25].mxu1  ;;  %v825_v15 = vmax.f32 %v807_v20, 0.0 }
 0x221   : > { %v1019_v14 = vadd.f32 %v1018_v12, %v4350_v18  ;;  %v3151_v22 = vpop.f32.mrb[26].mxu1 }
 0x222   : > { %v1059_v17 = vmax.f32 %v1027_v63, 0.0  ;;  %v1030_v5 = vadd.f32 %v3151_v22, %v4372_v38  ;;  %v1021_v24 = vpop.f32.mrb[27].mxu1  ;;  %v823_v63 = vmax.f32 %v799_v45, 0.0 }
 0x223   : > { %v1057_v26 = vmax.f32 %v1019_v14, 0.0  ;;  %v1022_v6 = vadd.f32 %v1021_v24, %v4355_v36 }
 0x224   : > { %v4399_v29 = vmax.f32 %v820_v33, %v1059_v17  ;;  %v1060_v19 = vmax.f32 %v1030_v5, 0.0 }
 0x225   : > { %v4403_v49 = vmax.f32 %v818_v52, %v1057_v26  ;;  %v1058_v44 = vmax.f32 %v1022_v6, 0.0 }
 0x226   : > { %v4407_v32 = vmax.f32 %v821_v23, %v1060_v19 }
 0x227   : > { %v4413_v35 = vmax.f32 %v819_v55, %v1058_v44  ;;  %v3154_v48 = vpop.f32.mrb[28].mxu1 }
 0x228   : > { %v1043_v39 = vadd.f32 %v3154_v48, %v4401_v31  ;;  %v1034_v43 = vpop.f32.mrb[29].mxu1 }
 0x229   : > { %v1035_v56 = vadd.f32 %v1034_v43, %v4383_v34  ;;  %v3155_v25 = vpop.f32.mrb[30].mxu1 }
 0x22a   : > { %v1063_v3 = vmax.f32 %v1043_v39, 0.0  ;;  %v1046_v8 = vadd.f32 %v3155_v25, %v4409_v0  ;;  %v1037_v57 = vpop.f32.mrb[31].mxu1 }
 0x22b   : > { %v1061_v62 = vmax.f32 %v1035_v56, 0.0  ;;  %v1038_v10 = vadd.f32 %v1037_v57, %v4392_v37 }
 0x22c   : > { %v4423_v2 = vmax.f32 %v824_v51, %v1063_v3  ;;  %v1064_v11 = vmax.f32 %v1046_v8, 0.0 }
 0x22d   : > { %v4425_v12 = vmax.f32 %v822_v1, %v1061_v62  ;;  %v1062_v60 = vmax.f32 %v1038_v10, 0.0 }
 0x22e   : > { %v4427_v46 = vmax.f32 %v825_v15, %v1064_v11 }
 0x22f   : > { %v4429_v14 = vmax.f32 %v823_v63, %v1062_v60  ;;  %v3192_v22 = vpop.f32.mrb[32].mxu1 }
 0x230   : > { %v1250_v33 = vadd.f32 %v3192_v22, %v4310_v47  ;;  %v1241_v17 = vpop.f32.mrb[33].mxu1 }
 0x231   : > { %v1242_v5 = vadd.f32 %v1241_v17, %v4293_v41  ;;  %v3193_v24 = vpop.f32.mrb[34].mxu1 }
 0x232   : > { %v1306_v52 = vmax.f32 %v1250_v33, 0.0  ;;  %v1253_v26 = vadd.f32 %v3193_v24, %v4316_v59  ;;  %v1244_v6 = vpop.f32.mrb[35].mxu1 }
 0x233   : > { %v1304_v23 = vmax.f32 %v1242_v5, 0.0  ;;  %v1245_v19 = vadd.f32 %v1244_v6, %v4298_v42 }
 0x234   : > { %v4436_v55 = vmax.f32 %v4353_v50, %v1306_v52  ;;  %v1307_v44 = vmax.f32 %v1253_v26, 0.0 }
 0x235   : > { %v4439_v21 = vmax.f32 %v4357_v27, %v1304_v23  ;;  %v1305_v4 = vmax.f32 %v1245_v19, 0.0 }
 0x236   : > { %v4442_v48 = vmax.f32 %v4360_v53, %v1307_v44 }
 0x237   : > { %v4445_v20 = vmax.f32 %v4363_v30, %v1305_v4  ;;  %v3196_v39 = vpop.f32.mrb[36].mxu1 }
 0x238   : > { %v1266_v43 = vadd.f32 %v3196_v39, %v4336_v28  ;;  %v1257_v45 = vpop.f32.mrb[37].mxu1 }
 0x239   : > { %v1258_v56 = vadd.f32 %v1257_v45, %v4324_v54  ;;  %v3197_v25 = vpop.f32.mrb[38].mxu1 }
 0x23a   : > { %v1310_v50 = vmax.f32 %v1266_v43, 0.0  ;;  %v1269_v51 = vadd.f32 %v3197_v25, %v4342_v9  ;;  %v1260_v3 = vpop.f32.mrb[39].mxu1 }
 0x23b   : > { %v1308_v27 = vmax.f32 %v1258_v56, 0.0  ;;  %v1261_v8 = vadd.f32 %v1260_v3, %v4330_v61 }
 0x23c   : > { %v4452_v53 = vmax.f32 %v4375_v58, %v1310_v50  ;;  %v1311_v57 = vmax.f32 %v1269_v51, 0.0 }
 0x23d   : > { %v4455_v30 = vmax.f32 %v4377_v40, %v1308_v27  ;;  %v1309_v1 = vmax.f32 %v1261_v8, 0.0 }
 0x23e   : > { %v4458_v62 = vmax.f32 %v4381_v13, %v1311_v57 }
 0x23f   : > { %v4461_v10 = vmax.f32 %v4387_v7, %v1309_v1  ;;  %v3200_v15 = vpop.f32.mrb[40].mxu1 }
 0x240   : > { %v1282_v11 = vadd.f32 %v3200_v15, %v4367_v16  ;;  %v1273_v63 = vpop.f32.mrb[41].mxu1 }
 0x241   : > { %v1274_v60 = vadd.f32 %v1273_v63, %v4350_v18  ;;  %v3201_v22 = vpop.f32.mrb[42].mxu1 }
 0x242   : > { %v1314_v58 = vmax.f32 %v1282_v11, 0.0  ;;  %v1285_v33 = vadd.f32 %v3201_v22, %v4372_v38  ;;  %v1276_v17 = vpop.f32.mrb[43].mxu1 }
 0x243   : > { %v1312_v40 = vmax.f32 %v1274_v60, 0.0  ;;  %v1277_v5 = vadd.f32 %v1276_v17, %v4355_v36 }
 0x244   : > { %v4468_v13 = vmax.f32 %v4399_v29, %v1314_v58  ;;  %v1315_v24 = vmax.f32 %v1285_v33, 0.0 }
 0x245   : > { %v4471_v7 = vmax.f32 %v4403_v49, %v1312_v40  ;;  %v1313_v52 = vmax.f32 %v1277_v5, 0.0 }
 0x246   : > { %v4474_v26 = vmax.f32 %v4407_v32, %v1315_v24 }
 0x247   : > { %v4477_v6 = vmax.f32 %v4413_v35, %v1313_v52  ;;  %v3204_v23 = vpop.f32.mrb[44].mxu1 }
 0x248   : > { %v1298_v19 = vadd.f32 %v3204_v23, %v4401_v31  ;;  %v1289_v44 = vpop.f32.mrb[45].mxu1 }
 0x249   : > { %v1290_v4 = vadd.f32 %v1289_v44, %v4383_v34  ;;  %v3205_v39 = vpop.f32.mrb[46].mxu1 }
 0x24a   : > { %v1318_v29 = vmax.f32 %v1298_v19, 0.0  ;;  %v1301_v43 = vadd.f32 %v3205_v39, %v4409_v0  ;;  %v1292_v45 = vpop.f32.mrb[47].mxu1 }
 0x24b   : > { %v1316_v49 = vmax.f32 %v1290_v4, 0.0  ;;  %v1293_v56 = vadd.f32 %v1292_v45, %v4392_v37 }
 0x24c   : > { %v4484_v32 = vmax.f32 %v4423_v2, %v1318_v29  ;;  %v1319_v25 = vmax.f32 %v1301_v43, 0.0 }
 0x24d   : > { %v4487_v35 = vmax.f32 %v4425_v12, %v1316_v49  ;;  %v1317_v50 = vmax.f32 %v1293_v56, 0.0 }
 0x24e   : > { %v4490_v51 = vmax.f32 %v4427_v46, %v1319_v25 }
 0x24f   : > { %v4493_v3 = vmax.f32 %v4429_v14, %v1317_v50  ;;  %v3242_v27 = vpop.f32.mrb[48].mxu1 }
 0x250   : > { %v1505_v8 = vadd.f32 %v3242_v27, %v4310_v47  ;;  %v1496_v57 = vpop.f32.mrb[49].mxu1 }
 0x251   : > { %v1497_v1 = vadd.f32 %v1496_v57, %v4293_v41  ;;  %v3243_v15 = vpop.f32.mrb[50].mxu1 }
 0x252   : > { %v1561_v2 = vmax.f32 %v1505_v8, 0.0  ;;  %v1508_v11 = vadd.f32 %v3243_v15, %v4316_v59  ;;  %v1499_v63 = vpop.f32.mrb[51].mxu1 }
 0x253   : > { %v1559_v12 = vmax.f32 %v1497_v1, 0.0  ;;  %v1500_v60 = vadd.f32 %v1499_v63, %v4298_v42 }
 0x254   : > { %v4500_v46 = vmax.f32 %v4436_v55, %v1561_v2  ;;  %v1562_v22 = vmax.f32 %v1508_v11, 0.0 }
 0x255   : > { %v4503_v14 = vmax.f32 %v4439_v21, %v1559_v12  ;;  %v1560_v58 = vmax.f32 %v1500_v60, 0.0 }
 0x256   : > { %v4506_v33 = vmax.f32 %v4442_v48, %v1562_v22 }
 0x257   : > { %v4509_v17 = vmax.f32 %v4445_v20, %v1560_v58  ;;  %v3246_v40 = vpop.f32.mrb[52].mxu1 }
 0x258   : > { %v1521_v5 = vadd.f32 %v3246_v40, %v4336_v28  ;;  %v1512_v24 = vpop.f32.mrb[53].mxu1 }
 0x259   : > { %v1513_v52 = vadd.f32 %v1512_v24, %v4324_v54  ;;  %v3247_v23 = vpop.f32.mrb[54].mxu1 }
 0x25a   : > { %v1565_v55 = vmax.f32 %v1521_v5, 0.0  ;;  %v1524_v19 = vadd.f32 %v3247_v23, %v4342_v9  ;;  %v1515_v44 = vpop.f32.mrb[55].mxu1 }
 0x25b   : > { %v1563_v21 = vmax.f32 %v1513_v52, 0.0  ;;  %v1516_v4 = vadd.f32 %v1515_v44, %v4330_v61 }
 0x25c   : > { %v4516_v48 = vmax.f32 %v4452_v53, %v1565_v55  ;;  %v1566_v39 = vmax.f32 %v1524_v19, 0.0 }
 0x25d   : > { %v4519_v20 = vmax.f32 %v4455_v30, %v1563_v21  ;;  %v1564_v29 = vmax.f32 %v1516_v4, 0.0 }
 0x25e   : > { %v4522_v43 = vmax.f32 %v4458_v62, %v1566_v39 }
 0x25f   : > { %v4525_v45 = vmax.f32 %v4461_v10, %v1564_v29  ;;  %v3250_v49 = vpop.f32.mrb[56].mxu1 }
 0x260   : > { %v1537_v56 = vadd.f32 %v3250_v49, %v4367_v16  ;;  %v1528_v25 = vpop.f32.mrb[57].mxu1 }
 0x261   : > { %v1529_v50 = vadd.f32 %v1528_v25, %v4350_v18  ;;  %v3251_v27 = vpop.f32.mrb[58].mxu1 }
 0x262   : > { %v1569_v53 = vmax.f32 %v1537_v56, 0.0  ;;  %v1540_v8 = vadd.f32 %v3251_v27, %v4372_v38  ;;  %v1531_v57 = vpop.f32.mrb[59].mxu1 }
 0x263   : > { %v1567_v30 = vmax.f32 %v1529_v50, 0.0  ;;  %v1532_v1 = vadd.f32 %v1531_v57, %v4355_v36 }
 0x264   : > { %v4532_v62 = vmax.f32 %v4468_v13, %v1569_v53  ;;  %v1570_v15 = vmax.f32 %v1540_v8, 0.0 }
 0x265   : > { %v4535_v10 = vmax.f32 %v4471_v7, %v1567_v30  ;;  %v1568_v2 = vmax.f32 %v1532_v1, 0.0 }
 0x266   : > { %v4538_v11 = vmax.f32 %v4474_v26, %v1570_v15 }
 0x267   : > { %v4541_v63 = vmax.f32 %v4477_v6, %v1568_v2  ;;  %v3254_v12 = vpop.f32.mrb[60].mxu1 }
 0x268   : > { %v1553_v60 = vadd.f32 %v3254_v12, %v4401_v31  ;;  %v1544_v22 = vpop.f32.mrb[61].mxu1 }
 0x269   : > { %v1545_v58 = vadd.f32 %v1544_v22, %v4383_v34  ;;  %v3255_v40 = vpop.f32.mrb[62].mxu1 }
 0x26a   : > { %v1573_v13 = vmax.f32 %v1553_v60, 0.0  ;;  %v1556_v5 = vadd.f32 %v3255_v40, %v4409_v0  ;;  %v1547_v24 = vpop.f32.mrb[63].mxu1 }
 0x26b   : > { %v1571_v7 = vmax.f32 %v1545_v58, 0.0  ;;  %v1548_v52 = vadd.f32 %v1547_v24, %v4392_v37 }
 0x26c   : > { %v4548_v26 = vmax.f32 %v4484_v32, %v1573_v13  ;;  %v1574_v23 = vmax.f32 %v1556_v5, 0.0 }
 0x26d   : > { %v4551_v6 = vmax.f32 %v4487_v35, %v1571_v7  ;;  %v1572_v55 = vmax.f32 %v1548_v52, 0.0 }
 0x26e   : > { %v4554_v19 = vmax.f32 %v4490_v51, %v1574_v23 }
 0x26f   : > { %v4557_v44 = vmax.f32 %v4493_v3, %v1572_v55  ;;  %v3292_v21 = vpop.f32.mrb[64].mxu1 }
 0x270   : > { %v1760_v4 = vadd.f32 %v3292_v21, %v4310_v47  ;;  %v1751_v39 = vpop.f32.mrb[65].mxu1 }
 0x271   : > { %v1752_v29 = vadd.f32 %v1751_v39, %v4293_v41  ;;  %v3293_v49 = vpop.f32.mrb[66].mxu1 }
 0x272   : > { %v1816_v32 = vmax.f32 %v1760_v4, 0.0  ;;  %v1763_v56 = vadd.f32 %v3293_v49, %v4316_v59  ;;  %v1754_v25 = vpop.f32.mrb[67].mxu1 }
 0x273   : > { %v1814_v35 = vmax.f32 %v1752_v29, 0.0  ;;  %v1755_v50 = vadd.f32 %v1754_v25, %v4298_v42 }
 0x274   : > { %v4564_v51 = vmax.f32 %v4500_v46, %v1816_v32  ;;  %v1817_v27 = vmax.f32 %v1763_v56, 0.0 }
 0x275   : > { %v4567_v3 = vmax.f32 %v4503_v14, %v1814_v35  ;;  %v1815_v53 = vmax.f32 %v1755_v50, 0.0 }
 0x276   : > { %v4570_v8 = vmax.f32 %v4506_v33, %v1817_v27 }
 0x277   : > { %v4573_v57 = vmax.f32 %v4509_v17, %v1815_v53  ;;  %v3296_v30 = vpop.f32.mrb[68].mxu1 }
 0x278   : > { %v1776_v1 = vadd.f32 %v3296_v30, %v4336_v28  ;;  %v1767_v15 = vpop.f32.mrb[69].mxu1 }
 0x279   : > { %v1768_v2 = vadd.f32 %v1767_v15, %v4324_v54  ;;  %v3297_v12 = vpop.f32.mrb[70].mxu1 }
 0x27a   : > { %v1820_v46 = vmax.f32 %v1776_v1, 0.0  ;;  %v1779_v60 = vadd.f32 %v3297_v12, %v4342_v9  ;;  %v1770_v22 = vpop.f32.mrb[71].mxu1 }
 0x27b   : > { %v1818_v14 = vmax.f32 %v1768_v2, 0.0  ;;  %v1771_v58 = vadd.f32 %v1770_v22, %v4330_v61 }
 0x27c   : > { %v4580_v33 = vmax.f32 %v4516_v48, %v1820_v46  ;;  %v1821_v40 = vmax.f32 %v1779_v60, 0.0 }
 0x27d   : > { %v4583_v17 = vmax.f32 %v4519_v20, %v1818_v14  ;;  %v1819_v13 = vmax.f32 %v1771_v58, 0.0 }
 0x27e   : > { %v4586_v5 = vmax.f32 %v4522_v43, %v1821_v40 }
 0x27f   : > { %v4589_v24 = vmax.f32 %v4525_v45, %v1819_v13  ;;  %v3300_v7 = vpop.f32.mrb[72].mxu1 }
 0x280   : > { %v1792_v52 = vadd.f32 %v3300_v7, %v4367_v16  ;;  %v1783_v23 = vpop.f32.mrb[73].mxu1 }
 0x281   : > { %v1784_v55 = vadd.f32 %v1783_v23, %v4350_v18  ;;  %v3301_v21 = vpop.f32.mrb[74].mxu1 }
 0x282   : > { %v1824_v48 = vmax.f32 %v1792_v52, 0.0  ;;  %v1795_v4 = vadd.f32 %v3301_v21, %v4372_v38  ;;  %v1786_v39 = vpop.f32.mrb[75].mxu1 }
 0x283   : > { %v1822_v20 = vmax.f32 %v1784_v55, 0.0  ;;  %v1787_v29 = vadd.f32 %v1786_v39, %v4355_v36 }
 0x284   : > { %v4596_v43 = vmax.f32 %v4532_v62, %v1824_v48  ;;  %v1825_v49 = vmax.f32 %v1795_v4, 0.0 }
 0x285   : > { %v4599_v45 = vmax.f32 %v4535_v10, %v1822_v20  ;;  %v1823_v32 = vmax.f32 %v1787_v29, 0.0 }
 0x286   : > { %v4602_v56 = vmax.f32 %v4538_v11, %v1825_v49 }
 0x287   : > { %v4605_v25 = vmax.f32 %v4541_v63, %v1823_v32  ;;  %v3304_v35 = vpop.f32.mrb[76].mxu1 }
 0x288   : > { %v1808_v50 = vadd.f32 %v3304_v35, %v4401_v31  ;;  %v1799_v27 = vpop.f32.mrb[77].mxu1 }
 0x289   : > { %v1800_v53 = vadd.f32 %v1799_v27, %v4383_v34  ;;  %v3305_v30 = vpop.f32.mrb[78].mxu1 }
 0x28a   : > { %v1828_v62 = vmax.f32 %v1808_v50, 0.0  ;;  %v1811_v1 = vadd.f32 %v3305_v30, %v4409_v0  ;;  %v1802_v15 = vpop.f32.mrb[79].mxu1 }
 0x28b   : > { %v1826_v10 = vmax.f32 %v1800_v53, 0.0  ;;  %v1803_v2 = vadd.f32 %v1802_v15, %v4392_v37 }
 0x28c   : > { %v4612_v11 = vmax.f32 %v4548_v26, %v1828_v62  ;;  %v1829_v12 = vmax.f32 %v1811_v1, 0.0 }
 0x28d   : > { %v4615_v63 = vmax.f32 %v4551_v6, %v1826_v10  ;;  %v1827_v46 = vmax.f32 %v1803_v2, 0.0 }
 0x28e   : > { %v4618_v60 = vmax.f32 %v4554_v19, %v1829_v12 }
 0x28f   : > { %v4621_v22 = vmax.f32 %v4557_v44, %v1827_v46  ;;  %v3342_v14 = vpop.f32.mrb[80].mxu1 }
 0x290   : > { %v2015_v58 = vadd.f32 %v3342_v14, %v4310_v47  ;;  %v2006_v40 = vpop.f32.mrb[81].mxu1 }
 0x291   : > { %v2007_v13 = vadd.f32 %v2006_v40, %v4293_v41  ;;  %v3343_v7 = vpop.f32.mrb[82].mxu1 }
 0x292   : > { %v2071_v26 = vmax.f32 %v2015_v58, 0.0  ;;  %v2018_v52 = vadd.f32 %v3343_v7, %v4316_v59  ;;  %v2009_v23 = vpop.f32.mrb[83].mxu1 }
 0x293   : > { %v2069_v6 = vmax.f32 %v2007_v13, 0.0  ;;  %v2010_v55 = vadd.f32 %v2009_v23, %v4298_v42 }
 0x294   : > { %v4628_v19 = vmax.f32 %v4564_v51, %v2071_v26  ;;  %v2072_v21 = vmax.f32 %v2018_v52, 0.0 }
 0x295   : > { %v4631_v44 = vmax.f32 %v4567_v3, %v2069_v6  ;;  %v2070_v48 = vmax.f32 %v2010_v55, 0.0 }
 0x296   : > { %v4634_v4 = vmax.f32 %v4570_v8, %v2072_v21 }
 0x297   : > { %v4637_v39 = vmax.f32 %v4573_v57, %v2070_v48  ;;  %v3346_v20 = vpop.f32.mrb[84].mxu1 }
 0x298   : > { %v2031_v29 = vadd.f32 %v3346_v20, %v4336_v28  ;;  %v2022_v49 = vpop.f32.mrb[85].mxu1 }
 0x299   : > { %v2023_v32 = vadd.f32 %v2022_v49, %v4324_v54  ;;  %v3347_v35 = vpop.f32.mrb[86].mxu1 }
 0x29a   : > { %v2075_v51 = vmax.f32 %v2031_v29, 0.0  ;;  %v2034_v50 = vadd.f32 %v3347_v35, %v4342_v9  ;;  %v2025_v27 = vpop.f32.mrb[87].mxu1 }
 0x29b   : > { %v2073_v3 = vmax.f32 %v2023_v32, 0.0  ;;  %v2026_v53 = vadd.f32 %v2025_v27, %v4330_v61 }
 0x29c   : > { %v4644_v8 = vmax.f32 %v4580_v33, %v2075_v51  ;;  %v2076_v30 = vmax.f32 %v2034_v50, 0.0 }
 0x29d   : > { %v4647_v57 = vmax.f32 %v4583_v17, %v2073_v3  ;;  %v2074_v62 = vmax.f32 %v2026_v53, 0.0 }
 0x29e   : > { %v4650_v1 = vmax.f32 %v4586_v5, %v2076_v30 }
 0x29f   : > { %v4653_v15 = vmax.f32 %v4589_v24, %v2074_v62  ;;  %v3350_v10 = vpop.f32.mrb[88].mxu1 }
 0x2a0   : > { %v2047_v2 = vadd.f32 %v3350_v10, %v4367_v16  ;;  %v2038_v12 = vpop.f32.mrb[89].mxu1 }
 0x2a1   : > { %v2039_v46 = vadd.f32 %v2038_v12, %v4350_v18  ;;  %v3351_v14 = vpop.f32.mrb[90].mxu1 }
 0x2a2   : > { %v2079_v33 = vmax.f32 %v2047_v2, 0.0  ;;  %v2050_v58 = vadd.f32 %v3351_v14, %v4372_v38  ;;  %v2041_v40 = vpop.f32.mrb[91].mxu1 }
 0x2a3   : > { %v2077_v17 = vmax.f32 %v2039_v46, 0.0  ;;  %v2042_v13 = vadd.f32 %v2041_v40, %v4355_v36 }
 0x2a4   : > { %v4660_v5 = vmax.f32 %v4596_v43, %v2079_v33  ;;  %v2080_v7 = vmax.f32 %v2050_v58, 0.0 }
 0x2a5   : > { %v4663_v24 = vmax.f32 %v4599_v45, %v2077_v17  ;;  %v2078_v26 = vmax.f32 %v2042_v13, 0.0 }
 0x2a6   : > { %v4666_v52 = vmax.f32 %v4602_v56, %v2080_v7 }
 0x2a7   : > { %v4669_v23 = vmax.f32 %v4605_v25, %v2078_v26  ;;  %v3354_v6 = vpop.f32.mrb[92].mxu1 }
 0x2a8   : > { %v2063_v55 = vadd.f32 %v3354_v6, %v4401_v31  ;;  %v2054_v21 = vpop.f32.mrb[93].mxu1 }
 0x2a9   : > { %v2055_v48 = vadd.f32 %v2054_v21, %v4383_v34  ;;  %v3355_v20 = vpop.f32.mrb[94].mxu1 }
 0x2aa   : > { %v2083_v43 = vmax.f32 %v2063_v55, 0.0  ;;  %v2066_v29 = vadd.f32 %v3355_v20, %v4409_v0  ;;  %v2057_v49 = vpop.f32.mrb[95].mxu1 }
 0x2ab   : > { %v2081_v45 = vmax.f32 %v2055_v48, 0.0  ;;  %v2058_v32 = vadd.f32 %v2057_v49, %v4392_v37 }
 0x2ac   : > { %v4676_v56 = vmax.f32 %v4612_v11, %v2083_v43  ;;  %v2084_v35 = vmax.f32 %v2066_v29, 0.0 }
 0x2ad   : > { %v4679_v25 = vmax.f32 %v4615_v63, %v2081_v45  ;;  %v2082_v51 = vmax.f32 %v2058_v32, 0.0 }
 0x2ae   : > { %v4682_v50 = vmax.f32 %v4618_v60, %v2084_v35 }
 0x2af   : > { %v4685_v27 = vmax.f32 %v4621_v22, %v2082_v51  ;;  %v3392_v3 = vpop.f32.mrb[96].mxu1 }
 0x2b0   : > { %v2270_v53 = vadd.f32 %v3392_v3, %v4310_v47  ;;  %v2261_v30 = vpop.f32.mrb[97].mxu1 }
 0x2b1   : > { %v2262_v62 = vadd.f32 %v2261_v30, %v4293_v41  ;;  %v3393_v10 = vpop.f32.mrb[98].mxu1 }
 0x2b2   : > { %v2326_v11 = vmax.f32 %v2270_v53, 0.0  ;;  %v2273_v2 = vadd.f32 %v3393_v10, %v4316_v59  ;;  %v2264_v12 = vpop.f32.mrb[99].mxu1 }
 0x2b3   : > { %v2324_v63 = vmax.f32 %v2262_v62, 0.0  ;;  %v2265_v46 = vadd.f32 %v2264_v12, %v4298_v42 }
 0x2b4   : > { %v4692_v60 = vmax.f32 %v4628_v19, %v2326_v11  ;;  %v2327_v14 = vmax.f32 %v2273_v2, 0.0 }
 0x2b5   : > { %v4695_v22 = vmax.f32 %v4631_v44, %v2324_v63  ;;  %v2325_v33 = vmax.f32 %v2265_v46, 0.0 }
 0x2b6   : > { %v4698_v58 = vmax.f32 %v4634_v4, %v2327_v14 }
 0x2b7   : > { %v4701_v40 = vmax.f32 %v4637_v39, %v2325_v33  ;;  %v3396_v17 = vpop.f32.mrb[100].mxu1 }
 0x2b8   : > { %v2286_v13 = vadd.f32 %v3396_v17, %v4336_v28  ;;  %v2277_v7 = vpop.f32.mrb[101].mxu1 }
 0x2b9   : > { %v2278_v26 = vadd.f32 %v2277_v7, %v4324_v54  ;;  %v3397_v6 = vpop.f32.mrb[102].mxu1 }
 0x2ba   : > { %v2330_v19 = vmax.f32 %v2286_v13, 0.0  ;;  %v2289_v55 = vadd.f32 %v3397_v6, %v4342_v9  ;;  %v2280_v21 = vpop.f32.mrb[103].mxu1 }
 0x2bb   : > { %v2328_v44 = vmax.f32 %v2278_v26, 0.0  ;;  %v2281_v48 = vadd.f32 %v2280_v21, %v4330_v61 }
 0x2bc   : > { %v2346_v4 = vmax.f32 %v4644_v8, %v2330_v19  ;;  %v2331_v20 = vmax.f32 %v2289_v55, 0.0 }
 0x2bd   : > { %v2344_v39 = vmax.f32 %v4647_v57, %v2328_v44  ;;  %v2329_v43 = vmax.f32 %v2281_v48, 0.0 }
 0x2be   : > { %v4710_v29 = vmax.f32 %v4650_v1, %v2331_v20 }
 0x2bf   : > { %v4713_v49 = vmax.f32 %v4653_v15, %v2329_v43  ;;  %v3400_v45 = vpop.f32.mrb[104].mxu1 }
 0x2c0   : > { %v2302_v32 = vadd.f32 %v3400_v45, %v4367_v16  ;;  %v2293_v35 = vpop.f32.mrb[105].mxu1 }
 0x2c1   : > { %v2294_v51 = vadd.f32 %v2293_v35, %v4350_v18  ;;  %v3401_v3 = vpop.f32.mrb[106].mxu1 }
 0x2c2   : > { %v2334_v53 = vmax.f32 %v2302_v32, 0.0  ;;  %v2305_v8 = vadd.f32 %v3401_v3, %v4372_v38  ;;  %v2296_v30 = vpop.f32.mrb[107].mxu1 }
 0x2c3   : > { %v2332_v62 = vmax.f32 %v2294_v51, 0.0  ;;  %v2297_v57 = vadd.f32 %v2296_v30, %v4355_v36 }
 0x2c4   : > { %v4720_v1 = vmax.f32 %v4660_v5, %v2334_v53  ;;  %v2335_v10 = vmax.f32 %v2305_v8, 0.0 }
 0x2c5   : > { %v4723_v15 = vmax.f32 %v4663_v24, %v2332_v62  ;;  %v2333_v11 = vmax.f32 %v2297_v57, 0.0 }
 0x2c6   : > { %v4726_v2 = vmax.f32 %v4666_v52, %v2335_v10 }
 0x2c7   : > { %v4729_v12 = vmax.f32 %v4669_v23, %v2333_v11  ;;  %v3404_v63 = vpop.f32.mrb[108].mxu1 }
 0x2c8   : > { %v2318_v46 = vadd.f32 %v3404_v63, %v4401_v31  ;;  %v2309_v14 = vpop.f32.mrb[109].mxu1 }
 0x2c9   : > { %v2310_v33 = vadd.f32 %v2309_v14, %v4383_v34  ;;  %v3405_v17 = vpop.f32.mrb[110].mxu1 }
 0x2ca   : > { %v2338_v5 = vmax.f32 %v2318_v46, 0.0  ;;  %v2321_v13 = vadd.f32 %v3405_v17, %v4409_v0  ;;  %v2312_v7 = vpop.f32.mrb[111].mxu1 }
 0x2cb   : > { %v2336_v24 = vmax.f32 %v2310_v33, 0.0  ;;  %v2313_v26 = vadd.f32 %v2312_v7, %v4392_v37 }
 0x2cc   : > { %v4736_v52 = vmax.f32 %v4676_v56, %v2338_v5  ;;  %v2339_v6 = vmax.f32 %v2321_v13, 0.0 }
 0x2cd   : > { %v4739_v23 = vmax.f32 %v4679_v25, %v2336_v24  ;;  %v2337_v19 = vmax.f32 %v2313_v26, 0.0 }
 0x2ce   : > { %v4742_v55 = vmax.f32 %v4682_v50, %v2339_v6 }
 0x2cf   : > { %v4745_v21 = vmax.f32 %v4685_v27, %v2337_v19  ;;  %v3442_v44 = vpop.f32.mrb[128].mxu0 }
 0x2d0   : > { %v2525_v48 = vadd.f32 %v3442_v44, %v4310_v47  ;;  %v3446_v20 = vpop.f32.mrb[112].mxu1  ;;  %v2516_v43 = vpop.f32.mrb[129].mxu0 }
 0x2d1   : > { %v2541_v45 = vadd.f32 %v3446_v20, %v4336_v28  ;;  %v2517_v56 = vadd.f32 %v2516_v43, %v4293_v41  ;;  %v2532_v32 = vpop.f32.mrb[113].mxu1  ;;  %v3443_v35 = vpop.f32.mrb[130].mxu0 }
 0x2d2   : > { %v2581_v25 = vmax.f32 %v2525_v48, 0.0  ;;  %v2533_v51 = vadd.f32 %v2532_v32, %v4324_v54  ;;  %v2528_v50 = vadd.f32 %v3443_v35, %v4316_v59  ;;  %v3447_v3 = vpop.f32.mrb[114].mxu1  ;;  %v2519_v53 = vpop.f32.mrb[131].mxu0 }
 0x2d3   : > { %v2585_v27 = vmax.f32 %v2541_v45, 0.0  ;;  %v2579_v8 = vmax.f32 %v2517_v56, 0.0  ;;  %v2544_v30 = vadd.f32 %v3447_v3, %v4342_v9  ;;  %v2520_v47 = vadd.f32 %v2519_v53, %v4298_v42  ;;  %v2535_v62 = vpop.f32.mrb[115].mxu1 }
 0x2d4   : > { %v2597_v28 = vmax.f32 %v4692_v60, %v2581_v25  ;;  %v2583_v57 = vmax.f32 %v2533_v51, 0.0  ;;  %v2582_v41 = vmax.f32 %v2528_v50, 0.0  ;;  %v2536_v10 = vadd.f32 %v2535_v62, %v4330_v61 }
 0x2d5   : > { %v2601_v11 = vmax.f32 %v2346_v4, %v2585_v27  ;;  %v2595_v54 = vmax.f32 %v4695_v22, %v2579_v8  ;;  %v2586_v63 = vmax.f32 %v2544_v30, 0.0  ;;  %v2580_v59 = vmax.f32 %v2520_v47, 0.0 }
 0x2d6   : > { %v2599_v46 = vmax.f32 %v2344_v39, %v2583_v57  ;;  %v2598_v14 = vmax.f32 %v4698_v58, %v2582_v41  ;;  %v2584_v33 = vmax.f32 %v2536_v10, 0.0 }
 0x2d7   : > { %v2602_v9 = vmax.f32 %v4710_v29, %v2586_v63  ;;  %v2596_v42 = vmax.f32 %v4701_v40, %v2580_v59  ;;  %2611 = vxpose.xlu0.b32.start [1/16] %v2595_v54, 128 }
 0x2d8   : > { %v2600_v60 = vmax.f32 %v4713_v49, %v2584_v33  ;;  %v3450_v17 = vpop.f32.mrb[116].mxu1 }
 0x2d9   : > { %v2557_v5 = vadd.f32 %v3450_v17, %v4367_v16  ;;  %v2548_v61 = vpop.f32.mrb[117].mxu1 }
 0x2da   : > { %v2549_v4 = vadd.f32 %v2548_v61, %v4350_v18  ;;  %v3451_v22 = vpop.f32.mrb[118].mxu1 }
 0x2db   : > { %v2589_v13 = vmax.f32 %v2557_v5, 0.0  ;;  %v2560_v39 = vadd.f32 %v3451_v22, %v4372_v38  ;;  %v2551_v7 = vpop.f32.mrb[119].mxu1  ;;  %2612 = vxpose.xlu0.b32.cont [2/16] %v2596_v42, 128 }
 0x2dc   : > { %v2587_v58 = vmax.f32 %v2549_v4, 0.0  ;;  %v2552_v29 = vadd.f32 %v2551_v7, %v4355_v36 }
 0x2dd   : > { %v2605_v40 = vmax.f32 %v4720_v1, %v2589_v13  ;;  %v2590_v24 = vmax.f32 %v2560_v39, 0.0 }
 0x2de   : > { %v2603_v49 = vmax.f32 %v4723_v15, %v2587_v58  ;;  %v2588_v26 = vmax.f32 %v2552_v29, 0.0 }
 0x2df   : > { %v2606_v16 = vmax.f32 %v4726_v2, %v2590_v24  ;;  %2613 = vxpose.xlu0.b32.cont [3/16] %v2597_v28, 128 }
 0x2e0   : > { %v2604_v18 = vmax.f32 %v4729_v12, %v2588_v26  ;;  %v3454_v6 = vpop.f32.mrb[120].mxu1 }
 0x2e1   : > { %v2573_v19 = vadd.f32 %v3454_v6, %v4401_v31  ;;  %v2564_v38 = vpop.f32.mrb[121].mxu1 }
 0x2e2   : > { %v2565_v44 = vadd.f32 %v2564_v38, %v4383_v34  ;;  %v3455_v48 = vpop.f32.mrb[122].mxu1 }
 0x2e3   : > { %v2593_v20 = vmax.f32 %v2573_v19, 0.0  ;;  %v2576_v36 = vadd.f32 %v3455_v48, %v4409_v0  ;;  %v2567_v1 = vpop.f32.mrb[123].mxu1  ;;  %2614 = vxpose.xlu0.b32.cont [4/16] %v2598_v14, 128 }
 0x2e4   : > { %v2591_v43 = vmax.f32 %v2565_v44, 0.0  ;;  %v2568_v15 = vadd.f32 %v2567_v1, %v4392_v37 }
 0x2e5   : > { %v2609_v2 = vmax.f32 %v4736_v52, %v2593_v20  ;;  %v2594_v45 = vmax.f32 %v2576_v36, 0.0 }
 0x2e6   : > { %v2607_v12 = vmax.f32 %v4739_v23, %v2591_v43  ;;  %v2592_v56 = vmax.f32 %v2568_v15, 0.0 }
 0x2e7   : > { %v2610_v31 = vmax.f32 %v4742_v55, %v2594_v45  ;;  %2615 = vxpose.xlu0.b32.cont [5/16] %v2599_v46, 128 }
 0x2e8   : > { %v2608_v34 = vmax.f32 %v4745_v21, %v2592_v56 }
 0x2eb   : > { %2616 = vxpose.xlu0.b32.cont [6/16] %v2600_v60, 128 }
 0x2ef   : > { %2617 = vxpose.xlu0.b32.cont [7/16] %v2601_v11, 128 }
 0x2f3   : > { %2618 = vxpose.xlu0.b32.cont [8/16] %v2602_v9, 128 }
 0x2f7   : > { %2619 = vxpose.xlu0.b32.cont [9/16] %v2603_v49, 128 }
 0x2fb   : > { %2620 = vxpose.xlu0.b32.cont [10/16] %v2604_v18, 128 }
 0x2ff   : > { %2621 = vxpose.xlu0.b32.cont [11/16] %v2605_v40, 128 }
 0x303   : > { %2622 = vxpose.xlu0.b32.cont [12/16] %v2606_v16, 128 }
 0x307   : > { %2623 = vxpose.xlu0.b32.cont [13/16] %v2607_v12, 128 }
 0x30b   : > { %2624 = vxpose.xlu0.b32.cont [14/16] %v2608_v34, 128 }
 0x30f   : > { %2625 = vxpose.xlu0.b32.cont [15/16] %v2609_v2, 128 }
 0x313   : > { %2626 = vxpose.xlu0.b32.end [16/16] %v2610_v31, 128 }
 0x357   : > { %v2627_v37 = vpop.trf.xlu0 }
 0x358   : > { %2643 = vst [vmem:[%s4780_s10] sm:$0xff] %v2627_v37 }
 0x35b   : > { %v2628_v0 = vpop.trf.xlu0 }
 0x35c   : > { %2644 = vst [vmem:[%s4780_s10 + $0x8] sm:$0xff] %v2628_v0 }
 0x35f   : > { %v2629_v52 = vpop.trf.xlu0 }
 0x360   : > { %2645 = vst [vmem:[%s4780_s10 + $0x10] sm:$0xff] %v2629_v52 }
 0x363   : > { %v2630_v23 = vpop.trf.xlu0 }
 0x364   : > { %2646 = vst [vmem:[%s4780_s10 + $0x18] sm:$0xff] %v2630_v23 }
 0x367   : > { %v2631_v55 = vpop.trf.xlu0 }
 0x368   : > { %2647 = vst [vmem:[%s4780_s10 + $0x20] sm:$0xff] %v2631_v55 }
 0x36b   : > { %v2632_v21 = vpop.trf.xlu0 }
 0x36c   : > { %2648 = vst [vmem:[%s4780_s10 + $0x28] sm:$0xff] %v2632_v21 }
 0x36f   : > { %v2633_v32 = vpop.trf.xlu0 }
 0x370   : > { %2649 = vst [vmem:[%s4780_s10 + $0x30] sm:$0xff] %v2633_v32 }
 0x373   : > { %v2634_v35 = vpop.trf.xlu0 }
 0x374   : > { %2650 = vst [vmem:[%s4780_s10 + $0x38] sm:$0xff] %v2634_v35 }
 0x377   : > { %v2635_v25 = vpop.trf.xlu0 }
 0x378   : > { %2651 = vst [vmem:[%s4780_s10 + $0x40] sm:$0xff] %v2635_v25 }
 0x37b   : > { %v2636_v51 = vpop.trf.xlu0 }
 0x37c   : > { %2652 = vst [vmem:[%s4780_s10 + $0x48] sm:$0xff] %v2636_v51 }
 0x37f   : > { %v2637_v50 = vpop.trf.xlu0 }
 0x380   : > { %2653 = vst [vmem:[%s4780_s10 + $0x50] sm:$0xff] %v2637_v50 }
 0x383   : > { %v2638_v3 = vpop.trf.xlu0 }
 0x384   : > { %2654 = vst [vmem:[%s4780_s10 + $0x58] sm:$0xff] %v2638_v3 }
 0x387   : > { %v2639_v53 = vpop.trf.xlu0 }
 0x388   : > { %2655 = vst [vmem:[%s4780_s10 + $0x60] sm:$0xff] %v2639_v53 }
 0x38b   : > { %v2640_v27 = vpop.trf.xlu0 }
 0x38c   : > { %2656 = vst [vmem:[%s4780_s10 + $0x68] sm:$0xff] %v2640_v27 }
 0x38f   : > { %v2641_v8 = vpop.trf.xlu0 }
 0x390   : > { %2657 = vst [vmem:[%s4780_s10 + $0x70] sm:$0xff] %v2641_v8 }
 0x393   : > { %v2642_v30 = vpop.trf.xlu0 }
 0x394   : > { %2658 = vst [vmem:[%s4780_s10 + $0x78] sm:$0xff] %v2642_v30 }
 0x395   : > { %3577 = shalt.err (!%p3574_p5)
}
 0x396   : > { %s3578_s29 = scalar_lea.hbm %s4802_s16, 2048  ;;  %s3582_s13 = scalar_lea.hbm %s4860_s5, 4096 }
 0x397   : > { %p3579_p6 = scmp.ne.s32.totalorder %s4802_s16, %s3578_s29  ;;  %p3583_p10 = scmp.lt.u32.totalorder %s4802_s16, %s4860_s5 }
 0x398   : > { %p3584_p11 = scmp.lt.u32.totalorder %s3582_s13, %s3578_s29  ;;  %p3586_p13 = scmp.lt.u32.totalorder %s3578_s29, %s4802_s16 }
 0x399   : > { %p3580_p7 = pnand %p3579_p6, %p3718_p4 }
 0x39a   : > { %p3585_p12 = por %p3584_p11, %p3583_p10 }
 0x39b   : > { %p3581_p9 = pneg %p3580_p7 }
 0x39c   : > { %p3587_p0 = por %p3586_p13, %p3585_p12 }
 0x39e   : > { %p3588_p1 = pnand %p3587_p0, %p3581_p9 }
 0x3a0   : > { %3591 = shalt.err (!%p3588_p1)
}
 0x3a1   : > { %s3646_s11 = smov 128   ;;  %s3647_s14 = smov 8  }
 0x3a2   : > { %3480 = dma.vmem_to_hbm [thread:$0]  (%p3718_p4), %s4804_s12, 2048, %s4802_s16, %s4809_s17, %s3646_s11, %s3646_s11, %s3647_s14  }
 0x3a3 PF: > { %p3486_p2 = scmp.ge.s32.totalorder %s3642_s23, 2  ;;  %s2690_s15 = sand.u32 1, %s3622_s18  }
 0x3a4   : > { %s2691_s24 = scalar_lea.sflag [#allocation3], %s2690_s15 }
 0x3a5   : > { %p3483_p3 = pnand %p3486_p2, %p3725_p8 }
 0x3a7   : > { %3617 = dma.done.wait (!%p3483_p3), %s2691_s24, 2048  }
 0x3a8   : > { %3619 = vsyncadd (!%p3483_p3), %s2691_s24, 4294965248  ;;  %s18_s23 = sadd.s32 1, %s3642_s23   ;;  %s4863_s18 = smov %s3626_s19 }
 0x3a9   : > { %p15_p5 = scmp.ge.s32.totalorder %s18_s23, 4   ;;  %s4864_s19 = smov %s3630_s20 }
 0x3aa   : > { %s4865_s20 = smov %s3731_s6  ;;  %s4866_s21 = smov %s3638_s22 }
 0x3ab   : > { %s4867_s22 = smov %s4869_s26  ;;  %17 = sbr.rel (!%p15_p5) target bundleno = 4 (0x4), region = 82 }
 0x3b2   :  { %2696 = vsyncpa [#allocation3], 1 }
 0x3b3   :  { %2698 = vsyncpa [#allocation3 + $0x1], 1 }

// kernel: tpu_custom_call.1
= control target key start
LH: loop header
LB: loop body
LE: loop exit
PB: predicated region body
PF: predicated region fallthrough
CT: control target
= control target key end

     0   :  { %10 = vsyncpa [#allocation3], 0  ;;  %s4855_s0 = inlined_call_operand.vmem [shape: bf16[2,8,8,128], index: 0, kind: input, shape index: {}]   ;;  %s4856_s1 = inlined_call_operand.vmem [shape: bf16[128,8], index: 1, kind: input, shape index: {}]   ;;  %s4857_s2 = inlined_call_operand.vmem [shape: f32[128,1], index: 2, kind: input, shape index: {}]   ;;  %s4858_s3 = inlined_call_operand.vmem [shape: bf16[128,128], index: 3, kind: input, shape index: {}]   ;;  %s4859_s4 = inlined_call_operand.vmem [shape: f32[128,1], index: 4, kind: input, shape index: {}]   ;;  %s4860_s5 = inlined_call_operand.hbm [shape: f32[2,128,128], index: 5, kind: output, shape index: {}]  }
   0x1   :  { %12 = vsyncpa [#allocation3 + $0x1], 0  ;;  %s3678_s18 = smov 0   ;;  %s3680_s19 = smov 0  }
   0x2   :  { %s3682_s20 = smov 0   ;;  %s3684_s21 = smov 0  }
   0x3   :  { %s3686_s22 = smov 0   ;;  %s3688_s23 = smov 0  }
   0x4 LB: > { %s2754_s24 = sadd.s32 4294967295, %s3642_s23   ;;  %s2755_s25 = sadd.s32 4294967294, %s3642_s23   ;;  %s3642_s23 = sphi %s3688_s23, %s18_s23   ;;  %s3638_s22 = sphi %s3686_s22, %s4867_s22   ;;  %s3634_s21 = sphi %s3684_s21, %s4866_s21   ;;  %s3630_s20 = sphi %s3682_s20, %s4865_s20   ;;  %s3626_s19 = sphi %s3680_s19, %s4864_s19   ;;  %s3622_s18 = sphi %s3678_s18, %s4863_s18  }
   0x5   : > { %s30_s26 = sadd.s32 1, %s3638_s22  ;;  %s151_s27 = sadd.s32 1, %s3630_s20 }
   0x6   : > { %p32_p0 = scmp.ge.s32.totalorder %s30_s26, 2  ;;  %p161_p1 = scmp.ne.s32.totalorder %s3630_s20, %s3626_s19 }
   0x7   : > { %p162_p2 = scmp.eq.s32.totalorder %s2754_s24, 1  ;;  %p167_p3 = scmp.ne.s32.totalorder %s3626_s19, %s3622_s18 }
   0x8   : > { %s4869_s26 = smov (%p32_p0, %s30_s26), 0  ;;  %p168_p5 = scmp.eq.s32.totalorder %s2755_s25, 1 }
   0x9   : > { %p3718_p4 = por %p162_p2, %p161_p1  ;;  %s146_s29 = ssub.s32 %s3638_s22, %s4869_s26 }
   0xa   : > { %p2758_p6 = scmp.ge.s32.totalorder %s3642_s23, 1  ;;  %p149_p7 = scmp.eq.s32.totalorder %s146_s29, 0 }
   0xb   : > { %p3725_p8 = por %p168_p5, %p167_p3  ;;  %p209_p9 = scmp.lt.s32.totalorder %s3642_s23, 3 }
   0xc   : > { %s3731_s6 = scalar_select %p149_p7, %s3630_s20, %s151_s27  }
   0xd   : > { %p210_p10 = pnand %p2758_p6, %p209_p9 }
   0xe   : > { %p240_p11 = scmp.lt.s32.totalorder (!%p210_p10), %s3634_s21, 1  ;;  %v3737_v0 = vld [vmem:[%s4856_s1] sm:$0xff] (!%p210_p10)   ;;  %vm403_vm0 = vcmask (!%p210_p10), 64512   ;;  %vm428_vm1 = vcmask (!%p210_p10), 1043456   ;;  %v3644_v1 = vmov (!%p210_p10), 0   ;;  %v3754_v5 = vld [vmem:[%s4856_s1 + $0x8] sm:$0xff] (!%p210_p10)  }
   0xf   : > { %213 = sbr.rel (%p210_p10) target bundleno = 931 (0x3a3), region = 40  ;;  %3058 = vmatprep.mubr.msk.bf16.mxu0 (!%p210_p10), %vm403_vm0, %v3737_v0  ;;  %3538 = vset.pattern.permute.xlu0 (!%p210_p10), %v3644_v1  ;;  %v3759_v6 = vld [vmem:[%s4856_s1 + $0x10] sm:$0xff] (!%p210_p10)   ;;  %v267_v8 = vld [vmem:[%s4857_s2] sm:$0xff] (!%p210_p10)  ;;  %v268_v11 = vld [vmem:[%s4857_s2 + $0x8] sm:$0xff] (!%p210_p10)  ;;  %s2855_s11 = sshll.u32 (!%p210_p10), %s3634_s21, 11 }
  0x10   : > { %3539 = vset.pattern.permute.xlu1 (!%p210_p10), %v3644_v1  ;;  %285 = vperm.xlu0 (!%p210_p10), %3538, %v267_v8   ;;  %v269_v10 = vld [vmem:[%s4857_s2 + $0x10] sm:$0xff] (!%p210_p10)  ;;  %v270_v12 = vld [vmem:[%s4857_s2 + $0x18] sm:$0xff] (!%p210_p10)  ;;  %v271_v14 = vld [vmem:[%s4857_s2 + $0x20] sm:$0xff] (!%p210_p10)  ;;  %s4802_s16 = scalar_lea.hbm (!%p210_p10), %s4860_s5, %s2855_s11 }
  0x11   : > { %295 = vperm.xlu1 (!%p210_p10), %3539, %v269_v10   ;;  %v3784_v13 = vld [vmem:[%s4856_s1 + $0x18] sm:$0xff] (!%p210_p10)   ;;  %v3792_v15 = vld [vmem:[%s4856_s1 + $0x20] sm:$0xff] (!%p210_p10)   ;;  %v272_v16 = vld [vmem:[%s4857_s2 + $0x28] sm:$0xff] (!%p210_p10) }
  0x12   : > { %v273_v17 = vld [vmem:[%s4857_s2 + $0x30] sm:$0xff] (!%p210_p10)  ;;  %v274_v18 = vld [vmem:[%s4857_s2 + $0x38] sm:$0xff] (!%p210_p10)  ;;  %v3810_v19 = vld [vmem:[%s4856_s1 + $0x28] sm:$0xff] (!%p210_p10)  }
  0x13   : > { %v275_v20 = vld [vmem:[%s4857_s2 + $0x40] sm:$0xff] (!%p210_p10)  ;;  %v3818_v21 = vld [vmem:[%s4856_s1 + $0x30] sm:$0xff] (!%p210_p10)   ;;  %v276_v22 = vld [vmem:[%s4857_s2 + $0x48] sm:$0xff] (!%p210_p10) }
  0x14   : > { %290 = vperm.xlu0 (!%p210_p10), %3538, %v268_v11   ;;  %v277_v23 = vld [vmem:[%s4857_s2 + $0x50] sm:$0xff] (!%p210_p10)  ;;  %v278_v24 = vld [vmem:[%s4857_s2 + $0x58] sm:$0xff] (!%p210_p10)  ;;  %v279_v26 = vld [vmem:[%s4857_s2 + $0x60] sm:$0xff] (!%p210_p10) }
  0x15   : > { %300 = vperm.xlu1 (!%p210_p10), %3539, %v270_v12   ;;  %v3836_v25 = vld [vmem:[%s4856_s1 + $0x38] sm:$0xff] (!%p210_p10)   ;;  %v280_v27 = vld [vmem:[%s4857_s2 + $0x68] sm:$0xff] (!%p210_p10)  ;;  %v281_v28 = vld [vmem:[%s4857_s2 + $0x70] sm:$0xff] (!%p210_p10) }
  0x16   : > { %s241_s9 = scalar_select %p240_p11, %s3634_s21, 1  ;;  %v282_v29 = vld [vmem:[%s4857_s2 + $0x78] sm:$0xff]  ;;  %v569_v30 = vld [vmem:[%s4859_s4] sm:$0xff]  ;;  %v570_v31 = vld [vmem:[%s4859_s4 + $0x8] sm:$0xff] }
  0x17   : > { %v571_v34 = vld [vmem:[%s4859_s4 + $0x10] sm:$0xff]  ;;  %v572_v35 = vld [vmem:[%s4859_s4 + $0x18] sm:$0xff]  ;;  %v573_v36 = vld [vmem:[%s4859_s4 + $0x20] sm:$0xff]  ;;  %s3645_s21 = smov [#allocation2]  }
  0x18   : > { %s2854_s10 = sshll.u32 %s241_s9, 5  ;;  %305 = vperm.xlu0 %3538, %v271_v14   ;;  %v574_v37 = vld [vmem:[%s4859_s4 + $0x28] sm:$0xff]  ;;  %v575_v38 = vld [vmem:[%s4859_s4 + $0x30] sm:$0xff]  ;;  %v576_v39 = vld [vmem:[%s4859_s4 + $0x38] sm:$0xff]  ;;  %s3568_s25 = sshll.u32 %s3645_s21, 4  ;;  %s3569_s25 = int_to_ptr.vmem [resolvable:$false] %s3568_s25 }
  0x19   : > { %s3745_s13 = scalar_lea.vmem %s4855_s0, %s2854_s10  ;;  %310 = vperm.xlu1 %3539, %v272_v16   ;;  %v577_v40 = vld [vmem:[%s4859_s4 + $0x40] sm:$0xff]  ;;  %v578_v41 = vld [vmem:[%s4859_s4 + $0x48] sm:$0xff]  ;;  %v579_v42 = vld [vmem:[%s4859_s4 + $0x50] sm:$0xff]  ;;  %s3570_s27 = scalar_lea.vmem %s3569_s25, 4096 }
  0x1a   : > { %v250_v2 = vld [vmem:[%s3745_s13] sm:$0xf]  ;;  %v2786_v3 = vld [vmem:[%s3745_s13 + $0x4] sm:$0xf]  ;;  %v2795_v9 = vld [vmem:[%s3745_s13 + $0x8] sm:$0xf] }
  0x1b   : > { %3472 = vmatprep.subr.msk.bf16.mxu0 %vm428_vm1, %v250_v2  ;;  %v430_v4 = vsel %vm428_vm1, %v250_v2, 0  ;;  %v829_v7 = vsel %vm428_vm1, %v2786_v3, 0  ;;  %v1084_v32 = vsel %vm428_vm1, %v2795_v9, 0  ;;  %v2804_v33 = vld [vmem:[%s3745_s13 + $0xc] sm:$0xf]  ;;  %v580_v43 = vld [vmem:[%s4859_s4 + $0x58] sm:$0xff] }
  0x1c   : > { %3057 = vmatpush3.bf16.msra.mxu0 %v430_v4  ;;  %315 = vperm.xlu0 %3538, %v273_v17   ;;  %v581_v44 = vld [vmem:[%s4859_s4 + $0x60] sm:$0xff]  ;;  %v582_v45 = vld [vmem:[%s4859_s4 + $0x68] sm:$0xff]  ;;  %v583_v46 = vld [vmem:[%s4859_s4 + $0x70] sm:$0xff]  ;;  %v1339_v48 = vsel %vm428_vm1, %v2804_v33, 0 }
  0x1d   : > { %3473 = vmatprep.subr.msk.bf16.mxu0 %vm428_vm1, %v2786_v3  ;;  %320 = vperm.xlu1 %3539, %v274_v18   ;;  %v584_v47 = vld [vmem:[%s4859_s4 + $0x78] sm:$0xff]  ;;  %v2813_v49 = vld [vmem:[%s3745_s13 + $0x10] sm:$0xf]  ;;  %v2822_v51 = vld [vmem:[%s3745_s13 + $0x14] sm:$0xf] }
  0x1e   : > { %v1594_v50 = vsel %vm428_vm1, %v2813_v49, 0  ;;  %v3962_v52 = vld [vmem:[%s4858_s3] sm:$0xff]   ;;  %v1849_v53 = vsel %vm428_vm1, %v2822_v51, 0  ;;  %v2831_v54 = vld [vmem:[%s3745_s13 + $0x18] sm:$0xf] }
  0x1f   : > { %3059 = vmatmul.mubr.msk.bf16.vlgmr.msra.gmra.mrb[0].mxu0 %vm403_vm0, %v3754_v5  ;;  %3090 = vmatprep.mubr.bf16.mxu1 %v3962_v52  ;;  %v2104_v55 = vsel %vm428_vm1, %v2831_v54, 0  ;;  %v2840_v56 = vld [vmem:[%s3745_s13 + $0x1c] sm:$0xf]  ;;  %s237_s13 = sand.u32 1, %s3626_s19  }
  0x20   : > { %3107 = vmatpush3.bf16.msra.mxu0 %v829_v7  ;;  %3062 = vmatprep.mubr.msk.bf16.mxu0 %vm403_vm0, %v3759_v6  ;;  %v2359_v57 = vsel %vm428_vm1, %v2840_v56, 0  ;;  %s2759_s9 = sshll.u32 %s237_s13, 7  ;;  %s4809_s17 = scalar_lea.sflag [#allocation3], %s237_s13 }
  0x21   : > { %3474 = vmatprep.subr.msk.bf16.mxu0 %vm428_vm1, %v2795_v9  ;;  %325 = vperm.xlu0 %3538, %v275_v20   ;;  %s4780_s10 = scalar_lea.vmem [#allocation2], %s2759_s9 }
  0x22   : > { %330 = vperm.xlu1 %3539, %v276_v22   ;;  %s2675_s12 = sshll.u32 %s4780_s10, 4  ;;  %s4804_s12 = int_to_ptr.vmem [resolvable:$true] %s2675_s12 }
  0x23   : > { %s3564_s24 = scalar_lea.vmem %s4804_s12, 2048  ;;  %p3571_p1 = scmp.lt.s32.totalorder %s4804_s12, %s3569_s25 }
  0x24   : > { %p3565_p12 = scmp.ne.s32.totalorder %s4804_s12, %s3564_s24  ;;  %p3572_p2 = scmp.lt.s32.totalorder %s3570_s27, %s3564_s24 }
  0x25   : > { %335 = vperm.xlu0 %3538, %v277_v23  }
  0x26   : > { %340 = vperm.xlu1 %3539, %v278_v24   ;;  %p3566_p13 = pnand %p3565_p12, %p3718_p4  ;;  %p3573_p3 = por %p3572_p2, %p3571_p1 }
  0x27   : > { %3063 = vmatmul.mubr.msk.bf16.gmra.mrb[4].mxu0 %vm403_vm0, %v3784_v13 }
  0x28   : > { %3066 = vmatprep.mubr.msk.bf16.mxu0 %vm403_vm0, %v3792_v15  ;;  %p3567_p0 = pneg %p3566_p13 }
  0x29   : > { %345 = vperm.xlu0 %3538, %v279_v26  }
  0x2a   : > { %350 = vperm.xlu1 %3539, %v280_v27   ;;  %p3574_p5 = pnand %p3573_p3, %p3567_p0 }
  0x2d   : > { %355 = vperm.xlu0 %3538, %v281_v28  }
  0x2e   : > { %360 = vperm.xlu1 %3539, %v282_v29  }
  0x2f   : > { %3067 = vmatmul.mubr.msk.bf16.gmra.mrb[8].mxu0 %vm403_vm0, %v3810_v19 }
  0x30   : > { %3070 = vmatprep.mubr.msk.bf16.mxu0 %vm403_vm0, %v3818_v21 }
  0x31   : > { %587 = vperm.xlu0 %3538, %v569_v30  }
  0x32   : > { %592 = vperm.xlu1 %3539, %v570_v31  }
  0x35   : > { %597 = vperm.xlu0 %3538, %v571_v34  }
  0x36   : > { %602 = vperm.xlu1 %3539, %v572_v35  }
  0x37   : > { %3071 = vmatmul.mubr.msk.bf16.gmra.mrb[12].mxu0 %vm403_vm0, %v3836_v25 }
  0x38   : > { %3108 = vmatprep.mubr.msk.bf16.mxu0 %vm403_vm0, %v3737_v0 }
  0x39   : > { %607 = vperm.xlu0 %3538, %v573_v36  }
  0x3a   : > { %612 = vperm.xlu1 %3539, %v574_v37  }
  0x3d   : > { %617 = vperm.xlu0 %3538, %v575_v38  }
  0x3e   : > { %622 = vperm.xlu1 %3539, %v576_v39  }
  0x3f   : > { %3109 = vmatmul.mubr.msk.bf16.vlgmr.msra.gmra.mrb[16].mxu0 %vm403_vm0, %v3754_v5 }
  0x40   : > { %3157 = vmatpush3.bf16.msra.mxu0 %v1084_v32  ;;  %3112 = vmatprep.mubr.msk.bf16.mxu0 %vm403_vm0, %v3759_v6 }
  0x41   : > { %3475 = vmatprep.subr.msk.bf16.mxu0 %vm428_vm1, %v2804_v33  ;;  %627 = vperm.xlu0 %3538, %v577_v40  }
  0x42   : > { %632 = vperm.xlu1 %3539, %v578_v41  }
  0x45   : > { %637 = vperm.xlu0 %3538, %v579_v42  }
  0x46   : > { %642 = vperm.xlu1 %3539, %v580_v43  }
  0x47   : > { %3113 = vmatmul.mubr.msk.bf16.gmra.mrb[20].mxu0 %vm403_vm0, %v3784_v13 }
  0x48   : > { %3116 = vmatprep.mubr.msk.bf16.mxu0 %vm403_vm0, %v3792_v15 }
  0x49   : > { %647 = vperm.xlu0 %3538, %v581_v44  }
  0x4a   : > { %652 = vperm.xlu1 %3539, %v582_v45  }
  0x4d   : > { %657 = vperm.xlu0 %3538, %v583_v46  }
  0x4e   : > { %662 = vperm.xlu1 %3539, %v584_v47  }
  0x4f   : > { %3117 = vmatmul.mubr.msk.bf16.gmra.mrb[24].mxu0 %vm403_vm0, %v3810_v19 }
  0x50   : > { %3120 = vmatprep.mubr.msk.bf16.mxu0 %vm403_vm0, %v3818_v21 }
  0x57   : > { %3121 = vmatmul.mubr.msk.bf16.gmra.mrb[28].mxu0 %vm403_vm0, %v3836_v25 }
  0x58   : > { %3158 = vmatprep.mubr.msk.bf16.mxu0 %vm403_vm0, %v3737_v0 }
  0x5f   : > { %3159 = vmatmul.mubr.msk.bf16.vlgmr.msra.gmra.mrb[32].mxu0 %vm403_vm0, %v3754_v5 }
  0x60   : > { %3207 = vmatpush3.bf16.msra.mxu0 %v1339_v48  ;;  %3162 = vmatprep.mubr.msk.bf16.mxu0 %vm403_vm0, %v3759_v6 }
  0x61   : > { %3476 = vmatprep.subr.msk.bf16.mxu0 %vm428_vm1, %v2813_v49 }
  0x67   : > { %3163 = vmatmul.mubr.msk.bf16.gmra.mrb[36].mxu0 %vm403_vm0, %v3784_v13 }
  0x68   : > { %3166 = vmatprep.mubr.msk.bf16.mxu0 %vm403_vm0, %v3792_v15 }
  0x6f   : > { %3167 = vmatmul.mubr.msk.bf16.gmra.mrb[40].mxu0 %vm403_vm0, %v3810_v19 }
  0x70   : > { %3170 = vmatprep.mubr.msk.bf16.mxu0 %vm403_vm0, %v3818_v21 }
  0x77   : > { %3171 = vmatmul.mubr.msk.bf16.gmra.mrb[44].mxu0 %vm403_vm0, %v3836_v25 }
  0x78   : > { %3208 = vmatprep.mubr.msk.bf16.mxu0 %vm403_vm0, %v3737_v0 }
  0x7f   : > { %3209 = vmatmul.mubr.msk.bf16.vlgmr.msra.gmra.mrb[48].mxu0 %vm403_vm0, %v3754_v5 }
  0x80   : > { %3257 = vmatpush3.bf16.msra.mxu0 %v1594_v50  ;;  %3212 = vmatprep.mubr.msk.bf16.mxu0 %vm403_vm0, %v3759_v6 }
  0x81   : > { %3477 = vmatprep.subr.msk.bf16.mxu0 %vm428_vm1, %v2822_v51 }
  0x87   : > { %3213 = vmatmul.mubr.msk.bf16.gmra.mrb[52].mxu0 %vm403_vm0, %v3784_v13 }
  0x88   : > { %3216 = vmatprep.mubr.msk.bf16.mxu0 %vm403_vm0, %v3792_v15 }
  0x8f   : > { %3217 = vmatmul.mubr.msk.bf16.gmra.mrb[56].mxu0 %vm403_vm0, %v3810_v19  ;;  %v4006_v58 = vpop.permute.xlu0 %285 }
  0x90   : > { %3220 = vmatprep.mubr.msk.bf16.mxu0 %vm403_vm0, %v3818_v21  ;;  %v4010_v59 = vpop.permute.xlu1 %295 }
  0x93   : > { %v4012_v60 = vpop.permute.xlu0 %290 }
  0x94   : > { %v4016_v61 = vpop.permute.xlu1 %300 }
  0x97   : > { %3221 = vmatmul.mubr.msk.bf16.gmra.mrb[60].mxu0 %vm403_vm0, %v3836_v25  ;;  %v4020_v62 = vpop.permute.xlu0 %305 }
  0x98   : > { %3258 = vmatprep.mubr.msk.bf16.mxu0 %vm403_vm0, %v3737_v0  ;;  %v4022_v63 = vpop.permute.xlu1 %310 }
  0x9b   : > { %v4028_v1 = vpop.permute.xlu0 %315 }
  0x9c   : > { %v4031_v7 = vpop.permute.xlu1 %320 }
  0x9f   : > { %3259 = vmatmul.mubr.msk.bf16.vlgmr.msra.gmra.mrb[64].mxu0 %vm403_vm0, %v3754_v5 }
  0xa0   : > { %3307 = vmatpush3.bf16.msra.mxu0 %v1849_v53  ;;  %3262 = vmatprep.mubr.msk.bf16.mxu0 %vm403_vm0, %v3759_v6  ;;  %v4038_v17 = vpop.permute.xlu0 %325 }
  0xa1   : > { %3478 = vmatprep.subr.msk.bf16.mxu0 %vm428_vm1, %v2831_v54  ;;  %v4042_v23 = vpop.permute.xlu1 %330 }
  0xa4   : > { %v4047_v33 = vpop.permute.xlu0 %335 }
  0xa5   : > { %v4052_v36 = vpop.permute.xlu1 %340 }
  0xa7   : > { %3263 = vmatmul.mubr.msk.bf16.gmra.mrb[68].mxu0 %vm403_vm0, %v3784_v13 }
  0xa8   : > { %3266 = vmatprep.mubr.msk.bf16.mxu0 %vm403_vm0, %v3792_v15  ;;  %v4057_v44 = vpop.permute.xlu0 %345 }
  0xa9   : > { %v4061_v48 = vpop.permute.xlu1 %350 }
  0xaf   : > { %3267 = vmatmul.mubr.msk.bf16.gmra.mrb[72].mxu0 %vm403_vm0, %v3810_v19 }
  0xb0   : > { %3270 = vmatprep.mubr.msk.bf16.mxu0 %vm403_vm0, %v3818_v21 }
  0xb7   : > { %3271 = vmatmul.mubr.msk.bf16.gmra.mrb[76].mxu0 %vm403_vm0, %v3836_v25 }
  0xb8   : > { %3308 = vmatprep.mubr.msk.bf16.mxu0 %vm403_vm0, %v3737_v0 }
  0xbf   : > { %3309 = vmatmul.mubr.msk.bf16.vlgmr.msra.gmra.mrb[80].mxu0 %vm403_vm0, %v3754_v5 }
  0xc0   : > { %3357 = vmatpush3.bf16.msra.mxu0 %v2104_v55  ;;  %3312 = vmatprep.mubr.msk.bf16.mxu0 %vm403_vm0, %v3759_v6  ;;  %v4068_v55 = vpop.permute.xlu0 %355 }
  0xc1   : > { %3479 = vmatprep.subr.msk.bf16.mxu0 %vm428_vm1, %v2840_v56 }
  0xc7   : > { %3313 = vmatmul.mubr.msk.bf16.gmra.mrb[84].mxu0 %vm403_vm0, %v3784_v13 }
  0xc8   : > { %3316 = vmatprep.mubr.msk.bf16.mxu0 %vm403_vm0, %v3792_v15 }
  0xcf   : > { %3317 = vmatmul.mubr.msk.bf16.gmra.mrb[88].mxu0 %vm403_vm0, %v3810_v19 }
  0xd0   : > { %3320 = vmatprep.mubr.msk.bf16.mxu0 %vm403_vm0, %v3818_v21 }
  0xd7   : > { %3321 = vmatmul.mubr.msk.bf16.gmra.mrb[92].mxu0 %vm403_vm0, %v3836_v25 }
  0xd8   : > { %3358 = vmatprep.mubr.msk.bf16.mxu0 %vm403_vm0, %v3737_v0 }
  0xdf   : > { %3359 = vmatmul.mubr.msk.bf16.vlgmr.msra.gmra.mrb[96].mxu0 %vm403_vm0, %v3754_v5 }
  0xe0   : > { %3407 = vmatpush3.bf16.msra.mxu0 %v2359_v57  ;;  %3362 = vmatprep.mubr.msk.bf16.mxu0 %vm403_vm0, %v3759_v6 }
  0xe7   : > { %3363 = vmatmul.mubr.msk.bf16.gmra.mrb[100].mxu0 %vm403_vm0, %v3784_v13 }
  0xe8   : > { %3366 = vmatprep.mubr.msk.bf16.mxu0 %vm403_vm0, %v3792_v15 }
  0xef   : > { %3367 = vmatmul.mubr.msk.bf16.gmra.mrb[104].mxu0 %vm403_vm0, %v3810_v19 }
  0xf0   : > { %3370 = vmatprep.mubr.msk.bf16.mxu0 %vm403_vm0, %v3818_v21 }
  0xf2   : > { %v3060_v2 = vpop.f32.mrb[0].mxu0 }
  0xf3   : > { %v475_v3 = vadd.f32 %v3060_v2, %v4010_v59  ;;  %v466_v4 = vpop.f32.mrb[1].mxu0 }
  0xf4   : > { %v467_v8 = vadd.f32 %v466_v4, %v4006_v58  ;;  %v3061_v9 = vpop.f32.mrb[2].mxu0  ;;  %v4071_v4 = vpop.permute.xlu1 %360 }
  0xf5   : > { %v478_v10 = vadd.f32 %v3061_v9, %v4016_v61  ;;  %v469_v11 = vpop.f32.mrb[3].mxu0  ;;  %v531_v14 = vmax.f32 %v475_v3, 0.0 }
  0xf6   : > { %v470_v12 = vadd.f32 %v469_v11, %v4012_v60  ;;  %v529_v18 = vmax.f32 %v467_v8, 0.0 }
  0xf7   : > { %v532_v16 = vmax.f32 %v478_v10, 0.0  ;;  %3371 = vmatmul.mubr.msk.bf16.gmra.mrb[108].mxu0 %vm403_vm0, %v3836_v25 }
  0xf8   : > { %v530_v20 = vmax.f32 %v470_v12, 0.0  ;;  %3408 = vmatprep.mubr.msk.bf16.mxu0 %vm403_vm0, %v3737_v0 }
  0xf9   : > { %v546_v22 = vpack.c.bf16 %v532_v16, %v531_v14 }
  0xfa   : > { %v3064_v24 = vpop.f32.mrb[4].mxu0  ;;  %v545_v26 = vpack.c.bf16 %v530_v20, %v529_v18 }
  0xfb   : > { %v491_v27 = vadd.f32 %v3064_v24, %v4028_v1  ;;  %v482_v28 = vpop.f32.mrb[5].mxu0 }
  0xfc   : > { %v483_v29 = vadd.f32 %v482_v28, %v4020_v62  ;;  %v3065_v30 = vpop.f32.mrb[6].mxu0  ;;  %3074 = vmatprep.subr.bf16.mxu1 %v545_v26 }
  0xfd   : > { %v494_v31 = vadd.f32 %v3065_v30, %v4031_v7  ;;  %v485_v32 = vpop.f32.mrb[7].mxu0  ;;  %3075 = vmatpush3.bf16.msra.mxu1 %v545_v26  ;;  %v535_v34 = vmax.f32 %v491_v27, 0.0 }
  0xfe   : > { %v486_v0 = vadd.f32 %v485_v32, %v4022_v63  ;;  %3076 = vmatprep.subr.bf16.mxu1 %v546_v22  ;;  %v533_v37 = vmax.f32 %v483_v29, 0.0 }
  0xff   : > { %v536_v35 = vmax.f32 %v494_v31, 0.0  ;;  %3409 = vmatmul.mubr.msk.bf16.vlgmr.msra.gmra.mrb[112].mxu0 %vm403_vm0, %v3754_v5 }
 0x100   : > { %v534_v38 = vmax.f32 %v486_v0, 0.0  ;;  %3412 = vmatprep.mubr.msk.bf16.mxu0 %vm403_vm0, %v3759_v6 }
 0x101   : > { %v548_v39 = vpack.c.bf16 %v536_v35, %v535_v34  ;;  %3077 = vmatpush3.bf16.msra.mxu1 %v546_v22  ;;  %v4089_v34 = vld [vmem:[%s4858_s3 + $0x8] sm:$0xff]  }
 0x102   : > { %v547_v40 = vpack.c.bf16 %v534_v38, %v533_v37  ;;  %v3068_v41 = vpop.f32.mrb[8].mxu0  ;;  %v4095_v37 = vld [vmem:[%s4858_s3 + $0x10] sm:$0xff]  }
 0x103   : > { %v507_v42 = vadd.f32 %v3068_v41, %v4047_v33  ;;  %v498_v43 = vpop.f32.mrb[9].mxu0 }
 0x104   : > { %v499_v45 = vadd.f32 %v498_v43, %v4038_v17  ;;  %v3069_v46 = vpop.f32.mrb[10].mxu0  ;;  %3078 = vmatprep.subr.bf16.mxu1 %v547_v40 }
 0x105   : > { %v510_v5 = vadd.f32 %v3069_v46, %v4052_v36  ;;  %v501_v47 = vpop.f32.mrb[11].mxu0  ;;  %3079 = vmatpush3.bf16.msra.mxu1 %v547_v40  ;;  %v539_v49 = vmax.f32 %v507_v42, 0.0 }
 0x106   : > { %v502_v6 = vadd.f32 %v501_v47, %v4042_v23  ;;  %3080 = vmatprep.subr.bf16.mxu1 %v548_v39  ;;  %v537_v51 = vmax.f32 %v499_v45, 0.0 }
 0x107   : > { %v540_v50 = vmax.f32 %v510_v5, 0.0  ;;  %3413 = vmatmul.mubr.msk.bf16.gmra.mrb[116].mxu0 %vm403_vm0, %v3784_v13 }
 0x108   : > { %v538_v53 = vmax.f32 %v502_v6, 0.0  ;;  %3416 = vmatprep.mubr.msk.bf16.mxu0 %vm403_vm0, %v3792_v15 }
 0x109   : > { %v550_v54 = vpack.c.bf16 %v540_v50, %v539_v49  ;;  %3081 = vmatpush3.bf16.msra.mxu1 %v548_v39  ;;  %v4106_v50 = vld [vmem:[%s4858_s3 + $0x18] sm:$0xff]  }
 0x10a   : > { %v549_v56 = vpack.c.bf16 %v538_v53, %v537_v51  ;;  %v3072_v57 = vpop.f32.mrb[12].mxu0  ;;  %v4111_v53 = vld [vmem:[%s4858_s3 + $0x20] sm:$0xff]  }
 0x10b   : > { %v523_v2 = vadd.f32 %v3072_v57, %v4068_v55  ;;  %v514_v3 = vpop.f32.mrb[13].mxu0 }
 0x10c   : > { %v515_v8 = vadd.f32 %v514_v3, %v4057_v44  ;;  %v3073_v9 = vpop.f32.mrb[14].mxu0  ;;  %3082 = vmatprep.subr.bf16.mxu1 %v549_v56 }
 0x10d   : > { %v526_v13 = vadd.f32 %v3073_v9, %v4071_v4  ;;  %v517_v10 = vpop.f32.mrb[15].mxu0  ;;  %3083 = vmatpush3.bf16.msra.mxu1 %v549_v56  ;;  %v543_v11 = vmax.f32 %v523_v2, 0.0 }
 0x10e   : > { %v518_v15 = vadd.f32 %v517_v10, %v4061_v48  ;;  %3084 = vmatprep.subr.bf16.mxu1 %v550_v54  ;;  %v541_v14 = vmax.f32 %v515_v8, 0.0 }
 0x10f   : > { %v544_v12 = vmax.f32 %v526_v13, 0.0  ;;  %3417 = vmatmul.mubr.msk.bf16.gmra.mrb[120].mxu0 %vm403_vm0, %v3810_v19 }
 0x110   : > { %v542_v16 = vmax.f32 %v518_v15, 0.0  ;;  %3420 = vmatprep.mubr.msk.bf16.mxu0 %vm403_vm0, %v3818_v21 }
 0x111   : > { %v552_v18 = vpack.c.bf16 %v544_v12, %v543_v11  ;;  %3085 = vmatpush3.bf16.msra.mxu1 %v550_v54 }
 0x112   : > { %v551_v20 = vpack.c.bf16 %v542_v16, %v541_v14  ;;  %v3110_v22 = vpop.f32.mrb[16].mxu0  ;;  %v4122_v16 = vld [vmem:[%s4858_s3 + $0x28] sm:$0xff]  }
 0x113   : > { %v874_v24 = vadd.f32 %v3110_v22, %v4010_v59  ;;  %v865_v26 = vpop.f32.mrb[17].mxu0 }
 0x114   : > { %v866_v27 = vadd.f32 %v865_v26, %v4006_v58  ;;  %3086 = vmatprep.subr.bf16.mxu1 %v551_v20  ;;  %v3111_v28 = vpop.f32.mrb[18].mxu0 }
 0x115   : > { %v877_v29 = vadd.f32 %v3111_v28, %v4016_v61  ;;  %3087 = vmatpush3.bf16.msra.mxu1 %v551_v20  ;;  %v868_v19 = vpop.f32.mrb[19].mxu0  ;;  %v930_v31 = vmax.f32 %v874_v24, 0.0  ;;  %v4127_v20 = vld [vmem:[%s4858_s3 + $0x30] sm:$0xff]  }
 0x116   : > { %v869_v30 = vadd.f32 %v868_v19, %v4012_v60  ;;  %3088 = vmatprep.subr.bf16.mxu1 %v552_v18  ;;  %v928_v32 = vmax.f32 %v866_v27, 0.0 }
 0x117   : > { %v931_v21 = vmax.f32 %v877_v29, 0.0  ;;  %3421 = vmatmul.mubr.msk.bf16.gmra.mrb[124].mxu0 %vm403_vm0, %v3836_v25 }
 0x118   : > { %v929_v0 = vmax.f32 %v869_v30, 0.0  ;;  %3440 = vmatprep.mubr.bf16.mxu0 %v3962_v52 }
 0x119   : > { %v945_v35 = vpack.c.bf16 %v931_v21, %v930_v31  ;;  %3089 = vmatpush3.bf16.msra.mxu1 %v552_v18 }
 0x11a   : > { %v944_v38 = vpack.c.bf16 %v929_v0, %v928_v32  ;;  %v3114_v39 = vpop.f32.mrb[20].mxu0 }
 0x11b   : > { %v890_v25 = vadd.f32 %v3114_v39, %v4028_v1  ;;  %v881_v40 = vpop.f32.mrb[21].mxu0 }
 0x11c   : > { %v882_v41 = vadd.f32 %v881_v40, %v4020_v62  ;;  %3091 = vmatmul.mubr.bf16.vlgmr.msra.gmra.mrb[0].mxu1 %v4089_v34  ;;  %v3115_v42 = vpop.f32.mrb[22].mxu0  ;;  %3124 = vmatprep.subr.bf16.mxu1 %v944_v38 }
 0x11d   : > { %v893_v43 = vadd.f32 %v3115_v42, %v4031_v7  ;;  %v884_v45 = vpop.f32.mrb[23].mxu0  ;;  %3125 = vmatpush3.bf16.msra.mxu1 %v944_v38  ;;  %3094 = vmatprep.mubr.bf16.mxu1 %v4095_v37  ;;  %v934_v5 = vmax.f32 %v890_v25, 0.0  ;;  %v4138_v38 = vld [vmem:[%s4858_s3 + $0x38] sm:$0xff]  }
 0x11e   : > { %v885_v46 = vadd.f32 %v884_v45, %v4022_v63  ;;  %3126 = vmatprep.subr.bf16.mxu1 %v945_v35  ;;  %v932_v6 = vmax.f32 %v882_v41, 0.0 }
 0x11f   : > { %v935_v47 = vmax.f32 %v893_v43, 0.0 }
 0x120   : > { %v933_v49 = vmax.f32 %v885_v46, 0.0 }
 0x121   : > { %v947_v51 = vpack.c.bf16 %v935_v47, %v934_v5  ;;  %3127 = vmatpush3.bf16.msra.mxu1 %v945_v35 }
 0x122   : > { %v946_v54 = vpack.c.bf16 %v933_v49, %v932_v6  ;;  %v3118_v56 = vpop.f32.mrb[24].mxu0 }
 0x123   : > { %v906_v57 = vadd.f32 %v3118_v56, %v4047_v33  ;;  %v897_v2 = vpop.f32.mrb[25].mxu0 }
 0x124   : > { %v898_v3 = vadd.f32 %v897_v2, %v4038_v17  ;;  %3095 = vmatmul.mubr.bf16.gmra.mrb[4].mxu1 %v4106_v50  ;;  %v3119_v8 = vpop.f32.mrb[26].mxu0  ;;  %3128 = vmatprep.subr.bf16.mxu1 %v946_v54 }
 0x125   : > { %v909_v9 = vadd.f32 %v3119_v8, %v4052_v36  ;;  %v900_v13 = vpop.f32.mrb[27].mxu0  ;;  %3129 = vmatpush3.bf16.msra.mxu1 %v946_v54  ;;  %3098 = vmatprep.mubr.bf16.mxu1 %v4111_v53  ;;  %v938_v15 = vmax.f32 %v906_v57, 0.0 }
 0x126   : > { %v901_v10 = vadd.f32 %v900_v13, %v4042_v23  ;;  %3130 = vmatprep.subr.bf16.mxu1 %v947_v51  ;;  %v936_v12 = vmax.f32 %v898_v3, 0.0 }
 0x127   : > { %v939_v11 = vmax.f32 %v909_v9, 0.0 }
 0x128   : > { %v937_v14 = vmax.f32 %v901_v10, 0.0 }
 0x129   : > { %v949_v18 = vpack.c.bf16 %v939_v11, %v938_v15  ;;  %3131 = vmatpush3.bf16.msra.mxu1 %v947_v51 }
 0x12a   : > { %v948_v22 = vpack.c.bf16 %v937_v14, %v936_v12  ;;  %v3122_v24 = vpop.f32.mrb[28].mxu0 }
 0x12b   : > { %v922_v26 = vadd.f32 %v3122_v24, %v4068_v55  ;;  %v913_v27 = vpop.f32.mrb[29].mxu0 }
 0x12c   : > { %v914_v28 = vadd.f32 %v913_v27, %v4057_v44  ;;  %3099 = vmatmul.mubr.bf16.gmra.mrb[8].mxu1 %v4122_v16  ;;  %v3123_v29 = vpop.f32.mrb[30].mxu0  ;;  %3132 = vmatprep.subr.bf16.mxu1 %v948_v22 }
 0x12d   : > { %v925_v19 = vadd.f32 %v3123_v29, %v4071_v4  ;;  %v916_v30 = vpop.f32.mrb[31].mxu0  ;;  %3133 = vmatpush3.bf16.msra.mxu1 %v948_v22  ;;  %3102 = vmatprep.mubr.bf16.mxu1 %v4127_v20  ;;  %v942_v21 = vmax.f32 %v922_v26, 0.0 }
 0x12e   : > { %v917_v31 = vadd.f32 %v916_v30, %v4061_v48  ;;  %3134 = vmatprep.subr.bf16.mxu1 %v949_v18  ;;  %v940_v0 = vmax.f32 %v914_v28, 0.0 }
 0x12f   : > { %v943_v32 = vmax.f32 %v925_v19, 0.0 }
 0x130   : > { %v941_v35 = vmax.f32 %v917_v31, 0.0 }
 0x131   : > { %v951_v39 = vpack.c.bf16 %v943_v32, %v942_v21  ;;  %3135 = vmatpush3.bf16.msra.mxu1 %v949_v18 }
 0x132   : > { %v950_v25 = vpack.c.bf16 %v941_v35, %v940_v0  ;;  %v3160_v40 = vpop.f32.mrb[32].mxu0 }
 0x133   : > { %v1129_v41 = vadd.f32 %v3160_v40, %v4010_v59  ;;  %v1120_v42 = vpop.f32.mrb[33].mxu0 }
 0x134   : > { %v1121_v43 = vadd.f32 %v1120_v42, %v4006_v58  ;;  %3103 = vmatmul.mubr.bf16.gmra.mrb[12].mxu1 %v4138_v38  ;;  %3136 = vmatprep.subr.bf16.mxu1 %v950_v25  ;;  %v3161_v45 = vpop.f32.mrb[34].mxu0 }
 0x135   : > { %v1132_v46 = vadd.f32 %v3161_v45, %v4016_v61  ;;  %3137 = vmatpush3.bf16.msra.mxu1 %v950_v25  ;;  %v1123_v5 = vpop.f32.mrb[35].mxu0  ;;  %3140 = vmatprep.mubr.bf16.mxu1 %v3962_v52  ;;  %v1185_v6 = vmax.f32 %v1129_v41, 0.0 }
 0x136   : > { %v1124_v47 = vadd.f32 %v1123_v5, %v4012_v60  ;;  %3138 = vmatprep.subr.bf16.mxu1 %v951_v39  ;;  %v1183_v51 = vmax.f32 %v1121_v43, 0.0 }
 0x137   : > { %v1186_v49 = vmax.f32 %v1132_v46, 0.0 }
 0x138   : > { %v1184_v54 = vmax.f32 %v1124_v47, 0.0 }
 0x139   : > { %v1200_v56 = vpack.c.bf16 %v1186_v49, %v1185_v6  ;;  %3139 = vmatpush3.bf16.msra.mxu1 %v951_v39 }
 0x13a   : > { %v1199_v57 = vpack.c.bf16 %v1184_v54, %v1183_v51  ;;  %v3164_v2 = vpop.f32.mrb[36].mxu0 }
 0x13b   : > { %v1145_v3 = vadd.f32 %v3164_v2, %v4028_v1  ;;  %v1136_v8 = vpop.f32.mrb[37].mxu0 }
 0x13c   : > { %v1137_v9 = vadd.f32 %v1136_v8, %v4020_v62  ;;  %3141 = vmatmul.mubr.bf16.vlgmr.msra.gmra.mrb[16].mxu1 %v4089_v34  ;;  %v3165_v13 = vpop.f32.mrb[38].mxu0  ;;  %3174 = vmatprep.subr.bf16.mxu1 %v1199_v57 }
 0x13d   : > { %v1148_v10 = vadd.f32 %v3165_v13, %v4031_v7  ;;  %v1139_v15 = vpop.f32.mrb[39].mxu0  ;;  %3175 = vmatpush3.bf16.msra.mxu1 %v1199_v57  ;;  %3144 = vmatprep.mubr.bf16.mxu1 %v4095_v37  ;;  %v1189_v12 = vmax.f32 %v1145_v3, 0.0 }
 0x13e   : > { %v1140_v11 = vadd.f32 %v1139_v15, %v4022_v63  ;;  %3176 = vmatprep.subr.bf16.mxu1 %v1200_v56  ;;  %v1187_v18 = vmax.f32 %v1137_v9, 0.0 }
 0x13f   : > { %v1190_v14 = vmax.f32 %v1148_v10, 0.0 }
 0x140   : > { %v1188_v22 = vmax.f32 %v1140_v11, 0.0 }
 0x141   : > { %v1202_v24 = vpack.c.bf16 %v1190_v14, %v1189_v12  ;;  %3177 = vmatpush3.bf16.msra.mxu1 %v1200_v56 }
 0x142   : > { %v1201_v26 = vpack.c.bf16 %v1188_v22, %v1187_v18  ;;  %v3168_v27 = vpop.f32.mrb[40].mxu0 }
 0x143   : > { %v1161_v28 = vadd.f32 %v3168_v27, %v4047_v33  ;;  %v1152_v29 = vpop.f32.mrb[41].mxu0 }
 0x144   : > { %v1153_v19 = vadd.f32 %v1152_v29, %v4038_v17  ;;  %3145 = vmatmul.mubr.bf16.gmra.mrb[20].mxu1 %v4106_v50  ;;  %v3169_v30 = vpop.f32.mrb[42].mxu0  ;;  %3178 = vmatprep.subr.bf16.mxu1 %v1201_v26 }
 0x145   : > { %v1164_v31 = vadd.f32 %v3169_v30, %v4052_v36  ;;  %v1155_v21 = vpop.f32.mrb[43].mxu0  ;;  %3179 = vmatpush3.bf16.msra.mxu1 %v1201_v26  ;;  %3148 = vmatprep.mubr.bf16.mxu1 %v4111_v53  ;;  %v1193_v0 = vmax.f32 %v1161_v28, 0.0 }
 0x146   : > { %v1156_v32 = vadd.f32 %v1155_v21, %v4042_v23  ;;  %3180 = vmatprep.subr.bf16.mxu1 %v1202_v24  ;;  %v1191_v39 = vmax.f32 %v1153_v19, 0.0 }
 0x147   : > { %v1194_v35 = vmax.f32 %v1164_v31, 0.0 }
 0x148   : > { %v1192_v25 = vmax.f32 %v1156_v32, 0.0 }
 0x149   : > { %v1204_v40 = vpack.c.bf16 %v1194_v35, %v1193_v0  ;;  %3181 = vmatpush3.bf16.msra.mxu1 %v1202_v24 }
 0x14a   : > { %v1203_v41 = vpack.c.bf16 %v1192_v25, %v1191_v39  ;;  %v3172_v42 = vpop.f32.mrb[44].mxu0 }
 0x14b   : > { %v1177_v43 = vadd.f32 %v3172_v42, %v4068_v55  ;;  %v1168_v45 = vpop.f32.mrb[45].mxu0 }
 0x14c   : > { %v1169_v46 = vadd.f32 %v1168_v45, %v4057_v44  ;;  %3149 = vmatmul.mubr.bf16.gmra.mrb[24].mxu1 %v4122_v16  ;;  %v3173_v5 = vpop.f32.mrb[46].mxu0  ;;  %3182 = vmatprep.subr.bf16.mxu1 %v1203_v41 }
 0x14d   : > { %v1180_v47 = vadd.f32 %v3173_v5, %v4071_v4  ;;  %v1171_v6 = vpop.f32.mrb[47].mxu0  ;;  %3183 = vmatpush3.bf16.msra.mxu1 %v1203_v41  ;;  %3152 = vmatprep.mubr.bf16.mxu1 %v4127_v20  ;;  %v1197_v51 = vmax.f32 %v1177_v43, 0.0 }
 0x14e   : > { %v1172_v49 = vadd.f32 %v1171_v6, %v4061_v48  ;;  %3184 = vmatprep.subr.bf16.mxu1 %v1204_v40  ;;  %v1195_v56 = vmax.f32 %v1169_v46, 0.0 }
 0x14f   : > { %v1198_v54 = vmax.f32 %v1180_v47, 0.0 }
 0x150   : > { %v1196_v57 = vmax.f32 %v1172_v49, 0.0 }
 0x151   : > { %v1206_v2 = vpack.c.bf16 %v1198_v54, %v1197_v51  ;;  %3185 = vmatpush3.bf16.msra.mxu1 %v1204_v40 }
 0x152   : > { %v1205_v3 = vpack.c.bf16 %v1196_v57, %v1195_v56  ;;  %v3210_v8 = vpop.f32.mrb[48].mxu0 }
 0x153   : > { %v1384_v9 = vadd.f32 %v3210_v8, %v4010_v59  ;;  %v1375_v13 = vpop.f32.mrb[49].mxu0 }
 0x154   : > { %v1376_v10 = vadd.f32 %v1375_v13, %v4006_v58  ;;  %3153 = vmatmul.mubr.bf16.gmra.mrb[28].mxu1 %v4138_v38  ;;  %3186 = vmatprep.subr.bf16.mxu1 %v1205_v3  ;;  %v3211_v15 = vpop.f32.mrb[50].mxu0 }
 0x155   : > { %v1387_v11 = vadd.f32 %v3211_v15, %v4016_v61  ;;  %3187 = vmatpush3.bf16.msra.mxu1 %v1205_v3  ;;  %v1378_v12 = vpop.f32.mrb[51].mxu0  ;;  %3190 = vmatprep.mubr.bf16.mxu1 %v3962_v52  ;;  %v1440_v18 = vmax.f32 %v1384_v9, 0.0 }
 0x156   : > { %v1379_v14 = vadd.f32 %v1378_v12, %v4012_v60  ;;  %3188 = vmatprep.subr.bf16.mxu1 %v1206_v2  ;;  %v1438_v24 = vmax.f32 %v1376_v10, 0.0 }
 0x157   : > { %v1441_v22 = vmax.f32 %v1387_v11, 0.0 }
 0x158   : > { %v1439_v26 = vmax.f32 %v1379_v14, 0.0 }
 0x159   : > { %v1455_v27 = vpack.c.bf16 %v1441_v22, %v1440_v18  ;;  %3189 = vmatpush3.bf16.msra.mxu1 %v1206_v2 }
 0x15a   : > { %v1454_v28 = vpack.c.bf16 %v1439_v26, %v1438_v24  ;;  %v3214_v29 = vpop.f32.mrb[52].mxu0 }
 0x15b   : > { %v1400_v19 = vadd.f32 %v3214_v29, %v4028_v1  ;;  %v1391_v30 = vpop.f32.mrb[53].mxu0 }
 0x15c   : > { %v1392_v31 = vadd.f32 %v1391_v30, %v4020_v62  ;;  %3191 = vmatmul.mubr.bf16.vlgmr.msra.gmra.mrb[32].mxu1 %v4089_v34  ;;  %v3215_v21 = vpop.f32.mrb[54].mxu0  ;;  %3224 = vmatprep.subr.bf16.mxu1 %v1454_v28 }
 0x15d   : > { %v1403_v32 = vadd.f32 %v3215_v21, %v4031_v7  ;;  %v1394_v0 = vpop.f32.mrb[55].mxu0  ;;  %3225 = vmatpush3.bf16.msra.mxu1 %v1454_v28  ;;  %3194 = vmatprep.mubr.bf16.mxu1 %v4095_v37  ;;  %v1444_v39 = vmax.f32 %v1400_v19, 0.0 }
 0x15e   : > { %v1395_v35 = vadd.f32 %v1394_v0, %v4022_v63  ;;  %3226 = vmatprep.subr.bf16.mxu1 %v1455_v27  ;;  %v1442_v40 = vmax.f32 %v1392_v31, 0.0 }
 0x15f   : > { %v1445_v25 = vmax.f32 %v1403_v32, 0.0 }
 0x160   : > { %v1443_v41 = vmax.f32 %v1395_v35, 0.0 }
 0x161   : > { %v1457_v42 = vpack.c.bf16 %v1445_v25, %v1444_v39  ;;  %3227 = vmatpush3.bf16.msra.mxu1 %v1455_v27 }
 0x162   : > { %v1456_v43 = vpack.c.bf16 %v1443_v41, %v1442_v40  ;;  %v3218_v45 = vpop.f32.mrb[56].mxu0 }
 0x163   : > { %v1416_v46 = vadd.f32 %v3218_v45, %v4047_v33  ;;  %v1407_v5 = vpop.f32.mrb[57].mxu0 }
 0x164   : > { %v1408_v47 = vadd.f32 %v1407_v5, %v4038_v17  ;;  %3195 = vmatmul.mubr.bf16.gmra.mrb[36].mxu1 %v4106_v50  ;;  %v3219_v6 = vpop.f32.mrb[58].mxu0  ;;  %3228 = vmatprep.subr.bf16.mxu1 %v1456_v43 }
 0x165   : > { %v1419_v49 = vadd.f32 %v3219_v6, %v4052_v36  ;;  %v1410_v51 = vpop.f32.mrb[59].mxu0  ;;  %3229 = vmatpush3.bf16.msra.mxu1 %v1456_v43  ;;  %3198 = vmatprep.mubr.bf16.mxu1 %v4111_v53  ;;  %v1448_v56 = vmax.f32 %v1416_v46, 0.0 }
 0x166   : > { %v1411_v54 = vadd.f32 %v1410_v51, %v4042_v23  ;;  %3230 = vmatprep.subr.bf16.mxu1 %v1457_v42  ;;  %v1446_v2 = vmax.f32 %v1408_v47, 0.0 }
 0x167   : > { %v1449_v57 = vmax.f32 %v1419_v49, 0.0 }
 0x168   : > { %v1447_v3 = vmax.f32 %v1411_v54, 0.0 }
 0x169   : > { %v1459_v8 = vpack.c.bf16 %v1449_v57, %v1448_v56  ;;  %3231 = vmatpush3.bf16.msra.mxu1 %v1457_v42 }
 0x16a   : > { %v1458_v9 = vpack.c.bf16 %v1447_v3, %v1446_v2  ;;  %v3222_v13 = vpop.f32.mrb[60].mxu0 }
 0x16b   : > { %v1432_v10 = vadd.f32 %v3222_v13, %v4068_v55  ;;  %v1423_v15 = vpop.f32.mrb[61].mxu0 }
 0x16c   : > { %v1424_v11 = vadd.f32 %v1423_v15, %v4057_v44  ;;  %3199 = vmatmul.mubr.bf16.gmra.mrb[40].mxu1 %v4122_v16  ;;  %v3223_v12 = vpop.f32.mrb[62].mxu0  ;;  %3232 = vmatprep.subr.bf16.mxu1 %v1458_v9 }
 0x16d   : > { %v1435_v14 = vadd.f32 %v3223_v12, %v4071_v4  ;;  %v1426_v18 = vpop.f32.mrb[63].mxu0  ;;  %3233 = vmatpush3.bf16.msra.mxu1 %v1458_v9  ;;  %3202 = vmatprep.mubr.bf16.mxu1 %v4127_v20  ;;  %v1452_v24 = vmax.f32 %v1432_v10, 0.0 }
 0x16e   : > { %v1427_v22 = vadd.f32 %v1426_v18, %v4061_v48  ;;  %3234 = vmatprep.subr.bf16.mxu1 %v1459_v8  ;;  %v1450_v27 = vmax.f32 %v1424_v11, 0.0 }
 0x16f   : > { %v1453_v26 = vmax.f32 %v1435_v14, 0.0 }
 0x170   : > { %v1451_v28 = vmax.f32 %v1427_v22, 0.0 }
 0x171   : > { %v1461_v29 = vpack.c.bf16 %v1453_v26, %v1452_v24  ;;  %3235 = vmatpush3.bf16.msra.mxu1 %v1459_v8 }
 0x172   : > { %v1460_v19 = vpack.c.bf16 %v1451_v28, %v1450_v27  ;;  %v3260_v30 = vpop.f32.mrb[64].mxu0 }
 0x173   : > { %v1639_v31 = vadd.f32 %v3260_v30, %v4010_v59  ;;  %v1630_v21 = vpop.f32.mrb[65].mxu0 }
 0x174   : > { %v1631_v32 = vadd.f32 %v1630_v21, %v4006_v58  ;;  %3203 = vmatmul.mubr.bf16.gmra.mrb[44].mxu1 %v4138_v38  ;;  %3236 = vmatprep.subr.bf16.mxu1 %v1460_v19  ;;  %v3261_v0 = vpop.f32.mrb[66].mxu0 }
 0x175   : > { %v1642_v35 = vadd.f32 %v3261_v0, %v4016_v61  ;;  %3237 = vmatpush3.bf16.msra.mxu1 %v1460_v19  ;;  %v1633_v39 = vpop.f32.mrb[67].mxu0  ;;  %3240 = vmatprep.mubr.bf16.mxu1 %v3962_v52  ;;  %v1695_v40 = vmax.f32 %v1639_v31, 0.0 }
 0x176   : > { %v1634_v25 = vadd.f32 %v1633_v39, %v4012_v60  ;;  %3238 = vmatprep.subr.bf16.mxu1 %v1461_v29  ;;  %v1693_v42 = vmax.f32 %v1631_v32, 0.0 }
 0x177   : > { %v1696_v41 = vmax.f32 %v1642_v35, 0.0 }
 0x178   : > { %v1694_v43 = vmax.f32 %v1634_v25, 0.0 }
 0x179   : > { %v1710_v45 = vpack.c.bf16 %v1696_v41, %v1695_v40  ;;  %3239 = vmatpush3.bf16.msra.mxu1 %v1461_v29 }
 0x17a   : > { %v1709_v46 = vpack.c.bf16 %v1694_v43, %v1693_v42  ;;  %v3264_v5 = vpop.f32.mrb[68].mxu0 }
 0x17b   : > { %v1655_v47 = vadd.f32 %v3264_v5, %v4028_v1  ;;  %v1646_v6 = vpop.f32.mrb[69].mxu0 }
 0x17c   : > { %v1647_v49 = vadd.f32 %v1646_v6, %v4020_v62  ;;  %3241 = vmatmul.mubr.bf16.vlgmr.msra.gmra.mrb[48].mxu1 %v4089_v34  ;;  %v3265_v51 = vpop.f32.mrb[70].mxu0  ;;  %3274 = vmatprep.subr.bf16.mxu1 %v1709_v46 }
 0x17d   : > { %v1658_v54 = vadd.f32 %v3265_v51, %v4031_v7  ;;  %v1649_v56 = vpop.f32.mrb[71].mxu0  ;;  %3275 = vmatpush3.bf16.msra.mxu1 %v1709_v46  ;;  %3244 = vmatprep.mubr.bf16.mxu1 %v4095_v37  ;;  %v1699_v2 = vmax.f32 %v1655_v47, 0.0 }
 0x17e   : > { %v1650_v57 = vadd.f32 %v1649_v56, %v4022_v63  ;;  %3276 = vmatprep.subr.bf16.mxu1 %v1710_v45  ;;  %v1697_v8 = vmax.f32 %v1647_v49, 0.0 }
 0x17f   : > { %v1700_v3 = vmax.f32 %v1658_v54, 0.0 }
 0x180   : > { %v1698_v9 = vmax.f32 %v1650_v57, 0.0 }
 0x181   : > { %v1712_v13 = vpack.c.bf16 %v1700_v3, %v1699_v2  ;;  %3277 = vmatpush3.bf16.msra.mxu1 %v1710_v45 }
 0x182   : > { %v1711_v10 = vpack.c.bf16 %v1698_v9, %v1697_v8  ;;  %v3268_v15 = vpop.f32.mrb[72].mxu0 }
 0x183   : > { %v1671_v11 = vadd.f32 %v3268_v15, %v4047_v33  ;;  %v1662_v12 = vpop.f32.mrb[73].mxu0 }
 0x184   : > { %v1663_v14 = vadd.f32 %v1662_v12, %v4038_v17  ;;  %3245 = vmatmul.mubr.bf16.gmra.mrb[52].mxu1 %v4106_v50  ;;  %v3269_v18 = vpop.f32.mrb[74].mxu0  ;;  %3278 = vmatprep.subr.bf16.mxu1 %v1711_v10 }
 0x185   : > { %v1674_v22 = vadd.f32 %v3269_v18, %v4052_v36  ;;  %v1665_v24 = vpop.f32.mrb[75].mxu0  ;;  %3279 = vmatpush3.bf16.msra.mxu1 %v1711_v10  ;;  %3248 = vmatprep.mubr.bf16.mxu1 %v4111_v53  ;;  %v1703_v27 = vmax.f32 %v1671_v11, 0.0 }
 0x186   : > { %v1666_v26 = vadd.f32 %v1665_v24, %v4042_v23  ;;  %3280 = vmatprep.subr.bf16.mxu1 %v1712_v13  ;;  %v1701_v29 = vmax.f32 %v1663_v14, 0.0 }
 0x187   : > { %v1704_v28 = vmax.f32 %v1674_v22, 0.0 }
 0x188   : > { %v1702_v19 = vmax.f32 %v1666_v26, 0.0 }
 0x189   : > { %v1714_v30 = vpack.c.bf16 %v1704_v28, %v1703_v27  ;;  %3281 = vmatpush3.bf16.msra.mxu1 %v1712_v13 }
 0x18a   : > { %v1713_v31 = vpack.c.bf16 %v1702_v19, %v1701_v29  ;;  %v3272_v21 = vpop.f32.mrb[76].mxu0 }
 0x18b   : > { %v1687_v32 = vadd.f32 %v3272_v21, %v4068_v55  ;;  %v1678_v0 = vpop.f32.mrb[77].mxu0 }
 0x18c   : > { %v1679_v35 = vadd.f32 %v1678_v0, %v4057_v44  ;;  %3249 = vmatmul.mubr.bf16.gmra.mrb[56].mxu1 %v4122_v16  ;;  %v3273_v39 = vpop.f32.mrb[78].mxu0  ;;  %3282 = vmatprep.subr.bf16.mxu1 %v1713_v31 }
 0x18d   : > { %v1690_v25 = vadd.f32 %v3273_v39, %v4071_v4  ;;  %v1681_v40 = vpop.f32.mrb[79].mxu0  ;;  %3283 = vmatpush3.bf16.msra.mxu1 %v1713_v31  ;;  %3252 = vmatprep.mubr.bf16.mxu1 %v4127_v20  ;;  %v1707_v42 = vmax.f32 %v1687_v32, 0.0 }
 0x18e   : > { %v1682_v41 = vadd.f32 %v1681_v40, %v4061_v48  ;;  %3284 = vmatprep.subr.bf16.mxu1 %v1714_v30  ;;  %v1705_v45 = vmax.f32 %v1679_v35, 0.0 }
 0x18f   : > { %v1708_v43 = vmax.f32 %v1690_v25, 0.0 }
 0x190   : > { %v1706_v46 = vmax.f32 %v1682_v41, 0.0 }
 0x191   : > { %v1716_v5 = vpack.c.bf16 %v1708_v43, %v1707_v42  ;;  %3285 = vmatpush3.bf16.msra.mxu1 %v1714_v30 }
 0x192   : > { %v1715_v47 = vpack.c.bf16 %v1706_v46, %v1705_v45  ;;  %v3310_v6 = vpop.f32.mrb[80].mxu0 }
 0x193   : > { %v1894_v49 = vadd.f32 %v3310_v6, %v4010_v59  ;;  %v1885_v51 = vpop.f32.mrb[81].mxu0 }
 0x194   : > { %v1886_v54 = vadd.f32 %v1885_v51, %v4006_v58  ;;  %3253 = vmatmul.mubr.bf16.gmra.mrb[60].mxu1 %v4138_v38  ;;  %3286 = vmatprep.subr.bf16.mxu1 %v1715_v47  ;;  %v3311_v56 = vpop.f32.mrb[82].mxu0 }
 0x195   : > { %v1897_v57 = vadd.f32 %v3311_v56, %v4016_v61  ;;  %3287 = vmatpush3.bf16.msra.mxu1 %v1715_v47  ;;  %v1888_v2 = vpop.f32.mrb[83].mxu0  ;;  %3290 = vmatprep.mubr.bf16.mxu1 %v3962_v52  ;;  %v1950_v8 = vmax.f32 %v1894_v49, 0.0 }
 0x196   : > { %v1889_v3 = vadd.f32 %v1888_v2, %v4012_v60  ;;  %3288 = vmatprep.subr.bf16.mxu1 %v1716_v5  ;;  %v1948_v13 = vmax.f32 %v1886_v54, 0.0 }
 0x197   : > { %v1951_v9 = vmax.f32 %v1897_v57, 0.0 }
 0x198   : > { %v1949_v10 = vmax.f32 %v1889_v3, 0.0 }
 0x199   : > { %v1965_v15 = vpack.c.bf16 %v1951_v9, %v1950_v8  ;;  %3289 = vmatpush3.bf16.msra.mxu1 %v1716_v5 }
 0x19a   : > { %v1964_v11 = vpack.c.bf16 %v1949_v10, %v1948_v13  ;;  %v3314_v12 = vpop.f32.mrb[84].mxu0 }
 0x19b   : > { %v1910_v14 = vadd.f32 %v3314_v12, %v4028_v1  ;;  %v1901_v18 = vpop.f32.mrb[85].mxu0 }
 0x19c   : > { %v1902_v22 = vadd.f32 %v1901_v18, %v4020_v62  ;;  %3291 = vmatmul.mubr.bf16.vlgmr.msra.gmra.mrb[64].mxu1 %v4089_v34  ;;  %v3315_v24 = vpop.f32.mrb[86].mxu0  ;;  %3324 = vmatprep.subr.bf16.mxu1 %v1964_v11 }
 0x19d   : > { %v1913_v52 = vadd.f32 %v3315_v24, %v4031_v7  ;;  %v1904_v26 = vpop.f32.mrb[87].mxu0  ;;  %3325 = vmatpush3.bf16.msra.mxu1 %v1964_v11  ;;  %3294 = vmatprep.mubr.bf16.mxu1 %v4095_v37  ;;  %v1954_v28 = vmax.f32 %v1910_v14, 0.0 }
 0x19e   : > { %v1905_v27 = vadd.f32 %v1904_v26, %v4022_v63  ;;  %3326 = vmatprep.subr.bf16.mxu1 %v1965_v15  ;;  %v1952_v19 = vmax.f32 %v1902_v22, 0.0 }
 0x19f   : > { %v1955_v29 = vmax.f32 %v1913_v52, 0.0 }
 0x1a0   : > { %v1953_v30 = vmax.f32 %v1905_v27, 0.0 }
 0x1a1   : > { %v1967_v31 = vpack.c.bf16 %v1955_v29, %v1954_v28  ;;  %3327 = vmatpush3.bf16.msra.mxu1 %v1965_v15  ;;  %v4243_v28 = vld [vmem:[%s4858_s3] sm:$0xff]  }
 0x1a2   : > { %v1966_v21 = vpack.c.bf16 %v1953_v30, %v1952_v19  ;;  %v3318_v32 = vpop.f32.mrb[88].mxu0 }
 0x1a3   : > { %v1926_v0 = vadd.f32 %v3318_v32, %v4047_v33  ;;  %v1917_v35 = vpop.f32.mrb[89].mxu0 }
 0x1a4   : > { %v1918_v39 = vadd.f32 %v1917_v35, %v4038_v17  ;;  %3295 = vmatmul.mubr.bf16.gmra.mrb[68].mxu1 %v4106_v50  ;;  %v3319_v25 = vpop.f32.mrb[90].mxu0  ;;  %3328 = vmatprep.subr.bf16.mxu1 %v1966_v21 }
 0x1a5   : > { %v1929_v40 = vadd.f32 %v3319_v25, %v4052_v36  ;;  %v1920_v41 = vpop.f32.mrb[91].mxu0  ;;  %3329 = vmatpush3.bf16.msra.mxu1 %v1966_v21  ;;  %3298 = vmatprep.mubr.bf16.mxu1 %v4111_v53  ;;  %v1958_v43 = vmax.f32 %v1926_v0, 0.0 }
 0x1a6   : > { %v1921_v42 = vadd.f32 %v1920_v41, %v4042_v23  ;;  %3330 = vmatprep.subr.bf16.mxu1 %v1967_v31  ;;  %v1956_v46 = vmax.f32 %v1918_v39, 0.0 }
 0x1a7   : > { %v1959_v45 = vmax.f32 %v1929_v40, 0.0 }
 0x1a8   : > { %v1957_v5 = vmax.f32 %v1921_v42, 0.0 }
 0x1a9   : > { %v1969_v47 = vpack.c.bf16 %v1959_v45, %v1958_v43  ;;  %3331 = vmatpush3.bf16.msra.mxu1 %v1967_v31 }
 0x1aa   : > { %v1968_v6 = vpack.c.bf16 %v1957_v5, %v1956_v46  ;;  %v3322_v49 = vpop.f32.mrb[92].mxu0 }
 0x1ab   : > { %v1942_v51 = vadd.f32 %v3322_v49, %v4068_v55  ;;  %v1933_v54 = vpop.f32.mrb[93].mxu0 }
 0x1ac   : > { %v1934_v56 = vadd.f32 %v1933_v54, %v4057_v44  ;;  %3299 = vmatmul.mubr.bf16.gmra.mrb[72].mxu1 %v4122_v16  ;;  %v3323_v57 = vpop.f32.mrb[94].mxu0  ;;  %3332 = vmatprep.subr.bf16.mxu1 %v1968_v6 }
 0x1ad   : > { %v1945_v2 = vadd.f32 %v3323_v57, %v4071_v4  ;;  %v1936_v3 = vpop.f32.mrb[95].mxu0  ;;  %3333 = vmatpush3.bf16.msra.mxu1 %v1968_v6  ;;  %3302 = vmatprep.mubr.bf16.mxu1 %v4127_v20  ;;  %v1962_v9 = vmax.f32 %v1942_v51, 0.0 }
 0x1ae   : > { %v1937_v8 = vadd.f32 %v1936_v3, %v4061_v48  ;;  %3334 = vmatprep.subr.bf16.mxu1 %v1969_v47  ;;  %v1960_v10 = vmax.f32 %v1934_v56, 0.0 }
 0x1af   : > { %v1963_v13 = vmax.f32 %v1945_v2, 0.0 }
 0x1b0   : > { %v1961_v15 = vmax.f32 %v1937_v8, 0.0 }
 0x1b1   : > { %v1971_v11 = vpack.c.bf16 %v1963_v13, %v1962_v9  ;;  %3335 = vmatpush3.bf16.msra.mxu1 %v1969_v47 }
 0x1b2   : > { %v1970_v12 = vpack.c.bf16 %v1961_v15, %v1960_v10  ;;  %v3360_v14 = vpop.f32.mrb[96].mxu0 }
 0x1b3   : > { %v2149_v18 = vadd.f32 %v3360_v14, %v4010_v59  ;;  %v2140_v22 = vpop.f32.mrb[97].mxu0 }
 0x1b4   : > { %v2141_v24 = vadd.f32 %v2140_v22, %v4006_v58  ;;  %3303 = vmatmul.mubr.bf16.gmra.mrb[76].mxu1 %v4138_v38  ;;  %3336 = vmatprep.subr.bf16.mxu1 %v1970_v12  ;;  %v3361_v52 = vpop.f32.mrb[98].mxu0 }
 0x1b5   : > { %v2152_v26 = vadd.f32 %v3361_v52, %v4016_v61  ;;  %3337 = vmatpush3.bf16.msra.mxu1 %v1970_v12  ;;  %v2143_v27 = vpop.f32.mrb[99].mxu0  ;;  %3340 = vmatprep.mubr.bf16.mxu1 %v4243_v28  ;;  %v2205_v19 = vmax.f32 %v2149_v18, 0.0 }
 0x1b6   : > { %v2144_v29 = vadd.f32 %v2143_v27, %v4012_v60  ;;  %3338 = vmatprep.subr.bf16.mxu1 %v1971_v11  ;;  %v2203_v31 = vmax.f32 %v2141_v24, 0.0 }
 0x1b7   : > { %v2206_v30 = vmax.f32 %v2152_v26, 0.0 }
 0x1b8   : > { %v2204_v21 = vmax.f32 %v2144_v29, 0.0 }
 0x1b9   : > { %v2220_v32 = vpack.c.bf16 %v2206_v30, %v2205_v19  ;;  %3339 = vmatpush3.bf16.msra.mxu1 %v1971_v11 }
 0x1ba   : > { %v2219_v0 = vpack.c.bf16 %v2204_v21, %v2203_v31  ;;  %v3364_v35 = vpop.f32.mrb[100].mxu0 }
 0x1bb   : > { %v2165_v39 = vadd.f32 %v3364_v35, %v4028_v1  ;;  %v2156_v25 = vpop.f32.mrb[101].mxu0 }
 0x1bc   : > { %v2157_v40 = vadd.f32 %v2156_v25, %v4020_v62  ;;  %3341 = vmatmul.mubr.bf16.vlgmr.msra.gmra.mrb[80].mxu1 %v4089_v34  ;;  %v3365_v41 = vpop.f32.mrb[102].mxu0  ;;  %3374 = vmatprep.subr.bf16.mxu1 %v2219_v0 }
 0x1bd   : > { %v2168_v42 = vadd.f32 %v3365_v41, %v4031_v7  ;;  %v2159_v43 = vpop.f32.mrb[103].mxu0  ;;  %3375 = vmatpush3.bf16.msra.mxu1 %v2219_v0  ;;  %3344 = vmatprep.mubr.bf16.mxu1 %v4095_v37  ;;  %v2209_v46 = vmax.f32 %v2165_v39, 0.0 }
 0x1be   : > { %v2160_v45 = vadd.f32 %v2159_v43, %v4022_v63  ;;  %3376 = vmatprep.subr.bf16.mxu1 %v2220_v32  ;;  %v2207_v47 = vmax.f32 %v2157_v40, 0.0 }
 0x1bf   : > { %v2210_v5 = vmax.f32 %v2168_v42, 0.0 }
 0x1c0   : > { %v2208_v6 = vmax.f32 %v2160_v45, 0.0 }
 0x1c1   : > { %v2222_v49 = vpack.c.bf16 %v2210_v5, %v2209_v46  ;;  %3377 = vmatpush3.bf16.msra.mxu1 %v2220_v32 }
 0x1c2   : > { %v2221_v51 = vpack.c.bf16 %v2208_v6, %v2207_v47  ;;  %v3368_v54 = vpop.f32.mrb[104].mxu0 }
 0x1c3   : > { %v2181_v56 = vadd.f32 %v3368_v54, %v4047_v33  ;;  %v2172_v57 = vpop.f32.mrb[105].mxu0 }
 0x1c4   : > { %v2173_v2 = vadd.f32 %v2172_v57, %v4038_v17  ;;  %3345 = vmatmul.mubr.bf16.gmra.mrb[84].mxu1 %v4106_v50  ;;  %v3369_v3 = vpop.f32.mrb[106].mxu0  ;;  %3378 = vmatprep.subr.bf16.mxu1 %v2221_v51 }
 0x1c5   : > { %v2184_v8 = vadd.f32 %v3369_v3, %v4052_v36  ;;  %v2175_v9 = vpop.f32.mrb[107].mxu0  ;;  %3379 = vmatpush3.bf16.msra.mxu1 %v2221_v51  ;;  %3348 = vmatprep.mubr.bf16.mxu1 %v4111_v53  ;;  %v2213_v10 = vmax.f32 %v2181_v56, 0.0 }
 0x1c6   : > { %v2176_v13 = vadd.f32 %v2175_v9, %v4042_v23  ;;  %3380 = vmatprep.subr.bf16.mxu1 %v2222_v49  ;;  %v2211_v11 = vmax.f32 %v2173_v2, 0.0 }
 0x1c7   : > { %v2214_v15 = vmax.f32 %v2184_v8, 0.0 }
 0x1c8   : > { %v2212_v12 = vmax.f32 %v2176_v13, 0.0 }
 0x1c9   : > { %v2224_v14 = vpack.c.bf16 %v2214_v15, %v2213_v10  ;;  %3381 = vmatpush3.bf16.msra.mxu1 %v2222_v49 }
 0x1ca   : > { %v2223_v18 = vpack.c.bf16 %v2212_v12, %v2211_v11  ;;  %v3372_v22 = vpop.f32.mrb[108].mxu0 }
 0x1cb   : > { %v2197_v24 = vadd.f32 %v3372_v22, %v4068_v55  ;;  %v2188_v52 = vpop.f32.mrb[109].mxu0 }
 0x1cc   : > { %v2189_v26 = vadd.f32 %v2188_v52, %v4057_v44  ;;  %3349 = vmatmul.mubr.bf16.gmra.mrb[88].mxu1 %v4122_v16  ;;  %v3373_v27 = vpop.f32.mrb[110].mxu0  ;;  %3382 = vmatprep.subr.bf16.mxu1 %v2223_v18 }
 0x1cd   : > { %v2200_v29 = vadd.f32 %v3373_v27, %v4071_v4  ;;  %v2191_v19 = vpop.f32.mrb[111].mxu0  ;;  %3383 = vmatpush3.bf16.msra.mxu1 %v2223_v18  ;;  %3352 = vmatprep.mubr.bf16.mxu1 %v4127_v20  ;;  %v2217_v31 = vmax.f32 %v2197_v24, 0.0 }
 0x1ce   : > { %v2192_v30 = vadd.f32 %v2191_v19, %v4061_v48  ;;  %3384 = vmatprep.subr.bf16.mxu1 %v2224_v14  ;;  %v2215_v32 = vmax.f32 %v2189_v26, 0.0 }
 0x1cf   : > { %v2218_v21 = vmax.f32 %v2200_v29, 0.0 }
 0x1d0   : > { %v2216_v0 = vmax.f32 %v2192_v30, 0.0 }
 0x1d1   : > { %v2226_v35 = vpack.c.bf16 %v2218_v21, %v2217_v31  ;;  %3385 = vmatpush3.bf16.msra.mxu1 %v2224_v14 }
 0x1d2   : > { %v2225_v39 = vpack.c.bf16 %v2216_v0, %v2215_v32  ;;  %v3410_v25 = vpop.f32.mrb[112].mxu0 }
 0x1d3   : > { %v2404_v40 = vadd.f32 %v3410_v25, %v4010_v59  ;;  %v2395_v41 = vpop.f32.mrb[113].mxu0 }
 0x1d4   : > { %v2396_v42 = vadd.f32 %v2395_v41, %v4006_v58  ;;  %3353 = vmatmul.mubr.bf16.gmra.mrb[92].mxu1 %v4138_v38  ;;  %3386 = vmatprep.subr.bf16.mxu1 %v2225_v39  ;;  %v3411_v43 = vpop.f32.mrb[114].mxu0  ;;  %v4293_v41 = vpop.permute.xlu0 %587 }
 0x1d5   : > { %v2407_v45 = vadd.f32 %v3411_v43, %v4016_v61  ;;  %3387 = vmatpush3.bf16.msra.mxu1 %v2225_v39  ;;  %v2398_v46 = vpop.f32.mrb[115].mxu0  ;;  %3390 = vmatprep.mubr.bf16.mxu1 %v4243_v28  ;;  %v2460_v47 = vmax.f32 %v2404_v40, 0.0  ;;  %v3559_v43 = vld [vmem:[%s4858_s3 + $0x18] sm:$0xff]  }
 0x1d6   : > { %v2399_v5 = vadd.f32 %v2398_v46, %v4012_v60  ;;  %3388 = vmatprep.subr.bf16.mxu1 %v2226_v35  ;;  %v2458_v49 = vmax.f32 %v2396_v42, 0.0  ;;  %v4298_v42 = vpop.permute.xlu1 %592 }
 0x1d7   : > { %v2461_v6 = vmax.f32 %v2407_v45, 0.0  ;;  %v3560_v45 = vld [vmem:[%s4858_s3 + $0x20] sm:$0xff]  }
 0x1d8   : > { %v2459_v59 = vmax.f32 %v2399_v5, 0.0 }
 0x1d9   : > { %v2475_v51 = vpack.c.bf16 %v2461_v6, %v2460_v47  ;;  %3389 = vmatpush3.bf16.msra.mxu1 %v2226_v35  ;;  %v4310_v47 = vpop.permute.xlu0 %597 }
 0x1da   : > { %v2474_v58 = vpack.c.bf16 %v2459_v59, %v2458_v49  ;;  %v3414_v54 = vpop.f32.mrb[116].mxu0  ;;  %v4316_v59 = vpop.permute.xlu1 %602 }
 0x1db   : > { %v2420_v56 = vadd.f32 %v3414_v54, %v4028_v1  ;;  %v2411_v57 = vpop.f32.mrb[117].mxu0 }
 0x1dc   : > { %v2412_v61 = vadd.f32 %v2411_v57, %v4020_v62  ;;  %3391 = vmatmul.mubr.bf16.vlgmr.msra.gmra.mrb[96].mxu1 %v4089_v34  ;;  %v3415_v2 = vpop.f32.mrb[118].mxu0  ;;  %3424 = vmatprep.subr.bf16.mxu0 %v2474_v58 }
 0x1dd   : > { %v2423_v60 = vadd.f32 %v3415_v2, %v4031_v7  ;;  %3456 = vmatprep.subr.bf16.mxu1 %v2474_v58  ;;  %v2414_v28 = vpop.f32.mrb[119].mxu0  ;;  %3425 = vmatpush3.bf16.msra.mxu0 %v2474_v58  ;;  %v2464_v8 = vmax.f32 %v2420_v56, 0.0  ;;  %v4324_v54 = vpop.permute.xlu0 %607 }
 0x1de   : > { %v2415_v3 = vadd.f32 %v2414_v28, %v4022_v63  ;;  %3464 = vmatpush3.bf16.msra.mxu1 %v2474_v58  ;;  %3426 = vmatprep.subr.bf16.mxu0 %v2475_v51  ;;  %v2462_v1 = vmax.f32 %v2412_v61, 0.0  ;;  %v3562_v58 = vld [vmem:[%s4858_s3 + $0x30] sm:$0xff]   ;;  %v4330_v61 = vpop.permute.xlu1 %612 }
 0x1df   : > { %v2465_v9 = vmax.f32 %v2423_v60, 0.0  ;;  %3457 = vmatprep.subr.bf16.mxu1 %v2475_v51  ;;  %3394 = vmatprep.mubr.bf16.mxu1 %v4095_v37 }
 0x1e0   : > { %v2463_v62 = vmax.f32 %v2415_v3, 0.0  ;;  %v3563_v3 = vld [vmem:[%s4858_s3 + $0x38] sm:$0xff]  }
 0x1e1   : > { %v2477_v13 = vpack.c.bf16 %v2465_v9, %v2464_v8  ;;  %3427 = vmatpush3.bf16.msra.mxu0 %v2475_v51  ;;  %v4336_v28 = vpop.permute.xlu0 %617 }
 0x1e2   : > { %v2476_v34 = vpack.c.bf16 %v2463_v62, %v2462_v1  ;;  %3465 = vmatpush3.bf16.msra.mxu1 %v2475_v51  ;;  %v3418_v10 = vpop.f32.mrb[120].mxu0  ;;  %v3561_v51 = vld [vmem:[%s4858_s3 + $0x28] sm:$0xff]   ;;  %v4342_v9 = vpop.permute.xlu1 %622 }
 0x1e3   : > { %v2436_v7 = vadd.f32 %v3418_v10, %v4047_v33  ;;  %v2427_v15 = vpop.f32.mrb[121].mxu0 }
 0x1e4   : > { %v2428_v11 = vadd.f32 %v2427_v15, %v4038_v17  ;;  %3395 = vmatmul.mubr.bf16.gmra.mrb[100].mxu1 %v4106_v50  ;;  %v3419_v63 = vpop.f32.mrb[122].mxu0  ;;  %3428 = vmatprep.subr.bf16.mxu0 %v2476_v34 }
 0x1e5   : > { %v2439_v12 = vadd.f32 %v3419_v63, %v4052_v36  ;;  %3458 = vmatprep.subr.bf16.mxu1 %v2476_v34  ;;  %v2430_v37 = vpop.f32.mrb[123].mxu0  ;;  %3429 = vmatpush3.bf16.msra.mxu0 %v2476_v34  ;;  %v2468_v18 = vmax.f32 %v2436_v7, 0.0 }
 0x1e6   : > { %v2431_v14 = vadd.f32 %v2430_v37, %v4042_v23  ;;  %3466 = vmatpush3.bf16.msra.mxu1 %v2476_v34  ;;  %3430 = vmatprep.subr.bf16.mxu0 %v2477_v13  ;;  %v2466_v33 = vmax.f32 %v2428_v11, 0.0 }
 0x1e7   : > { %v2469_v22 = vmax.f32 %v2439_v12, 0.0  ;;  %3459 = vmatprep.subr.bf16.mxu1 %v2477_v13  ;;  %3398 = vmatprep.mubr.bf16.mxu1 %v4111_v53 }
 0x1e8   : > { %v2467_v17 = vmax.f32 %v2431_v14, 0.0 }
 0x1e9   : > { %v2479_v24 = vpack.c.bf16 %v2469_v22, %v2468_v18  ;;  %3431 = vmatpush3.bf16.msra.mxu0 %v2477_v13  ;;  %v4350_v18 = vpop.permute.xlu0 %627 }
 0x1ea   : > { %v2478_v50 = vpack.c.bf16 %v2467_v17, %v2466_v33  ;;  %3467 = vmatpush3.bf16.msra.mxu1 %v2477_v13  ;;  %v3422_v52 = vpop.f32.mrb[124].mxu0 }
 0x1eb   : > { %v2452_v36 = vadd.f32 %v3422_v52, %v4068_v55  ;;  %v2443_v26 = vpop.f32.mrb[125].mxu0 }
 0x1ec   : > { %v2444_v27 = vadd.f32 %v2443_v26, %v4057_v44  ;;  %3399 = vmatmul.mubr.bf16.gmra.mrb[104].mxu1 %v4122_v16  ;;  %v3423_v23 = vpop.f32.mrb[126].mxu0  ;;  %3432 = vmatprep.subr.bf16.mxu0 %v2478_v50 }
 0x1ed   : > { %v2455_v29 = vadd.f32 %v3423_v23, %v4071_v4  ;;  %3460 = vmatprep.subr.bf16.mxu1 %v2478_v50  ;;  %v2446_v53 = vpop.f32.mrb[127].mxu0  ;;  %3433 = vmatpush3.bf16.msra.mxu0 %v2478_v50  ;;  %v2472_v30 = vmax.f32 %v2452_v36, 0.0  ;;  %v4355_v36 = vpop.permute.xlu1 %632 }
 0x1ee   : > { %v2447_v19 = vadd.f32 %v2446_v53, %v4061_v48  ;;  %3468 = vmatpush3.bf16.msra.mxu1 %v2478_v50  ;;  %3434 = vmatprep.subr.bf16.mxu0 %v2479_v24  ;;  %v2470_v44 = vmax.f32 %v2444_v27, 0.0 }
 0x1ef   : > { %v2473_v31 = vmax.f32 %v2455_v29, 0.0  ;;  %3461 = vmatprep.subr.bf16.mxu1 %v2479_v24  ;;  %v3092_v55 = vpop.f32.mrb[0].mxu1  ;;  %3402 = vmatprep.mubr.bf16.mxu1 %v4127_v20  ;;  %v3557_v20 = vld [vmem:[%s4858_s3 + $0x10] sm:$0xff]  }
 0x1f0   : > { %v2471_v21 = vmax.f32 %v2447_v19, 0.0  ;;  %v747_v16 = vpop.f32.mrb[1].mxu1  ;;  %v756_v8 = vadd.f32 %v3092_v55, %v4310_v47 }
 0x1f1   : > { %v2481_v32 = vpack.c.bf16 %v2473_v31, %v2472_v30  ;;  %v3093_v0 = vpop.f32.mrb[2].mxu1  ;;  %3435 = vmatpush3.bf16.msra.mxu0 %v2479_v24  ;;  %v748_v1 = vadd.f32 %v747_v16, %v4293_v41  ;;  %v4367_v16 = vpop.permute.xlu0 %637 }
 0x1f2   : > { %v2480_v4 = vpack.c.bf16 %v2471_v21, %v2470_v44  ;;  %3469 = vmatpush3.bf16.msra.mxu1 %v2479_v24  ;;  %v750_v35 = vpop.f32.mrb[3].mxu1  ;;  %v759_v13 = vadd.f32 %v3093_v0, %v4316_v59  ;;  %v812_v63 = vmax.f32 %v756_v8, 0.0 }
 0x1f3   : > { %v751_v7 = vadd.f32 %v750_v35, %v4298_v42  ;;  %v810_v22 = vmax.f32 %v748_v1, 0.0 }
 0x1f4   : > { %3403 = vmatmul.mubr.bf16.gmra.mrb[108].mxu1 %v4138_v38  ;;  %3436 = vmatprep.subr.bf16.mxu0 %v2480_v4  ;;  %v3558_v38 = vld [vmem:[%s4858_s3 + $0x8] sm:$0xff]   ;;  %v813_v24 = vmax.f32 %v759_v13, 0.0 }
 0x1f5   : > { %3462 = vmatprep.subr.bf16.mxu1 %v2480_v4  ;;  %3437 = vmatpush3.bf16.msra.mxu0 %v2480_v4  ;;  %v811_v26 = vmax.f32 %v751_v7, 0.0 }
 0x1f6   : > { %3470 = vmatpush3.bf16.msra.mxu1 %v2480_v4  ;;  %3438 = vmatprep.subr.bf16.mxu0 %v2481_v32 }
 0x1f7   : > { %3463 = vmatprep.subr.bf16.mxu1 %v2481_v32  ;;  %v3096_v48 = vpop.f32.mrb[4].mxu1  ;;  %3444 = vmatprep.mubr.bf16.mxu1 %v3557_v20 }
 0x1f8   : > { %v763_v39 = vpop.f32.mrb[5].mxu1  ;;  %v772_v29 = vadd.f32 %v3096_v48, %v4336_v28 }
 0x1f9   : > { %v3097_v25 = vpop.f32.mrb[6].mxu1  ;;  %3439 = vmatpush3.bf16.msra.mxu0 %v2481_v32  ;;  %v764_v19 = vadd.f32 %v763_v39, %v4324_v54 }
 0x1fa   : > { %3471 = vmatpush3.bf16.msra.mxu1 %v2481_v32  ;;  %v766_v40 = vpop.f32.mrb[7].mxu1  ;;  %v775_v55 = vadd.f32 %v3097_v25, %v4342_v9  ;;  %v816_v35 = vmax.f32 %v772_v29, 0.0 }
 0x1fb   : > { %v767_v32 = vadd.f32 %v766_v40, %v4330_v61 }
 0x1fc   : > { %3441 = vmatmul.mubr.bf16.vlgmr.msra.gmra.mrb[128].mxu0 %v3558_v38  ;;  %v4372_v38 = vpop.permute.xlu1 %642 }
 0x1fd   : > { %3445 = vmatmul.mubr.bf16.vlgmr.msra.gmra.mrb[112].mxu1 %v3559_v43  ;;  %v814_v43 = vmax.f32 %v764_v19, 0.0  ;;  %v815_v8 = vmax.f32 %v767_v32, 0.0 }
 0x1fe   : > { %3448 = vmatprep.mubr.bf16.mxu1 %v3560_v45 }
 0x1ff   : > { %v4306_v46 = vpop.f32.mrb[8].mxu1 }
 0x200   : > { %v4308_v5 = vpop.f32.mrb[9].mxu1 }
 0x201   : > { %v4312_v6 = vpop.f32.mrb[10].mxu1 }
 0x202   : > { %v4314_v49 = vpop.f32.mrb[11].mxu1 }
 0x205   : > { %3449 = vmatmul.mubr.bf16.gmra.mrb[116].mxu1 %v3561_v51  ;;  %v817_v51 = vmax.f32 %v775_v55, 0.0 }
 0x206   : > { %3452 = vmatprep.mubr.bf16.mxu1 %v3562_v58 }
 0x207   : > { %v4326_v56 = vpop.f32.mrb[12].mxu1 }
 0x208   : > { %v4328_v57 = vpop.f32.mrb[13].mxu1 }
 0x209   : > { %v4332_v2 = vpop.f32.mrb[14].mxu1 }
 0x20a   : > { %v4334_v60 = vpop.f32.mrb[15].mxu1 }
 0x20d   : > { %3453 = vmatmul.mubr.bf16.gmra.mrb[120].mxu1 %v3563_v3 }
 0x20f   : > { %v3142_v62 = vpop.f32.mrb[16].mxu1 }
 0x210   : > { %v995_v34 = vadd.f32 %v3142_v62, %v4310_v47  ;;  %v986_v10 = vpop.f32.mrb[17].mxu1  ;;  %v788_v62 = vadd.f32 %v4306_v46, %v4367_v16  ;;  %v783_v46 = vadd.f32 %v4314_v49, %v4355_v36 }
 0x211   : > { %v987_v15 = vadd.f32 %v986_v10, %v4293_v41  ;;  %v3143_v11 = vpop.f32.mrb[18].mxu1  ;;  %v780_v10 = vadd.f32 %v4308_v5, %v4350_v18 }
 0x212   : > { %v1051_v12 = vmax.f32 %v995_v34, 0.0  ;;  %v998_v37 = vadd.f32 %v3143_v11, %v4316_v59  ;;  %v989_v14 = vpop.f32.mrb[19].mxu1  ;;  %v4383_v34 = vpop.permute.xlu0 %647  ;;  %v791_v11 = vadd.f32 %v4312_v6, %v4372_v38  ;;  %v819_v55 = vmax.f32 %v783_v46, 0.0 }
 0x213   : > { %v1049_v33 = vmax.f32 %v987_v15, 0.0  ;;  %v990_v17 = vadd.f32 %v989_v14, %v4298_v42 }
 0x214   : > { %v4353_v50 = vmax.f32 %v812_v63, %v1051_v12  ;;  %v1052_v52 = vmax.f32 %v998_v37, 0.0  ;;  %v4392_v37 = vpop.permute.xlu1 %652 }
 0x215   : > { %v4357_v27 = vmax.f32 %v810_v22, %v1049_v33  ;;  %v1050_v23 = vmax.f32 %v990_v17, 0.0  ;;  %v820_v33 = vmax.f32 %v788_v62, 0.0 }
 0x216   : > { %v4360_v53 = vmax.f32 %v813_v24, %v1052_v52  ;;  %v818_v52 = vmax.f32 %v780_v10, 0.0 }
 0x217   : > { %v4363_v30 = vmax.f32 %v811_v26, %v1050_v23  ;;  %v3146_v31 = vpop.f32.mrb[20].mxu1  ;;  %v821_v23 = vmax.f32 %v791_v11, 0.0 }
 0x218   : > { %v1011_v44 = vadd.f32 %v3146_v31, %v4336_v28  ;;  %v1002_v21 = vpop.f32.mrb[21].mxu1  ;;  %v4401_v31 = vpop.permute.xlu0 %657 }
 0x219   : > { %v1003_v0 = vadd.f32 %v1002_v21, %v4324_v54  ;;  %v3147_v4 = vpop.f32.mrb[22].mxu1  ;;  %v804_v21 = vadd.f32 %v4326_v56, %v4401_v31 }
 0x21a   : > { %v1055_v48 = vmax.f32 %v1011_v44, 0.0  ;;  %v1014_v20 = vadd.f32 %v3147_v4, %v4342_v9  ;;  %v1005_v39 = vpop.f32.mrb[23].mxu1  ;;  %v796_v4 = vadd.f32 %v4328_v57, %v4383_v34 }
 0x21b   : > { %v1053_v45 = vmax.f32 %v1003_v0, 0.0  ;;  %v1006_v25 = vadd.f32 %v1005_v39, %v4330_v61  ;;  %v4409_v0 = vpop.permute.xlu1 %662 }
 0x21c   : > { %v4375_v58 = vmax.f32 %v816_v35, %v1055_v48  ;;  %v1056_v3 = vmax.f32 %v1014_v20, 0.0  ;;  %v807_v20 = vadd.f32 %v4332_v2, %v4409_v0 }
 0x21d   : > { %v4377_v40 = vmax.f32 %v814_v43, %v1053_v45  ;;  %v1054_v1 = vmax.f32 %v1006_v25, 0.0  ;;  %v799_v45 = vadd.f32 %v4334_v60, %v4392_v37 }
 0x21e   : > { %v4381_v13 = vmax.f32 %v817_v51, %v1056_v3  ;;  %v824_v51 = vmax.f32 %v804_v21, 0.0 }
 0x21f   : > { %v4387_v7 = vmax.f32 %v815_v8, %v1054_v1  ;;  %v3150_v15 = vpop.f32.mrb[24].mxu1  ;;  %v822_v1 = vmax.f32 %v796_v4, 0.0 }
 0x220   : > { %v1027_v63 = vadd.f32 %v3150_v15, %v4367_v16  ;;  %v1018_v12 = vpop.f32.mrb[25].mxu1  ;;  %v825_v15 = vmax.f32 %v807_v20, 0.0 }
 0x221   : > { %v1019_v14 = vadd.f32 %v1018_v12, %v4350_v18  ;;  %v3151_v22 = vpop.f32.mrb[26].mxu1 }
 0x222   : > { %v1059_v17 = vmax.f32 %v1027_v63, 0.0  ;;  %v1030_v5 = vadd.f32 %v3151_v22, %v4372_v38  ;;  %v1021_v24 = vpop.f32.mrb[27].mxu1  ;;  %v823_v63 = vmax.f32 %v799_v45, 0.0 }
 0x223   : > { %v1057_v26 = vmax.f32 %v1019_v14, 0.0  ;;  %v1022_v6 = vadd.f32 %v1021_v24, %v4355_v36 }
 0x224   : > { %v4399_v29 = vmax.f32 %v820_v33, %v1059_v17  ;;  %v1060_v19 = vmax.f32 %v1030_v5, 0.0 }
 0x225   : > { %v4403_v49 = vmax.f32 %v818_v52, %v1057_v26  ;;  %v1058_v44 = vmax.f32 %v1022_v6, 0.0 }
 0x226   : > { %v4407_v32 = vmax.f32 %v821_v23, %v1060_v19 }
 0x227   : > { %v4413_v35 = vmax.f32 %v819_v55, %v1058_v44  ;;  %v3154_v48 = vpop.f32.mrb[28].mxu1 }
 0x228   : > { %v1043_v39 = vadd.f32 %v3154_v48, %v4401_v31  ;;  %v1034_v43 = vpop.f32.mrb[29].mxu1 }
 0x229   : > { %v1035_v56 = vadd.f32 %v1034_v43, %v4383_v34  ;;  %v3155_v25 = vpop.f32.mrb[30].mxu1 }
 0x22a   : > { %v1063_v3 = vmax.f32 %v1043_v39, 0.0  ;;  %v1046_v8 = vadd.f32 %v3155_v25, %v4409_v0  ;;  %v1037_v57 = vpop.f32.mrb[31].mxu1 }
 0x22b   : > { %v1061_v62 = vmax.f32 %v1035_v56, 0.0  ;;  %v1038_v10 = vadd.f32 %v1037_v57, %v4392_v37 }
 0x22c   : > { %v4423_v2 = vmax.f32 %v824_v51, %v1063_v3  ;;  %v1064_v11 = vmax.f32 %v1046_v8, 0.0 }
 0x22d   : > { %v4425_v12 = vmax.f32 %v822_v1, %v1061_v62  ;;  %v1062_v60 = vmax.f32 %v1038_v10, 0.0 }
 0x22e   : > { %v4427_v46 = vmax.f32 %v825_v15, %v1064_v11 }
 0x22f   : > { %v4429_v14 = vmax.f32 %v823_v63, %v1062_v60  ;;  %v3192_v22 = vpop.f32.mrb[32].mxu1 }
 0x230   : > { %v1250_v33 = vadd.f32 %v3192_v22, %v4310_v47  ;;  %v1241_v17 = vpop.f32.mrb[33].mxu1 }
 0x231   : > { %v1242_v5 = vadd.f32 %v1241_v17, %v4293_v41  ;;  %v3193_v24 = vpop.f32.mrb[34].mxu1 }
 0x232   : > { %v1306_v52 = vmax.f32 %v1250_v33, 0.0  ;;  %v1253_v26 = vadd.f32 %v3193_v24, %v4316_v59  ;;  %v1244_v6 = vpop.f32.mrb[35].mxu1 }
 0x233   : > { %v1304_v23 = vmax.f32 %v1242_v5, 0.0  ;;  %v1245_v19 = vadd.f32 %v1244_v6, %v4298_v42 }
 0x234   : > { %v4436_v55 = vmax.f32 %v4353_v50, %v1306_v52  ;;  %v1307_v44 = vmax.f32 %v1253_v26, 0.0 }
 0x235   : > { %v4439_v21 = vmax.f32 %v4357_v27, %v1304_v23  ;;  %v1305_v4 = vmax.f32 %v1245_v19, 0.0 }
 0x236   : > { %v4442_v48 = vmax.f32 %v4360_v53, %v1307_v44 }
 0x237   : > { %v4445_v20 = vmax.f32 %v4363_v30, %v1305_v4  ;;  %v3196_v39 = vpop.f32.mrb[36].mxu1 }
 0x238   : > { %v1266_v43 = vadd.f32 %v3196_v39, %v4336_v28  ;;  %v1257_v45 = vpop.f32.mrb[37].mxu1 }
 0x239   : > { %v1258_v56 = vadd.f32 %v1257_v45, %v4324_v54  ;;  %v3197_v25 = vpop.f32.mrb[38].mxu1 }
 0x23a   : > { %v1310_v50 = vmax.f32 %v1266_v43, 0.0  ;;  %v1269_v51 = vadd.f32 %v3197_v25, %v4342_v9  ;;  %v1260_v3 = vpop.f32.mrb[39].mxu1 }
 0x23b   : > { %v1308_v27 = vmax.f32 %v1258_v56, 0.0  ;;  %v1261_v8 = vadd.f32 %v1260_v3, %v4330_v61 }
 0x23c   : > { %v4452_v53 = vmax.f32 %v4375_v58, %v1310_v50  ;;  %v1311_v57 = vmax.f32 %v1269_v51, 0.0 }
 0x23d   : > { %v4455_v30 = vmax.f32 %v4377_v40, %v1308_v27  ;;  %v1309_v1 = vmax.f32 %v1261_v8, 0.0 }
 0x23e   : > { %v4458_v62 = vmax.f32 %v4381_v13, %v1311_v57 }
 0x23f   : > { %v4461_v10 = vmax.f32 %v4387_v7, %v1309_v1  ;;  %v3200_v15 = vpop.f32.mrb[40].mxu1 }
 0x240   : > { %v1282_v11 = vadd.f32 %v3200_v15, %v4367_v16  ;;  %v1273_v63 = vpop.f32.mrb[41].mxu1 }
 0x241   : > { %v1274_v60 = vadd.f32 %v1273_v63, %v4350_v18  ;;  %v3201_v22 = vpop.f32.mrb[42].mxu1 }
 0x242   : > { %v1314_v58 = vmax.f32 %v1282_v11, 0.0  ;;  %v1285_v33 = vadd.f32 %v3201_v22, %v4372_v38  ;;  %v1276_v17 = vpop.f32.mrb[43].mxu1 }
 0x243   : > { %v1312_v40 = vmax.f32 %v1274_v60, 0.0  ;;  %v1277_v5 = vadd.f32 %v1276_v17, %v4355_v36 }
 0x244   : > { %v4468_v13 = vmax.f32 %v4399_v29, %v1314_v58  ;;  %v1315_v24 = vmax.f32 %v1285_v33, 0.0 }
 0x245   : > { %v4471_v7 = vmax.f32 %v4403_v49, %v1312_v40  ;;  %v1313_v52 = vmax.f32 %v1277_v5, 0.0 }
 0x246   : > { %v4474_v26 = vmax.f32 %v4407_v32, %v1315_v24 }
 0x247   : > { %v4477_v6 = vmax.f32 %v4413_v35, %v1313_v52  ;;  %v3204_v23 = vpop.f32.mrb[44].mxu1 }
 0x248   : > { %v1298_v19 = vadd.f32 %v3204_v23, %v4401_v31  ;;  %v1289_v44 = vpop.f32.mrb[45].mxu1 }
 0x249   : > { %v1290_v4 = vadd.f32 %v1289_v44, %v4383_v34  ;;  %v3205_v39 = vpop.f32.mrb[46].mxu1 }
 0x24a   : > { %v1318_v29 = vmax.f32 %v1298_v19, 0.0  ;;  %v1301_v43 = vadd.f32 %v3205_v39, %v4409_v0  ;;  %v1292_v45 = vpop.f32.mrb[47].mxu1 }
 0x24b   : > { %v1316_v49 = vmax.f32 %v1290_v4, 0.0  ;;  %v1293_v56 = vadd.f32 %v1292_v45, %v4392_v37 }
 0x24c   : > { %v4484_v32 = vmax.f32 %v4423_v2, %v1318_v29  ;;  %v1319_v25 = vmax.f32 %v1301_v43, 0.0 }
 0x24d   : > { %v4487_v35 = vmax.f32 %v4425_v12, %v1316_v49  ;;  %v1317_v50 = vmax.f32 %v1293_v56, 0.0 }
 0x24e   : > { %v4490_v51 = vmax.f32 %v4427_v46, %v1319_v25 }
 0x24f   : > { %v4493_v3 = vmax.f32 %v4429_v14, %v1317_v50  ;;  %v3242_v27 = vpop.f32.mrb[48].mxu1 }
 0x250   : > { %v1505_v8 = vadd.f32 %v3242_v27, %v4310_v47  ;;  %v1496_v57 = vpop.f32.mrb[49].mxu1 }
 0x251   : > { %v1497_v1 = vadd.f32 %v1496_v57, %v4293_v41  ;;  %v3243_v15 = vpop.f32.mrb[50].mxu1 }
 0x252   : > { %v1561_v2 = vmax.f32 %v1505_v8, 0.0  ;;  %v1508_v11 = vadd.f32 %v3243_v15, %v4316_v59  ;;  %v1499_v63 = vpop.f32.mrb[51].mxu1 }
 0x253   : > { %v1559_v12 = vmax.f32 %v1497_v1, 0.0  ;;  %v1500_v60 = vadd.f32 %v1499_v63, %v4298_v42 }
 0x254   : > { %v4500_v46 = vmax.f32 %v4436_v55, %v1561_v2  ;;  %v1562_v22 = vmax.f32 %v1508_v11, 0.0 }
 0x255   : > { %v4503_v14 = vmax.f32 %v4439_v21, %v1559_v12  ;;  %v1560_v58 = vmax.f32 %v1500_v60, 0.0 }
 0x256   : > { %v4506_v33 = vmax.f32 %v4442_v48, %v1562_v22 }
 0x257   : > { %v4509_v17 = vmax.f32 %v4445_v20, %v1560_v58  ;;  %v3246_v40 = vpop.f32.mrb[52].mxu1 }
 0x258   : > { %v1521_v5 = vadd.f32 %v3246_v40, %v4336_v28  ;;  %v1512_v24 = vpop.f32.mrb[53].mxu1 }
 0x259   : > { %v1513_v52 = vadd.f32 %v1512_v24, %v4324_v54  ;;  %v3247_v23 = vpop.f32.mrb[54].mxu1 }
 0x25a   : > { %v1565_v55 = vmax.f32 %v1521_v5, 0.0  ;;  %v1524_v19 = vadd.f32 %v3247_v23, %v4342_v9  ;;  %v1515_v44 = vpop.f32.mrb[55].mxu1 }
 0x25b   : > { %v1563_v21 = vmax.f32 %v1513_v52, 0.0  ;;  %v1516_v4 = vadd.f32 %v1515_v44, %v4330_v61 }
 0x25c   : > { %v4516_v48 = vmax.f32 %v4452_v53, %v1565_v55  ;;  %v1566_v39 = vmax.f32 %v1524_v19, 0.0 }
 0x25d   : > { %v4519_v20 = vmax.f32 %v4455_v30, %v1563_v21  ;;  %v1564_v29 = vmax.f32 %v1516_v4, 0.0 }
 0x25e   : > { %v4522_v43 = vmax.f32 %v4458_v62, %v1566_v39 }
 0x25f   : > { %v4525_v45 = vmax.f32 %v4461_v10, %v1564_v29  ;;  %v3250_v49 = vpop.f32.mrb[56].mxu1 }
 0x260   : > { %v1537_v56 = vadd.f32 %v3250_v49, %v4367_v16  ;;  %v1528_v25 = vpop.f32.mrb[57].mxu1 }
 0x261   : > { %v1529_v50 = vadd.f32 %v1528_v25, %v4350_v18  ;;  %v3251_v27 = vpop.f32.mrb[58].mxu1 }
 0x262   : > { %v1569_v53 = vmax.f32 %v1537_v56, 0.0  ;;  %v1540_v8 = vadd.f32 %v3251_v27, %v4372_v38  ;;  %v1531_v57 = vpop.f32.mrb[59].mxu1 }
 0x263   : > { %v1567_v30 = vmax.f32 %v1529_v50, 0.0  ;;  %v1532_v1 = vadd.f32 %v1531_v57, %v4355_v36 }
 0x264   : > { %v4532_v62 = vmax.f32 %v4468_v13, %v1569_v53  ;;  %v1570_v15 = vmax.f32 %v1540_v8, 0.0 }
 0x265   : > { %v4535_v10 = vmax.f32 %v4471_v7, %v1567_v30  ;;  %v1568_v2 = vmax.f32 %v1532_v1, 0.0 }
 0x266   : > { %v4538_v11 = vmax.f32 %v4474_v26, %v1570_v15 }
 0x267   : > { %v4541_v63 = vmax.f32 %v4477_v6, %v1568_v2  ;;  %v3254_v12 = vpop.f32.mrb[60].mxu1 }
 0x268   : > { %v1553_v60 = vadd.f32 %v3254_v12, %v4401_v31  ;;  %v1544_v22 = vpop.f32.mrb[61].mxu1 }
 0x269   : > { %v1545_v58 = vadd.f32 %v1544_v22, %v4383_v34  ;;  %v3255_v40 = vpop.f32.mrb[62].mxu1 }
 0x26a   : > { %v1573_v13 = vmax.f32 %v1553_v60, 0.0  ;;  %v1556_v5 = vadd.f32 %v3255_v40, %v4409_v0  ;;  %v1547_v24 = vpop.f32.mrb[63].mxu1 }
 0x26b   : > { %v1571_v7 = vmax.f32 %v1545_v58, 0.0  ;;  %v1548_v52 = vadd.f32 %v1547_v24, %v4392_v37 }
 0x26c   : > { %v4548_v26 = vmax.f32 %v4484_v32, %v1573_v13  ;;  %v1574_v23 = vmax.f32 %v1556_v5, 0.0 }
 0x26d   : > { %v4551_v6 = vmax.f32 %v4487_v35, %v1571_v7  ;;  %v1572_v55 = vmax.f32 %v1548_v52, 0.0 }
 0x26e   : > { %v4554_v19 = vmax.f32 %v4490_v51, %v1574_v23 }
 0x26f   : > { %v4557_v44 = vmax.f32 %v4493_v3, %v1572_v55  ;;  %v3292_v21 = vpop.f32.mrb[64].mxu1 }
 0x270   : > { %v1760_v4 = vadd.f32 %v3292_v21, %v4310_v47  ;;  %v1751_v39 = vpop.f32.mrb[65].mxu1 }
 0x271   : > { %v1752_v29 = vadd.f32 %v1751_v39, %v4293_v41  ;;  %v3293_v49 = vpop.f32.mrb[66].mxu1 }
 0x272   : > { %v1816_v32 = vmax.f32 %v1760_v4, 0.0  ;;  %v1763_v56 = vadd.f32 %v3293_v49, %v4316_v59  ;;  %v1754_v25 = vpop.f32.mrb[67].mxu1 }
 0x273   : > { %v1814_v35 = vmax.f32 %v1752_v29, 0.0  ;;  %v1755_v50 = vadd.f32 %v1754_v25, %v4298_v42 }
 0x274   : > { %v4564_v51 = vmax.f32 %v4500_v46, %v1816_v32  ;;  %v1817_v27 = vmax.f32 %v1763_v56, 0.0 }
 0x275   : > { %v4567_v3 = vmax.f32 %v4503_v14, %v1814_v35  ;;  %v1815_v53 = vmax.f32 %v1755_v50, 0.0 }
 0x276   : > { %v4570_v8 = vmax.f32 %v4506_v33, %v1817_v27 }
 0x277   : > { %v4573_v57 = vmax.f32 %v4509_v17, %v1815_v53  ;;  %v3296_v30 = vpop.f32.mrb[68].mxu1 }
 0x278   : > { %v1776_v1 = vadd.f32 %v3296_v30, %v4336_v28  ;;  %v1767_v15 = vpop.f32.mrb[69].mxu1 }
 0x279   : > { %v1768_v2 = vadd.f32 %v1767_v15, %v4324_v54  ;;  %v3297_v12 = vpop.f32.mrb[70].mxu1 }
 0x27a   : > { %v1820_v46 = vmax.f32 %v1776_v1, 0.0  ;;  %v1779_v60 = vadd.f32 %v3297_v12, %v4342_v9  ;;  %v1770_v22 = vpop.f32.mrb[71].mxu1 }
 0x27b   : > { %v1818_v14 = vmax.f32 %v1768_v2, 0.0  ;;  %v1771_v58 = vadd.f32 %v1770_v22, %v4330_v61 }
 0x27c   : > { %v4580_v33 = vmax.f32 %v4516_v48, %v1820_v46  ;;  %v1821_v40 = vmax.f32 %v1779_v60, 0.0 }
 0x27d   : > { %v4583_v17 = vmax.f32 %v4519_v20, %v1818_v14  ;;  %v1819_v13 = vmax.f32 %v1771_v58, 0.0 }
 0x27e   : > { %v4586_v5 = vmax.f32 %v4522_v43, %v1821_v40 }
 0x27f   : > { %v4589_v24 = vmax.f32 %v4525_v45, %v1819_v13  ;;  %v3300_v7 = vpop.f32.mrb[72].mxu1 }
 0x280   : > { %v1792_v52 = vadd.f32 %v3300_v7, %v4367_v16  ;;  %v1783_v23 = vpop.f32.mrb[73].mxu1 }
 0x281   : > { %v1784_v55 = vadd.f32 %v1783_v23, %v4350_v18  ;;  %v3301_v21 = vpop.f32.mrb[74].mxu1 }
 0x282   : > { %v1824_v48 = vmax.f32 %v1792_v52, 0.0  ;;  %v1795_v4 = vadd.f32 %v3301_v21, %v4372_v38  ;;  %v1786_v39 = vpop.f32.mrb[75].mxu1 }
 0x283   : > { %v1822_v20 = vmax.f32 %v1784_v55, 0.0  ;;  %v1787_v29 = vadd.f32 %v1786_v39, %v4355_v36 }
 0x284   : > { %v4596_v43 = vmax.f32 %v4532_v62, %v1824_v48  ;;  %v1825_v49 = vmax.f32 %v1795_v4, 0.0 }
 0x285   : > { %v4599_v45 = vmax.f32 %v4535_v10, %v1822_v20  ;;  %v1823_v32 = vmax.f32 %v1787_v29, 0.0 }
 0x286   : > { %v4602_v56 = vmax.f32 %v4538_v11, %v1825_v49 }
 0x287   : > { %v4605_v25 = vmax.f32 %v4541_v63, %v1823_v32  ;;  %v3304_v35 = vpop.f32.mrb[76].mxu1 }
 0x288   : > { %v1808_v50 = vadd.f32 %v3304_v35, %v4401_v31  ;;  %v1799_v27 = vpop.f32.mrb[77].mxu1 }
 0x289   : > { %v1800_v53 = vadd.f32 %v1799_v27, %v4383_v34  ;;  %v3305_v30 = vpop.f32.mrb[78].mxu1 }
 0x28a   : > { %v1828_v62 = vmax.f32 %v1808_v50, 0.0  ;;  %v1811_v1 = vadd.f32 %v3305_v30, %v4409_v0  ;;  %v1802_v15 = vpop.f32.mrb[79].mxu1 }
 0x28b   : > { %v1826_v10 = vmax.f32 %v1800_v53, 0.0  ;;  %v1803_v2 = vadd.f32 %v1802_v15, %v4392_v37 }
 0x28c   : > { %v4612_v11 = vmax.f32 %v4548_v26, %v1828_v62  ;;  %v1829_v12 = vmax.f32 %v1811_v1, 0.0 }
 0x28d   : > { %v4615_v63 = vmax.f32 %v4551_v6, %v1826_v10  ;;  %v1827_v46 = vmax.f32 %v1803_v2, 0.0 }
 0x28e   : > { %v4618_v60 = vmax.f32 %v4554_v19, %v1829_v12 }
 0x28f   : > { %v4621_v22 = vmax.f32 %v4557_v44, %v1827_v46  ;;  %v3342_v14 = vpop.f32.mrb[80].mxu1 }
 0x290   : > { %v2015_v58 = vadd.f32 %v3342_v14, %v4310_v47  ;;  %v2006_v40 = vpop.f32.mrb[81].mxu1 }
 0x291   : > { %v2007_v13 = vadd.f32 %v2006_v40, %v4293_v41  ;;  %v3343_v7 = vpop.f32.mrb[82].mxu1 }
 0x292   : > { %v2071_v26 = vmax.f32 %v2015_v58, 0.0  ;;  %v2018_v52 = vadd.f32 %v3343_v7, %v4316_v59  ;;  %v2009_v23 = vpop.f32.mrb[83].mxu1 }
 0x293   : > { %v2069_v6 = vmax.f32 %v2007_v13, 0.0  ;;  %v2010_v55 = vadd.f32 %v2009_v23, %v4298_v42 }
 0x294   : > { %v4628_v19 = vmax.f32 %v4564_v51, %v2071_v26  ;;  %v2072_v21 = vmax.f32 %v2018_v52, 0.0 }
 0x295   : > { %v4631_v44 = vmax.f32 %v4567_v3, %v2069_v6  ;;  %v2070_v48 = vmax.f32 %v2010_v55, 0.0 }
 0x296   : > { %v4634_v4 = vmax.f32 %v4570_v8, %v2072_v21 }
 0x297   : > { %v4637_v39 = vmax.f32 %v4573_v57, %v2070_v48  ;;  %v3346_v20 = vpop.f32.mrb[84].mxu1 }
 0x298   : > { %v2031_v29 = vadd.f32 %v3346_v20, %v4336_v28  ;;  %v2022_v49 = vpop.f32.mrb[85].mxu1 }
 0x299   : > { %v2023_v32 = vadd.f32 %v2022_v49, %v4324_v54  ;;  %v3347_v35 = vpop.f32.mrb[86].mxu1 }
 0x29a   : > { %v2075_v51 = vmax.f32 %v2031_v29, 0.0  ;;  %v2034_v50 = vadd.f32 %v3347_v35, %v4342_v9  ;;  %v2025_v27 = vpop.f32.mrb[87].mxu1 }
 0x29b   : > { %v2073_v3 = vmax.f32 %v2023_v32, 0.0  ;;  %v2026_v53 = vadd.f32 %v2025_v27, %v4330_v61 }
 0x29c   : > { %v4644_v8 = vmax.f32 %v4580_v33, %v2075_v51  ;;  %v2076_v30 = vmax.f32 %v2034_v50, 0.0 }
 0x29d   : > { %v4647_v57 = vmax.f32 %v4583_v17, %v2073_v3  ;;  %v2074_v62 = vmax.f32 %v2026_v53, 0.0 }
 0x29e   : > { %v4650_v1 = vmax.f32 %v4586_v5, %v2076_v30 }
 0x29f   : > { %v4653_v15 = vmax.f32 %v4589_v24, %v2074_v62  ;;  %v3350_v10 = vpop.f32.mrb[88].mxu1 }
 0x2a0   : > { %v2047_v2 = vadd.f32 %v3350_v10, %v4367_v16  ;;  %v2038_v12 = vpop.f32.mrb[89].mxu1 }
 0x2a1   : > { %v2039_v46 = vadd.f32 %v2038_v12, %v4350_v18  ;;  %v3351_v14 = vpop.f32.mrb[90].mxu1 }
 0x2a2   : > { %v2079_v33 = vmax.f32 %v2047_v2, 0.0  ;;  %v2050_v58 = vadd.f32 %v3351_v14, %v4372_v38  ;;  %v2041_v40 = vpop.f32.mrb[91].mxu1 }
 0x2a3   : > { %v2077_v17 = vmax.f32 %v2039_v46, 0.0  ;;  %v2042_v13 = vadd.f32 %v2041_v40, %v4355_v36 }
 0x2a4   : > { %v4660_v5 = vmax.f32 %v4596_v43, %v2079_v33  ;;  %v2080_v7 = vmax.f32 %v2050_v58, 0.0 }
 0x2a5   : > { %v4663_v24 = vmax.f32 %v4599_v45, %v2077_v17  ;;  %v2078_v26 = vmax.f32 %v2042_v13, 0.0 }
 0x2a6   : > { %v4666_v52 = vmax.f32 %v4602_v56, %v2080_v7 }
 0x2a7   : > { %v4669_v23 = vmax.f32 %v4605_v25, %v2078_v26  ;;  %v3354_v6 = vpop.f32.mrb[92].mxu1 }
 0x2a8   : > { %v2063_v55 = vadd.f32 %v3354_v6, %v4401_v31  ;;  %v2054_v21 = vpop.f32.mrb[93].mxu1 }
 0x2a9   : > { %v2055_v48 = vadd.f32 %v2054_v21, %v4383_v34  ;;  %v3355_v20 = vpop.f32.mrb[94].mxu1 }
 0x2aa   : > { %v2083_v43 = vmax.f32 %v2063_v55, 0.0  ;;  %v2066_v29 = vadd.f32 %v3355_v20, %v4409_v0  ;;  %v2057_v49 = vpop.f32.mrb[95].mxu1 }
 0x2ab   : > { %v2081_v45 = vmax.f32 %v2055_v48, 0.0  ;;  %v2058_v32 = vadd.f32 %v2057_v49, %v4392_v37 }
 0x2ac   : > { %v4676_v56 = vmax.f32 %v4612_v11, %v2083_v43  ;;  %v2084_v35 = vmax.f32 %v2066_v29, 0.0 }
 0x2ad   : > { %v4679_v25 = vmax.f32 %v4615_v63, %v2081_v45  ;;  %v2082_v51 = vmax.f32 %v2058_v32, 0.0 }
 0x2ae   : > { %v4682_v50 = vmax.f32 %v4618_v60, %v2084_v35 }
 0x2af   : > { %v4685_v27 = vmax.f32 %v4621_v22, %v2082_v51  ;;  %v3392_v3 = vpop.f32.mrb[96].mxu1 }
 0x2b0   : > { %v2270_v53 = vadd.f32 %v3392_v3, %v4310_v47  ;;  %v2261_v30 = vpop.f32.mrb[97].mxu1 }
 0x2b1   : > { %v2262_v62 = vadd.f32 %v2261_v30, %v4293_v41  ;;  %v3393_v10 = vpop.f32.mrb[98].mxu1 }
 0x2b2   : > { %v2326_v11 = vmax.f32 %v2270_v53, 0.0  ;;  %v2273_v2 = vadd.f32 %v3393_v10, %v4316_v59  ;;  %v2264_v12 = vpop.f32.mrb[99].mxu1 }
 0x2b3   : > { %v2324_v63 = vmax.f32 %v2262_v62, 0.0  ;;  %v2265_v46 = vadd.f32 %v2264_v12, %v4298_v42 }
 0x2b4   : > { %v4692_v60 = vmax.f32 %v4628_v19, %v2326_v11  ;;  %v2327_v14 = vmax.f32 %v2273_v2, 0.0 }
 0x2b5   : > { %v4695_v22 = vmax.f32 %v4631_v44, %v2324_v63  ;;  %v2325_v33 = vmax.f32 %v2265_v46, 0.0 }
 0x2b6   : > { %v4698_v58 = vmax.f32 %v4634_v4, %v2327_v14 }
 0x2b7   : > { %v4701_v40 = vmax.f32 %v4637_v39, %v2325_v33  ;;  %v3396_v17 = vpop.f32.mrb[100].mxu1 }
 0x2b8   : > { %v2286_v13 = vadd.f32 %v3396_v17, %v4336_v28  ;;  %v2277_v7 = vpop.f32.mrb[101].mxu1 }
 0x2b9   : > { %v2278_v26 = vadd.f32 %v2277_v7, %v4324_v54  ;;  %v3397_v6 = vpop.f32.mrb[102].mxu1 }
 0x2ba   : > { %v2330_v19 = vmax.f32 %v2286_v13, 0.0  ;;  %v2289_v55 = vadd.f32 %v3397_v6, %v4342_v9  ;;  %v2280_v21 = vpop.f32.mrb[103].mxu1 }
 0x2bb   : > { %v2328_v44 = vmax.f32 %v2278_v26, 0.0  ;;  %v2281_v48 = vadd.f32 %v2280_v21, %v4330_v61 }
 0x2bc   : > { %v2346_v4 = vmax.f32 %v4644_v8, %v2330_v19  ;;  %v2331_v20 = vmax.f32 %v2289_v55, 0.0 }
 0x2bd   : > { %v2344_v39 = vmax.f32 %v4647_v57, %v2328_v44  ;;  %v2329_v43 = vmax.f32 %v2281_v48, 0.0 }
 0x2be   : > { %v4710_v29 = vmax.f32 %v4650_v1, %v2331_v20 }
 0x2bf   : > { %v4713_v49 = vmax.f32 %v4653_v15, %v2329_v43  ;;  %v3400_v45 = vpop.f32.mrb[104].mxu1 }
 0x2c0   : > { %v2302_v32 = vadd.f32 %v3400_v45, %v4367_v16  ;;  %v2293_v35 = vpop.f32.mrb[105].mxu1 }
 0x2c1   : > { %v2294_v51 = vadd.f32 %v2293_v35, %v4350_v18  ;;  %v3401_v3 = vpop.f32.mrb[106].mxu1 }
 0x2c2   : > { %v2334_v53 = vmax.f32 %v2302_v32, 0.0  ;;  %v2305_v8 = vadd.f32 %v3401_v3, %v4372_v38  ;;  %v2296_v30 = vpop.f32.mrb[107].mxu1 }
 0x2c3   : > { %v2332_v62 = vmax.f32 %v2294_v51, 0.0  ;;  %v2297_v57 = vadd.f32 %v2296_v30, %v4355_v36 }
 0x2c4   : > { %v4720_v1 = vmax.f32 %v4660_v5, %v2334_v53  ;;  %v2335_v10 = vmax.f32 %v2305_v8, 0.0 }
 0x2c5   : > { %v4723_v15 = vmax.f32 %v4663_v24, %v2332_v62  ;;  %v2333_v11 = vmax.f32 %v2297_v57, 0.0 }
 0x2c6   : > { %v4726_v2 = vmax.f32 %v4666_v52, %v2335_v10 }
 0x2c7   : > { %v4729_v12 = vmax.f32 %v4669_v23, %v2333_v11  ;;  %v3404_v63 = vpop.f32.mrb[108].mxu1 }
 0x2c8   : > { %v2318_v46 = vadd.f32 %v3404_v63, %v4401_v31  ;;  %v2309_v14 = vpop.f32.mrb[109].mxu1 }
 0x2c9   : > { %v2310_v33 = vadd.f32 %v2309_v14, %v4383_v34  ;;  %v3405_v17 = vpop.f32.mrb[110].mxu1 }
 0x2ca   : > { %v2338_v5 = vmax.f32 %v2318_v46, 0.0  ;;  %v2321_v13 = vadd.f32 %v3405_v17, %v4409_v0  ;;  %v2312_v7 = vpop.f32.mrb[111].mxu1 }
 0x2cb   : > { %v2336_v24 = vmax.f32 %v2310_v33, 0.0  ;;  %v2313_v26 = vadd.f32 %v2312_v7, %v4392_v37 }
 0x2cc   : > { %v4736_v52 = vmax.f32 %v4676_v56, %v2338_v5  ;;  %v2339_v6 = vmax.f32 %v2321_v13, 0.0 }
 0x2cd   : > { %v4739_v23 = vmax.f32 %v4679_v25, %v2336_v24  ;;  %v2337_v19 = vmax.f32 %v2313_v26, 0.0 }
 0x2ce   : > { %v4742_v55 = vmax.f32 %v4682_v50, %v2339_v6 }
 0x2cf   : > { %v4745_v21 = vmax.f32 %v4685_v27, %v2337_v19  ;;  %v3442_v44 = vpop.f32.mrb[128].mxu0 }
 0x2d0   : > { %v2525_v48 = vadd.f32 %v3442_v44, %v4310_v47  ;;  %v3446_v20 = vpop.f32.mrb[112].mxu1  ;;  %v2516_v43 = vpop.f32.mrb[129].mxu0 }
 0x2d1   : > { %v2541_v45 = vadd.f32 %v3446_v20, %v4336_v28  ;;  %v2517_v56 = vadd.f32 %v2516_v43, %v4293_v41  ;;  %v2532_v32 = vpop.f32.mrb[113].mxu1  ;;  %v3443_v35 = vpop.f32.mrb[130].mxu0 }
 0x2d2   : > { %v2581_v25 = vmax.f32 %v2525_v48, 0.0  ;;  %v2533_v51 = vadd.f32 %v2532_v32, %v4324_v54  ;;  %v2528_v50 = vadd.f32 %v3443_v35, %v4316_v59  ;;  %v3447_v3 = vpop.f32.mrb[114].mxu1  ;;  %v2519_v53 = vpop.f32.mrb[131].mxu0 }
 0x2d3   : > { %v2585_v27 = vmax.f32 %v2541_v45, 0.0  ;;  %v2579_v8 = vmax.f32 %v2517_v56, 0.0  ;;  %v2544_v30 = vadd.f32 %v3447_v3, %v4342_v9  ;;  %v2520_v47 = vadd.f32 %v2519_v53, %v4298_v42  ;;  %v2535_v62 = vpop.f32.mrb[115].mxu1 }
 0x2d4   : > { %v2597_v28 = vmax.f32 %v4692_v60, %v2581_v25  ;;  %v2583_v57 = vmax.f32 %v2533_v51, 0.0  ;;  %v2582_v41 = vmax.f32 %v2528_v50, 0.0  ;;  %v2536_v10 = vadd.f32 %v2535_v62, %v4330_v61 }
 0x2d5   : > { %v2601_v11 = vmax.f32 %v2346_v4, %v2585_v27  ;;  %v2595_v54 = vmax.f32 %v4695_v22, %v2579_v8  ;;  %v2586_v63 = vmax.f32 %v2544_v30, 0.0  ;;  %v2580_v59 = vmax.f32 %v2520_v47, 0.0 }
 0x2d6   : > { %v2599_v46 = vmax.f32 %v2344_v39, %v2583_v57  ;;  %v2598_v14 = vmax.f32 %v4698_v58, %v2582_v41  ;;  %v2584_v33 = vmax.f32 %v2536_v10, 0.0 }
 0x2d7   : > { %v2602_v9 = vmax.f32 %v4710_v29, %v2586_v63  ;;  %v2596_v42 = vmax.f32 %v4701_v40, %v2580_v59  ;;  %2611 = vxpose.xlu0.b32.start [1/16] %v2595_v54, 128 }
 0x2d8   : > { %v2600_v60 = vmax.f32 %v4713_v49, %v2584_v33  ;;  %v3450_v17 = vpop.f32.mrb[116].mxu1 }
 0x2d9   : > { %v2557_v5 = vadd.f32 %v3450_v17, %v4367_v16  ;;  %v2548_v61 = vpop.f32.mrb[117].mxu1 }
 0x2da   : > { %v2549_v4 = vadd.f32 %v2548_v61, %v4350_v18  ;;  %v3451_v22 = vpop.f32.mrb[118].mxu1 }
 0x2db   : > { %v2589_v13 = vmax.f32 %v2557_v5, 0.0  ;;  %v2560_v39 = vadd.f32 %v3451_v22, %v4372_v38  ;;  %v2551_v7 = vpop.f32.mrb[119].mxu1  ;;  %2612 = vxpose.xlu0.b32.cont [2/16] %v2596_v42, 128 }
 0x2dc   : > { %v2587_v58 = vmax.f32 %v2549_v4, 0.0  ;;  %v2552_v29 = vadd.f32 %v2551_v7, %v4355_v36 }
 0x2dd   : > { %v2605_v40 = vmax.f32 %v4720_v1, %v2589_v13  ;;  %v2590_v24 = vmax.f32 %v2560_v39, 0.0 }
 0x2de   : > { %v2603_v49 = vmax.f32 %v4723_v15, %v2587_v58  ;;  %v2588_v26 = vmax.f32 %v2552_v29, 0.0 }
 0x2df   : > { %v2606_v16 = vmax.f32 %v4726_v2, %v2590_v24  ;;  %2613 = vxpose.xlu0.b32.cont [3/16] %v2597_v28, 128 }
 0x2e0   : > { %v2604_v18 = vmax.f32 %v4729_v12, %v2588_v26  ;;  %v3454_v6 = vpop.f32.mrb[120].mxu1 }
 0x2e1   : > { %v2573_v19 = vadd.f32 %v3454_v6, %v4401_v31  ;;  %v2564_v38 = vpop.f32.mrb[121].mxu1 }
 0x2e2   : > { %v2565_v44 = vadd.f32 %v2564_v38, %v4383_v34  ;;  %v3455_v48 = vpop.f32.mrb[122].mxu1 }
 0x2e3   : > { %v2593_v20 = vmax.f32 %v2573_v19, 0.0  ;;  %v2576_v36 = vadd.f32 %v3455_v48, %v4409_v0  ;;  %v2567_v1 = vpop.f32.mrb[123].mxu1  ;;  %2614 = vxpose.xlu0.b32.cont [4/16] %v2598_v14, 128 }
 0x2e4   : > { %v2591_v43 = vmax.f32 %v2565_v44, 0.0  ;;  %v2568_v15 = vadd.f32 %v2567_v1, %v4392_v37 }
 0x2e5   : > { %v2609_v2 = vmax.f32 %v4736_v52, %v2593_v20  ;;  %v2594_v45 = vmax.f32 %v2576_v36, 0.0 }
 0x2e6   : > { %v2607_v12 = vmax.f32 %v4739_v23, %v2591_v43  ;;  %v2592_v56 = vmax.f32 %v2568_v15, 0.0 }
 0x2e7   : > { %v2610_v31 = vmax.f32 %v4742_v55, %v2594_v45  ;;  %2615 = vxpose.xlu0.b32.cont [5/16] %v2599_v46, 128 }
 0x2e8   : > { %v2608_v34 = vmax.f32 %v4745_v21, %v2592_v56 }
 0x2eb   : > { %2616 = vxpose.xlu0.b32.cont [6/16] %v2600_v60, 128 }
 0x2ef   : > { %2617 = vxpose.xlu0.b32.cont [7/16] %v2601_v11, 128 }
 0x2f3   : > { %2618 = vxpose.xlu0.b32.cont [8/16] %v2602_v9, 128 }
 0x2f7   : > { %2619 = vxpose.xlu0.b32.cont [9/16] %v2603_v49, 128 }
 0x2fb   : > { %2620 = vxpose.xlu0.b32.cont [10/16] %v2604_v18, 128 }
 0x2ff   : > { %2621 = vxpose.xlu0.b32.cont [11/16] %v2605_v40, 128 }
 0x303   : > { %2622 = vxpose.xlu0.b32.cont [12/16] %v2606_v16, 128 }
 0x307   : > { %2623 = vxpose.xlu0.b32.cont [13/16] %v2607_v12, 128 }
 0x30b   : > { %2624 = vxpose.xlu0.b32.cont [14/16] %v2608_v34, 128 }
 0x30f   : > { %2625 = vxpose.xlu0.b32.cont [15/16] %v2609_v2, 128 }
 0x313   : > { %2626 = vxpose.xlu0.b32.end [16/16] %v2610_v31, 128 }
 0x357   : > { %v2627_v37 = vpop.trf.xlu0 }
 0x358   : > { %2643 = vst [vmem:[%s4780_s10] sm:$0xff] %v2627_v37 }
 0x35b   : > { %v2628_v0 = vpop.trf.xlu0 }
 0x35c   : > { %2644 = vst [vmem:[%s4780_s10 + $0x8] sm:$0xff] %v2628_v0 }
 0x35f   : > { %v2629_v52 = vpop.trf.xlu0 }
 0x360   : > { %2645 = vst [vmem:[%s4780_s10 + $0x10] sm:$0xff] %v2629_v52 }
 0x363   : > { %v2630_v23 = vpop.trf.xlu0 }
 0x364   : > { %2646 = vst [vmem:[%s4780_s10 + $0x18] sm:$0xff] %v2630_v23 }
 0x367   : > { %v2631_v55 = vpop.trf.xlu0 }
 0x368   : > { %2647 = vst [vmem:[%s4780_s10 + $0x20] sm:$0xff] %v2631_v55 }
 0x36b   : > { %v2632_v21 = vpop.trf.xlu0 }
 0x36c   : > { %2648 = vst [vmem:[%s4780_s10 + $0x28] sm:$0xff] %v2632_v21 }
 0x36f   : > { %v2633_v32 = vpop.trf.xlu0 }
 0x370   : > { %2649 = vst [vmem:[%s4780_s10 + $0x30] sm:$0xff] %v2633_v32 }
 0x373   : > { %v2634_v35 = vpop.trf.xlu0 }
 0x374   : > { %2650 = vst [vmem:[%s4780_s10 + $0x38] sm:$0xff] %v2634_v35 }
 0x377   : > { %v2635_v25 = vpop.trf.xlu0 }
 0x378   : > { %2651 = vst [vmem:[%s4780_s10 + $0x40] sm:$0xff] %v2635_v25 }
 0x37b   : > { %v2636_v51 = vpop.trf.xlu0 }
 0x37c   : > { %2652 = vst [vmem:[%s4780_s10 + $0x48] sm:$0xff] %v2636_v51 }
 0x37f   : > { %v2637_v50 = vpop.trf.xlu0 }
 0x380   : > { %2653 = vst [vmem:[%s4780_s10 + $0x50] sm:$0xff] %v2637_v50 }
 0x383   : > { %v2638_v3 = vpop.trf.xlu0 }
 0x384   : > { %2654 = vst [vmem:[%s4780_s10 + $0x58] sm:$0xff] %v2638_v3 }
 0x387   : > { %v2639_v53 = vpop.trf.xlu0 }
 0x388   : > { %2655 = vst [vmem:[%s4780_s10 + $0x60] sm:$0xff] %v2639_v53 }
 0x38b   : > { %v2640_v27 = vpop.trf.xlu0 }
 0x38c   : > { %2656 = vst [vmem:[%s4780_s10 + $0x68] sm:$0xff] %v2640_v27 }
 0x38f   : > { %v2641_v8 = vpop.trf.xlu0 }
 0x390   : > { %2657 = vst [vmem:[%s4780_s10 + $0x70] sm:$0xff] %v2641_v8 }
 0x393   : > { %v2642_v30 = vpop.trf.xlu0 }
 0x394   : > { %2658 = vst [vmem:[%s4780_s10 + $0x78] sm:$0xff] %v2642_v30 }
 0x395   : > { %3577 = shalt.err (!%p3574_p5)
}
 0x396   : > { %s3578_s29 = scalar_lea.hbm %s4802_s16, 2048  ;;  %s3582_s13 = scalar_lea.hbm %s4860_s5, 4096 }
 0x397   : > { %p3579_p6 = scmp.ne.s32.totalorder %s4802_s16, %s3578_s29  ;;  %p3583_p10 = scmp.lt.u32.totalorder %s4802_s16, %s4860_s5 }
 0x398   : > { %p3584_p11 = scmp.lt.u32.totalorder %s3582_s13, %s3578_s29  ;;  %p3586_p13 = scmp.lt.u32.totalorder %s3578_s29, %s4802_s16 }
 0x399   : > { %p3580_p7 = pnand %p3579_p6, %p3718_p4 }
 0x39a   : > { %p3585_p12 = por %p3584_p11, %p3583_p10 }
 0x39b   : > { %p3581_p9 = pneg %p3580_p7 }
 0x39c   : > { %p3587_p0 = por %p3586_p13, %p3585_p12 }
 0x39e   : > { %p3588_p1 = pnand %p3587_p0, %p3581_p9 }
 0x3a0   : > { %3591 = shalt.err (!%p3588_p1)
}
 0x3a1   : > { %s3646_s11 = smov 128   ;;  %s3647_s14 = smov 8  }
 0x3a2   : > { %3480 = dma.vmem_to_hbm [thread:$0]  (%p3718_p4), %s4804_s12, 2048, %s4802_s16, %s4809_s17, %s3646_s11, %s3646_s11, %s3647_s14  }
 0x3a3 PF: > { %p3486_p2 = scmp.ge.s32.totalorder %s3642_s23, 2  ;;  %s2690_s15 = sand.u32 1, %s3622_s18  }
 0x3a4   : > { %s2691_s24 = scalar_lea.sflag [#allocation3], %s2690_s15 }
 0x3a5   : > { %p3483_p3 = pnand %p3486_p2, %p3725_p8 }
 0x3a7   : > { %3617 = dma.done.wait (!%p3483_p3), %s2691_s24, 2048  }
 0x3a8   : > { %3619 = vsyncadd (!%p3483_p3), %s2691_s24, 4294965248  ;;  %s18_s23 = sadd.s32 1, %s3642_s23   ;;  %s4863_s18 = smov %s3626_s19 }
 0x3a9   : > { %p15_p5 = scmp.ge.s32.totalorder %s18_s23, 4   ;;  %s4864_s19 = smov %s3630_s20 }
 0x3aa   : > { %s4865_s20 = smov %s3731_s6  ;;  %s4866_s21 = smov %s3638_s22 }
 0x3ab   : > { %s4867_s22 = smov %s4869_s26  ;;  %17 = sbr.rel (!%p15_p5) target bundleno = 4 (0x4), region = 82 }
 0x3b2   :  { %2696 = vsyncpa [#allocation3], 1 }
 0x3b3   :  { %2698 = vsyncpa [#allocation3 + $0x1], 1 }

</bundles_post_ra>
